<compile_context>
chip_gen: v7x
topology: tpu7x:2x2x1
jax: 0.10.0
libtpu: 0.0.40
codegen_flags: <defaults>
</compile_context>

<pallas_src>
import functools
import math

import jax
import jax.numpy as jnp
from jax.experimental import pallas as pl
from jax.experimental.pallas import tpu as pltpu


# -----------------------------------------------------------------------------
# Kernel A: fused features (conv1 -> ReLU -> BN1 -> pool -> conv2 -> ReLU -> BN2 -> pool)
# -----------------------------------------------------------------------------
def features_kernel(bt, cols_ref, w1_ref, b1_ref, s1_ref, t1_ref,
                    w2_ref, b2_ref, s2_ref, t2_ref,
                    out_ref, z_ref, y2_ref):
    """Fused feature extractor for one batch tile of `bt` images.

    cols_ref: (bt*1024, K1) bf16  stage-1 im2col patches; row = b*1024 + q*256 + z
                                  where q = pool-window slot (2*wy + wx) and
                                  z = ip*16 + jp on the pool grid padded to 16x16.
    w1_ref:   (K1, 32)  bf16      conv1 weight, rows ordered (dy, dx, cin).
    b1/s1/t1: (1, 32)   f32       conv1 bias, BN1 scale, BN1 shift.
    w2_ref:   (9, 32, 64) bf16    conv2 weight, tap t = dy*3 + dx.
    b2/s2/t2: (1, 64)   f32       conv2 bias, BN2 scale, BN2 shift.
    out_ref:  (bt, 49, 64) bf16   final pooled features, row 7*i + j = pool
                                  output at spatial (i, j), channels last.
    z_ref:    (bt, 296, 32) bf16  scratch: pooled stage-1 map on the padded
                                  16x16 grid + zero tail for conv2 tap slices.
    y2_ref:   (bt, 256, 64) f32   scratch: conv2 output on the flat 16-wide grid.
    """
    w1 = w1_ref[...]
    b1 = b1_ref[...]; s1 = s1_ref[...]; t1 = t1_ref[...]
    b2 = b2_ref[...]; s2 = s2_ref[...]; t2 = t2_ref[...]

    # ---- stage 1: one big conv1 matmul over the whole batch tile -------------
    y1 = jnp.dot(cols_ref[...], w1, preferred_element_type=jnp.float32)
    y1 = jnp.maximum(y1 + b1, 0.0) * s1 + t1            # bias + ReLU, then BN1 (eval)

    # Interior mask of the padded 16x16 pool grid: the ring must be exactly 0 so
    # the pooled map already IS conv2's zero-padded ('same') input.
    r = jax.lax.broadcasted_iota(jnp.int32, (256, 1), 0)
    ip = jnp.right_shift(r, 4)
    jp = jnp.bitwise_and(r, 15)
    interior = ((ip >= 1) & (ip <= 14) & (jp >= 1) & (jp <= 14)).astype(jnp.float32)

    for b in range(bt):
        base = b * 1024
        zb = z_ref.at[b]
        y2b = y2_ref.at[b]
        ob = out_ref.at[b]

        # -------- stage-1 2x2 max-pool over the 4 window slots ----------------
        pooled = y1[base:base + 256, :]
        for q in range(1, 4):
            pooled = jnp.maximum(pooled, y1[base + q * 256:base + (q + 1) * 256, :])
        pooled = pooled * interior

        # Write pooled map + (small) zero tail so conv2 tap slices stay in bounds.
        # Tail is re-zeroed every step (cheap) to stay correct with "parallel"
        # grid sharding across TensorCores.
        zb[pl.ds(0, 256), :] = pooled.astype(jnp.bfloat16)
        zb[pl.ds(256, 40), :] = jnp.zeros((40, 32), jnp.bfloat16)

        # -------- stage 2: conv2 as 9 shifted-slice matmuls -------------------
        # conv2[i, j] = sum_t z[(i*16+j) + (dy*16+dx)] @ W2[t];  rows with
        # i >= 14 or j >= 14 are junk and never read back.
        # TODO(synk): could stage the 9 taps into one (256, 288) buffer for a
        # single K=288 dot; kept as 9 K=32 dots for simplicity (MXU work is tiny).
        acc = jnp.zeros((256, 64), jnp.float32)
        for dy in range(3):
            for dx in range(3):
                acc = acc + jnp.dot(zb[pl.ds(dy * 16 + dx, 256), :],
                                    w2_ref[dy * 3 + dx],
                                    preferred_element_type=jnp.float32)
        y2b[...] = jnp.maximum(acc + b2, 0.0) * s2 + t2   # bias + ReLU + BN2

        # -------- 2x2 max-pool: only the 49 kept (even-anchored) windows ------
        for i in range(7):
            rr = 32 * i
            m = jnp.maximum(
                jnp.maximum(y2b[pl.ds(rr + 0, 7, stride=2), :],
                            y2b[pl.ds(rr + 1, 7, stride=2), :]),
                jnp.maximum(y2b[pl.ds(rr + 16, 7, stride=2), :],
                            y2b[pl.ds(rr + 17, 7, stride=2), :]))
            ob[pl.ds(7 * i, 7), :] = m.astype(jnp.bfloat16)


# -----------------------------------------------------------------------------
# Kernel B: fused classifier (Linear -> ReLU -> Linear -> ReLU -> Linear)
# -----------------------------------------------------------------------------
def mlp_kernel(x_ref, w1_ref, b1_ref, w2_ref, b2_ref, w3_ref, b3_ref, out_ref):
    h = jnp.dot(x_ref[...], w1_ref[...], preferred_element_type=jnp.float32)
    h = jnp.maximum(h + b1_ref[...], 0.0)
    # TODO(synk): Dropout(p=0.4) is identity in eval/inference mode (not applied).
    h = jnp.dot(h.astype(jnp.bfloat16), w2_ref[...], preferred_element_type=jnp.float32)
    h = jnp.maximum(h + b2_ref[...], 0.0)
    out_ref[...] = (jnp.dot(h.astype(jnp.bfloat16), w3_ref[...],
                            preferred_element_type=jnp.float32) + b3_ref[...])


# -----------------------------------------------------------------------------
# JAX wrappers
# -----------------------------------------------------------------------------
def _stage1_cols(x_nhwc):
    """NHWC input -> (B*1024, 9*Cin) bf16 im2col patches for kernel A.

    Row order within an image: q*256 + (ip*16 + jp) where q enumerates the 4
    positions of each 2x2 pool window and (ip, jp) is the pool-output grid
    padded from 14x14 to 16x16, so the stage-1 pooled result lands directly in
    conv2's zero-padded layout.
    """
    B, H, W, C = x_nhwc.shape
    K = 9 * C
    xp = jnp.pad(x_nhwc, ((0, 0), (1, 1), (1, 1), (0, 0)))
    taps = [xp[:, dy:dy + H, dx:dx + W, :] for dy in range(3) for dx in range(3)]
    cols = jnp.concatenate(taps, axis=-1)                       # (B,H,W,K); feature = (dy*3+dx)*C + c
    cols = cols.reshape(B, H // 2, 2, W // 2, 2, K)
    cols = cols.transpose(0, 2, 4, 1, 3, 5)                     # (B, 2, 2, Ho, Wo, K)
    cols = jnp.pad(cols, ((0, 0), (0, 0), (0, 0), (1, 1), (1, 1), (0, 0)))
    return cols.reshape(B * 4 * 256, K).astype(jnp.bfloat16)


def features_forward(x_nhwc, prep, batch_tile=None):
    """Both conv stages fused in one pallas_call; returns (B, 49, 64) bf16 in
    (h, w, c) flatten order."""
    B, H, W, C = x_nhwc.shape
    assert (H, W) == (28, 28), "classifier Linear(64*7*7, .) forces 28x28 input"
    K1 = 9 * C

    # Batch tile: fold up to 8 images into one grid step (amortizes the ~0.35us
    # per-step overhead and grows matmul M / DMA sizes) while keeping >=2 grid
    # steps when possible so v7x's two TensorCores both get work.
    bt = batch_tile if batch_tile is not None else max(1, min(8, pl.cdiv(B, 2)))
    n_steps = pl.cdiv(B, bt)
    Bp = n_steps * bt
    if Bp != B:
        x_nhwc = jnp.pad(x_nhwc, ((0, Bp - B), (0, 0), (0, 0), (0, 0)))

    cols = _stage1_cols(x_nhwc)                                 # (Bp*1024, K1) bf16

    flops = Bp * (2 * 1024 * K1 * 32 + 2 * 9 * 256 * 32 * 64)
    bytes_acc = (Bp * 1024 * K1 * 2 + Bp * 49 * 64 * 2
                 + K1 * 32 * 2 + 9 * 32 * 64 * 2 + 6 * 64 * 4)

    out = pl.pallas_call(
        functools.partial(features_kernel, bt),
        out_shape=jax.ShapeDtypeStruct((Bp, 49, 64), jnp.bfloat16),
        grid=(n_steps,),
        in_specs=[
            pl.BlockSpec((bt * 1024, K1), lambda g: (g, 0)),
            pl.BlockSpec((K1, 32), lambda g: (0, 0)),
            pl.BlockSpec((1, 32), lambda g: (0, 0)),
            pl.BlockSpec((1, 32), lambda g: (0, 0)),
            pl.BlockSpec((1, 32), lambda g: (0, 0)),
            pl.BlockSpec((9, 32, 64), lambda g: (0, 0, 0)),
            pl.BlockSpec((1, 64), lambda g: (0, 0)),
            pl.BlockSpec((1, 64), lambda g: (0, 0)),
            pl.BlockSpec((1, 64), lambda g: (0, 0)),
        ],
        out_specs=pl.BlockSpec((bt, 49, 64), lambda g: (g, 0, 0)),
        scratch_shapes=[pltpu.VMEM((bt, 296, 32), jnp.bfloat16),
                        pltpu.VMEM((bt, 256, 64), jnp.float32)],
        compiler_params=pltpu.CompilerParams(dimension_semantics=("parallel",)),
        cost_estimate=pl.CostEstimate(flops=flops, transcendentals=0,
                                      bytes_accessed=bytes_acc),
    )(cols, prep["w1"], prep["b1"], prep["s1"], prep["t1"],
      prep["w2"], prep["b2"], prep["s2"], prep["t2"])
    return out[:B]


def classifier_forward(x_flat, prep):
    B = x_flat.shape[0]
    # TODO(synk): at large batch on v7x, add a "parallel" batch-row grid here so
    # both TensorCores share the MLP; unnecessary at small B (1 TC on v5e/v6e).
    flops = 2 * B * (3136 * 128 + 128 * 64 + 64 * 10)
    bytes_acc = (B * 3136 * 2 + (3136 * 128 + 128 * 64 + 64 * 10) * 2
                 + (128 + 64 + 10) * 4 + B * 10 * 4)
    return pl.pallas_call(
        mlp_kernel,
        out_shape=jax.ShapeDtypeStruct((B, 10), jnp.float32),
        cost_estimate=pl.CostEstimate(flops=flops, transcendentals=0,
                                      bytes_accessed=bytes_acc),
    )(x_flat, prep["fc1_w"], prep["fc1_b"], prep["fc2_w"], prep["fc2_b"],
      prep["fc3_w"], prep["fc3_b"])


def my_nn_forward(x_nchw, prep):
    x = jnp.transpose(x_nchw, (0, 2, 3, 1))                     # NCHW -> NHWC
    feat = features_forward(x, prep)                            # (B, 49, 64) bf16
    B = feat.shape[0]
    # Rows are already in (h, w) order with channels last; fc1 rows were
    # pre-permuted at prep time so this matches PyTorch's nn.Flatten-on-NCHW.
    return classifier_forward(feat.reshape(B, 49 * 64), prep)


# -----------------------------------------------------------------------------
# Parameters
# -----------------------------------------------------------------------------
def init_params(key, in_ch):
    """PyTorch-like shapes/init. conv weights stored (kh, kw, cin, cout);
    fc weights stored (in, out) with fc1 rows in PyTorch NCHW flatten order."""
    ks = jax.random.split(key, 10)

    def unif(k, shape, fan_in):
        bound = 1.0 / math.sqrt(fan_in)
        return jax.random.uniform(k, shape, jnp.float32, -bound, bound)

    return {
        "conv1_w": unif(ks[0], (3, 3, in_ch, 32), 9 * in_ch),
        "conv1_b": unif(ks[1], (32,), 9 * in_ch),
        "bn1_gamma": jnp.ones((32,), jnp.float32),
        "bn1_beta": jnp.zeros((32,), jnp.float32),
        "bn1_mean": jnp.zeros((32,), jnp.float32),
        "bn1_var": jnp.ones((32,), jnp.float32),
        "conv2_w": unif(ks[2], (3, 3, 32, 64), 9 * 32),
        "conv2_b": unif(ks[3], (64,), 9 * 32),
        "bn2_gamma": jnp.ones((64,), jnp.float32),
        "bn2_beta": jnp.zeros((64,), jnp.float32),
        "bn2_mean": jnp.zeros((64,), jnp.float32),
        "bn2_var": jnp.ones((64,), jnp.float32),
        "fc1_w": unif(ks[4], (64 * 7 * 7, 128), 64 * 7 * 7),
        "fc1_b": unif(ks[5], (1, 128), 64 * 7 * 7),
        "fc2_w": unif(ks[6], (128, 64), 128),
        "fc2_b": unif(ks[7], (1, 64), 128),
        "fc3_w": unif(ks[8], (64, 10), 64),
        "fc3_b": unif(ks[9], (1, 10), 64),
    }


def _permute_fc1_rows(w):
    """Reorder fc1 rows from PyTorch NCHW-flatten order (c,h,w) to NHWC (h,w,c)."""
    return w.reshape(64, 7, 7, 128).transpose(1, 2, 0, 3).reshape(64 * 7 * 7, 128)


def prepare_params(p, eps=1e-5):
    """One-time weight prep (outside the forward): BN eval-mode scale/shift,
    conv-weight flattening, fc1 row permutation, bf16 casts of matmul operands."""
    s1 = p["bn1_gamma"] / jnp.sqrt(p["bn1_var"] + eps)
    s2 = p["bn2_gamma"] / jnp.sqrt(p["bn2_var"] + eps)
    # TODO(synk): BN scale could be folded into the conv weights, but only when
    # gamma > 0 (folding a negative gamma changes ReLU semantics); kept explicit.
    cin = p["conv1_w"].shape[2]
    return {
        "w1": p["conv1_w"].reshape(9 * cin, 32).astype(jnp.bfloat16),
        "b1": p["conv1_b"].reshape(1, 32),
        "s1": s1.reshape(1, 32),
        "t1": (p["bn1_beta"] - p["bn1_mean"] * s1).reshape(1, 32),
        "w2": p["conv2_w"].reshape(9, 32, 64).astype(jnp.bfloat16),
        "b2": p["conv2_b"].reshape(1, 64),
        "s2": s2.reshape(1, 64),
        "t2": (p["bn2_beta"] - p["bn2_mean"] * s2).reshape(1, 64),
        "fc1_w": _permute_fc1_rows(p["fc1_w"]).astype(jnp.bfloat16),
        "fc1_b": p["fc1_b"],
        "fc2_w": p["fc2_w"].astype(jnp.bfloat16),
        "fc2_b": p["fc2_b"],
        "fc3_w": p["fc3_w"].astype(jnp.bfloat16),
        "fc3_b": p["fc3_b"],
    }


# -----------------------------------------------------------------------------
# Pure-JAX reference (PyTorch semantics) for the equivalence checks
# -----------------------------------------------------------------------------
def _reference_features(x_nhwc, p, eps=1e-5):
    def stage(x, w, b, g, beta, mean, var):
        y = jax.lax.conv_general_dilated(
            x, w, window_strides=(1, 1), padding="SAME",
            dimension_numbers=("NHWC", "HWIO", "NHWC"))
        y = jnp.maximum(y + b, 0.0)
        y = (y - mean) / jnp.sqrt(var + eps) * g + beta
        return jax.lax.reduce_window(y, -jnp.inf, jax.lax.max,
                                     (1, 2, 2, 1), (1, 2, 2, 1), "VALID")

    x = stage(x_nhwc, p["conv1_w"], p["conv1_b"], p["bn1_gamma"], p["bn1_beta"],
              p["bn1_mean"], p["bn1_var"])
    x = stage(x, p["conv2_w"], p["conv2_b"], p["bn2_gamma"], p["bn2_beta"],
              p["bn2_mean"], p["bn2_var"])
    return x


def _reference_forward(x_nchw, p):
    x = _reference_features(jnp.transpose(x_nchw, (0, 2, 3, 1)), p)
    B = x.shape[0]
    x = jnp.transpose(x, (0, 3, 1, 2)).reshape(B, -1)           # nn.Flatten on NCHW
    h = jnp.maximum(x @ p["fc1_w"] + p["fc1_b"], 0.0)
    h = jnp.maximum(h @ p["fc2_w"] + p["fc2_b"], 0.0)
    return h @ p["fc3_w"] + p["fc3_b"]


if __name__ == "__main__":
    key = jax.random.PRNGKey(0)
    k_x, k_p = jax.random.split(key)

    # Linear(64*7*7, 128) in the classifier forces 28x28 spatial input; 4 in-channels.
    B, C_IN, H, W = 2, 4, 28, 28
    x = jax.random.normal(k_x, (B, C_IN, H, W), jnp.float32)    # NCHW like PyTorch
    params = init_params(k_p, C_IN)
    prep = prepare_params(params)

    fwd = jax.jit(my_nn_forward)
    out = jax.block_until_ready(fwd(x, prep))
    assert out.shape == (B, 10) and out.dtype == jnp.float32

    # --- one-off equivalence checks -------------------------------------------
    # (a) fc1 row permutation exactly inverts PyTorch's NCHW flatten order.
    v = jax.random.normal(jax.random.PRNGKey(1), (64, 7, 7), jnp.float32)
    lhs = jnp.matmul(v.reshape(1, -1), params["fc1_w"],
                     precision=jax.lax.Precision.HIGHEST)
    rhs = jnp.matmul(jnp.transpose(v, (1, 2, 0)).reshape(1, -1),
                     _permute_fc1_rows(params["fc1_w"]),
                     precision=jax.lax.Precision.HIGHEST)
    assert float(jnp.max(jnp.abs(lhs - rhs))) < 1e-3

    # (b) fused Pallas path vs. pure-JAX reference (bf16 matmul tolerances).
    kfeat = jax.jit(lambda xx, pp: features_forward(
        jnp.transpose(xx, (0, 2, 3, 1)), pp))(x, prep).astype(jnp.float32)
    rfeat = _reference_features(jnp.transpose(x, (0, 2, 3, 1)), params)
    assert float(jnp.max(jnp.abs(kfeat - rfeat.reshape(B, 49, 64)))) < 1e-1
    rout = _reference_forward(x, params)
    assert float(jnp.max(jnp.abs(out - rout))) < 5e-2

    print("KERNEL_OK")
</pallas_src>

<mosaic_0001>
module attributes {stable_mosaic.version = 11 : i64} {
  func.func @features_kernel(%arg0: i32, %arg1: memref<1024x36xbf16, #tpu.memory_space<vmem>>, %arg2: memref<36x32xbf16, #tpu.memory_space<vmem>>, %arg3: memref<1x32xf32, #tpu.memory_space<vmem>>, %arg4: memref<1x32xf32, #tpu.memory_space<vmem>>, %arg5: memref<1x32xf32, #tpu.memory_space<vmem>>, %arg6: memref<9x32x64xbf16, #tpu.memory_space<vmem>>, %arg7: memref<1x64xf32, #tpu.memory_space<vmem>>, %arg8: memref<1x64xf32, #tpu.memory_space<vmem>>, %arg9: memref<1x64xf32, #tpu.memory_space<vmem>>, %arg10: memref<1x49x64xbf16, #tpu.memory_space<vmem>>, %arg11: memref<1x296x32xbf16, #tpu.memory_space<vmem>>, %arg12: memref<1x256x64xf32, #tpu.memory_space<vmem>>) attributes {dimension_semantics = [#tpu.dimension_semantics<parallel>], iteration_bounds = array<i64: 2>, scalar_prefetch = 0 : i64, scratch_operands = 2 : i64, tpu.core_type = #tpu.core_type<tc>, window_params = [{transform_indices = @transform_0, window_bounds = array<i64: 1024, 36>}, {pipeline_mode = #tpu.pipeline_mode<synchronous>, transform_indices = @transform_1, window_bounds = array<i64: 36, 32>}, {pipeline_mode = #tpu.pipeline_mode<synchronous>, transform_indices = @transform_2, window_bounds = array<i64: 1, 32>}, {pipeline_mode = #tpu.pipeline_mode<synchronous>, transform_indices = @transform_3, window_bounds = array<i64: 1, 32>}, {pipeline_mode = #tpu.pipeline_mode<synchronous>, transform_indices = @transform_4, window_bounds = array<i64: 1, 32>}, {pipeline_mode = #tpu.pipeline_mode<synchronous>, transform_indices = @transform_5, window_bounds = array<i64: 9, 32, 64>}, {pipeline_mode = #tpu.pipeline_mode<synchronous>, transform_indices = @transform_6, window_bounds = array<i64: 1, 64>}, {pipeline_mode = #tpu.pipeline_mode<synchronous>, transform_indices = @transform_7, window_bounds = array<i64: 1, 64>}, {pipeline_mode = #tpu.pipeline_mode<synchronous>, transform_indices = @transform_8, window_bounds = array<i64: 1, 64>}, {transform_indices = @transform_9, window_bounds = array<i64: 1, 49, 64>}]} {
    %c0 = arith.constant 0 : index
    %c0_0 = arith.constant 0 : index
    %0 = vector.load %arg2[%c0, %c0_0] : memref<36x32xbf16, #tpu.memory_space<vmem>>, vector<36x32xbf16>
    %c0_1 = arith.constant 0 : index
    %c0_2 = arith.constant 0 : index
    %1 = vector.load %arg3[%c0_1, %c0_2] : memref<1x32xf32, #tpu.memory_space<vmem>>, vector<1x32xf32>
    %c0_3 = arith.constant 0 : index
    %c0_4 = arith.constant 0 : index
    %2 = vector.load %arg4[%c0_3, %c0_4] : memref<1x32xf32, #tpu.memory_space<vmem>>, vector<1x32xf32>
    %c0_5 = arith.constant 0 : index
    %c0_6 = arith.constant 0 : index
    %3 = vector.load %arg5[%c0_5, %c0_6] : memref<1x32xf32, #tpu.memory_space<vmem>>, vector<1x32xf32>
    %c0_7 = arith.constant 0 : index
    %c0_8 = arith.constant 0 : index
    %4 = vector.load %arg7[%c0_7, %c0_8] : memref<1x64xf32, #tpu.memory_space<vmem>>, vector<1x64xf32>
    %c0_9 = arith.constant 0 : index
    %c0_10 = arith.constant 0 : index
    %5 = vector.load %arg8[%c0_9, %c0_10] : memref<1x64xf32, #tpu.memory_space<vmem>>, vector<1x64xf32>
    %c0_11 = arith.constant 0 : index
    %c0_12 = arith.constant 0 : index
    %6 = vector.load %arg9[%c0_11, %c0_12] : memref<1x64xf32, #tpu.memory_space<vmem>>, vector<1x64xf32>
    %c0_13 = arith.constant 0 : index
    %c0_14 = arith.constant 0 : index
    %7 = vector.load %arg1[%c0_13, %c0_14] : memref<1024x36xbf16, #tpu.memory_space<vmem>>, vector<1024x36xbf16>
    %cst = arith.constant dense<0.000000e+00> : vector<1024x32xf32>
    %8 = tpu.matmul %7, %0, %cst {dimension_numbers = #tpu.dot_dimension_numbers<[1], [0], [0], [1], [0, 0, 1, 1], [], []>} : vector<1024x36xbf16>, vector<36x32xbf16>, vector<1024x32xf32> -> vector<1024x32xf32>
    %9 = vector.broadcast %1 : vector<1x32xf32> to vector<1024x32xf32>
    %10 = arith.addf %8, %9 : vector<1024x32xf32>
    %cst_15 = arith.constant 0.000000e+00 : f32
    %11 = vector.broadcast %cst_15 : f32 to vector<1024x32xf32>
    %12 = arith.maximumf %10, %11 : vector<1024x32xf32>
    %13 = vector.broadcast %2 : vector<1x32xf32> to vector<1024x32xf32>
    %14 = arith.mulf %12, %13 : vector<1024x32xf32>
    %15 = vector.broadcast %3 : vector<1x32xf32> to vector<1024x32xf32>
    %16 = arith.addf %14, %15 : vector<1024x32xf32>
    %17 = tpu.iota {dimensions = array<i32: 0>} : vector<256x1xi32>
    %c4_i32 = arith.constant 4 : i32
    %18 = vector.broadcast %c4_i32 : i32 to vector<256x1xi32>
    %19 = arith.shrsi %17, %18 : vector<256x1xi32>
    %c15_i32 = arith.constant 15 : i32
    %20 = vector.broadcast %c15_i32 : i32 to vector<256x1xi32>
    %21 = arith.andi %17, %20 : vector<256x1xi32>
    %c1_i32 = arith.constant 1 : i32
    %22 = vector.broadcast %c1_i32 : i32 to vector<256x1xi32>
    %23 = arith.cmpi sge, %19, %22 : vector<256x1xi32>
    %c14_i32 = arith.constant 14 : i32
    %24 = vector.broadcast %c14_i32 : i32 to vector<256x1xi32>
    %25 = arith.cmpi sle, %19, %24 : vector<256x1xi32>
    %26 = arith.andi %23, %25 : vector<256x1xi1>
    %c1_i32_16 = arith.constant 1 : i32
    %27 = vector.broadcast %c1_i32_16 : i32 to vector<256x1xi32>
    %28 = arith.cmpi sge, %21, %27 : vector<256x1xi32>
    %29 = arith.andi %26, %28 : vector<256x1xi1>
    %c14_i32_17 = arith.constant 14 : i32
    %30 = vector.broadcast %c14_i32_17 : i32 to vector<256x1xi32>
    %31 = arith.cmpi sle, %21, %30 : vector<256x1xi32>
    %32 = arith.andi %29, %31 : vector<256x1xi1>
    %33 = arith.extui %32 : vector<256x1xi1> to vector<256x1xi32>
    %34 = arith.sitofp %33 : vector<256x1xi32> to vector<256x1xf32>
    %35 = vector.extract_strided_slice %16 {offsets = [0, 0], sizes = [256, 32], strides = [1, 1]} : vector<1024x32xf32> to vector<256x32xf32>
    %36 = vector.extract_strided_slice %16 {offsets = [256, 0], sizes = [256, 32], strides = [1, 1]} : vector<1024x32xf32> to vector<256x32xf32>
    %37 = arith.maximumf %35, %36 : vector<256x32xf32>
    %38 = vector.extract_strided_slice %16 {offsets = [512, 0], sizes = [256, 32], strides = [1, 1]} : vector<1024x32xf32> to vector<256x32xf32>
    %39 = arith.maximumf %37, %38 : vector<256x32xf32>
    %40 = vector.extract_strided_slice %16 {offsets = [768, 0], sizes = [256, 32], strides = [1, 1]} : vector<1024x32xf32> to vector<256x32xf32>
    %41 = arith.maximumf %39, %40 : vector<256x32xf32>
    %42 = vector.broadcast %34 : vector<256x1xf32> to vector<256x32xf32>
    %43 = arith.mulf %41, %42 : vector<256x32xf32>
    %44 = arith.truncf %43 : vector<256x32xf32> to vector<256x32xbf16>
    %c0_i32 = arith.constant 0 : i32
    %c0_i32_18 = arith.constant 0 : i32
    %c0_i32_19 = arith.constant 0 : i32
    %45 = tpu.memref_slice %arg11[%c0_i32, %c0_i32_18, %c0_i32_19] : memref<1x296x32xbf16, #tpu.memory_space<vmem>> -> memref<1x296x32xbf16, #tpu.memory_space<vmem>>
    %46 = tpu.memref_squeeze %45 : memref<1x296x32xbf16, #tpu.memory_space<vmem>> -> memref<296x32xbf16, #tpu.memory_space<vmem>>
    %c0_20 = arith.constant 0 : index
    %c0_21 = arith.constant 0 : index
    %47 = vector.load %46[%c0_20, %c0_21] : memref<296x32xbf16, #tpu.memory_space<vmem>>, vector<256x32xbf16>
    tpu.vector_store %46[%c0_20, %c0_21], %44 {strides = array<i32>} : memref<296x32xbf16, #tpu.memory_space<vmem>>, vector<256x32xbf16>,
    %cst_22 = arith.constant 0.000000e+00 : bf16
    %48 = vector.broadcast %cst_22 : bf16 to vector<40x32xbf16>
    %c0_i32_23 = arith.constant 0 : i32
    %c0_i32_24 = arith.constant 0 : i32
    %c0_i32_25 = arith.constant 0 : i32
    %49 = tpu.memref_slice %arg11[%c0_i32_23, %c0_i32_24, %c0_i32_25] : memref<1x296x32xbf16, #tpu.memory_space<vmem>> -> memref<1x296x32xbf16, #tpu.memory_space<vmem>>
    %50 = tpu.memref_squeeze %49 : memref<1x296x32xbf16, #tpu.memory_space<vmem>> -> memref<296x32xbf16, #tpu.memory_space<vmem>>
    %c256 = arith.constant 256 : index
    %c0_26 = arith.constant 0 : index
    %51 = vector.load %50[%c256, %c0_26] : memref<296x32xbf16, #tpu.memory_space<vmem>>, vector<40x32xbf16>
    tpu.vector_store %50[%c256, %c0_26], %48 {strides = array<i32>} : memref<296x32xbf16, #tpu.memory_space<vmem>>, vector<40x32xbf16>,
    %cst_27 = arith.constant 0.000000e+00 : f32
    %52 = vector.broadcast %cst_27 : f32 to vector<256x64xf32>
    %c0_i32_28 = arith.constant 0 : i32
    %c0_i32_29 = arith.constant 0 : i32
    %c0_i32_30 = arith.constant 0 : i32
    %53 = tpu.memref_slice %arg11[%c0_i32_28, %c0_i32_29, %c0_i32_30] : memref<1x296x32xbf16, #tpu.memory_space<vmem>> -> memref<1x296x32xbf16, #tpu.memory_space<vmem>>
    %54 = tpu.memref_squeeze %53 : memref<1x296x32xbf16, #tpu.memory_space<vmem>> -> memref<296x32xbf16, #tpu.memory_space<vmem>>
    %c0_31 = arith.constant 0 : index
    %c0_32 = arith.constant 0 : index
    %55 = vector.load %54[%c0_31, %c0_32] : memref<296x32xbf16, #tpu.memory_space<vmem>>, vector<256x32xbf16>
    %c0_33 = arith.constant 0 : index
    %c0_34 = arith.constant 0 : index
    %c0_35 = arith.constant 0 : index
    %56 = vector.load %arg6[%c0_33, %c0_34, %c0_35] : memref<9x32x64xbf16, #tpu.memory_space<vmem>>, vector<1x32x64xbf16>
    %57 = vector.shape_cast %56 : vector<1x32x64xbf16> to vector<32x64xbf16>
    %cst_36 = arith.constant dense<0.000000e+00> : vector<256x64xf32>
    %58 = tpu.matmul %55, %57, %cst_36 {dimension_numbers = #tpu.dot_dimension_numbers<[1], [0], [0], [1], [0, 0, 1, 1], [], []>} : vector<256x32xbf16>, vector<32x64xbf16>, vector<256x64xf32> -> vector<256x64xf32>
    %59 = arith.addf %52, %58 : vector<256x64xf32>
    %c0_i32_37 = arith.constant 0 : i32
    %c0_i32_38 = arith.constant 0 : i32
    %c0_i32_39 = arith.constant 0 : i32
    %60 = tpu.memref_slice %arg11[%c0_i32_37, %c0_i32_38, %c0_i32_39] : memref<1x296x32xbf16, #tpu.memory_space<vmem>> -> memref<1x296x32xbf16, #tpu.memory_space<vmem>>
    %61 = tpu.memref_squeeze %60 : memref<1x296x32xbf16, #tpu.memory_space<vmem>> -> memref<296x32xbf16, #tpu.memory_space<vmem>>
    %c1 = arith.constant 1 : index
    %c0_40 = arith.constant 0 : index
    %62 = vector.load %61[%c1, %c0_40] : memref<296x32xbf16, #tpu.memory_space<vmem>>, vector<256x32xbf16>
    %c1_41 = arith.constant 1 : index
    %c0_42 = arith.constant 0 : index
    %c0_43 = arith.constant 0 : index
    %63 = vector.load %arg6[%c1_41, %c0_42, %c0_43] : memref<9x32x64xbf16, #tpu.memory_space<vmem>>, vector<1x32x64xbf16>
    %64 = vector.shape_cast %63 : vector<1x32x64xbf16> to vector<32x64xbf16>
    %cst_44 = arith.constant dense<0.000000e+00> : vector<256x64xf32>
    %65 = tpu.matmul %62, %64, %cst_44 {dimension_numbers = #tpu.dot_dimension_numbers<[1], [0], [0], [1], [0, 0, 1, 1], [], []>} : vector<256x32xbf16>, vector<32x64xbf16>, vector<256x64xf32> -> vector<256x64xf32>
    %66 = arith.addf %59, %65 : vector<256x64xf32>
    %c0_i32_45 = arith.constant 0 : i32
    %c0_i32_46 = arith.constant 0 : i32
    %c0_i32_47 = arith.constant 0 : i32
    %67 = tpu.memref_slice %arg11[%c0_i32_45, %c0_i32_46, %c0_i32_47] : memref<1x296x32xbf16, #tpu.memory_space<vmem>> -> memref<1x296x32xbf16, #tpu.memory_space<vmem>>
    %68 = tpu.memref_squeeze %67 : memref<1x296x32xbf16, #tpu.memory_space<vmem>> -> memref<296x32xbf16, #tpu.memory_space<vmem>>
    %c2 = arith.constant 2 : index
    %c0_48 = arith.constant 0 : index
    %69 = vector.load %68[%c2, %c0_48] : memref<296x32xbf16, #tpu.memory_space<vmem>>, vector<256x32xbf16>
    %c2_49 = arith.constant 2 : index
    %c0_50 = arith.constant 0 : index
    %c0_51 = arith.constant 0 : index
    %70 = vector.load %arg6[%c2_49, %c0_50, %c0_51] : memref<9x32x64xbf16, #tpu.memory_space<vmem>>, vector<1x32x64xbf16>
    %71 = vector.shape_cast %70 : vector<1x32x64xbf16> to vector<32x64xbf16>
    %cst_52 = arith.constant dense<0.000000e+00> : vector<256x64xf32>
    %72 = tpu.matmul %69, %71, %cst_52 {dimension_numbers = #tpu.dot_dimension_numbers<[1], [0], [0], [1], [0, 0, 1, 1], [], []>} : vector<256x32xbf16>, vector<32x64xbf16>, vector<256x64xf32> -> vector<256x64xf32>
    %73 = arith.addf %66, %72 : vector<256x64xf32>
    %c0_i32_53 = arith.constant 0 : i32
    %c0_i32_54 = arith.constant 0 : i32
    %c0_i32_55 = arith.constant 0 : i32
    %74 = tpu.memref_slice %arg11[%c0_i32_53, %c0_i32_54, %c0_i32_55] : memref<1x296x32xbf16, #tpu.memory_space<vmem>> -> memref<1x296x32xbf16, #tpu.memory_space<vmem>>
    %75 = tpu.memref_squeeze %74 : memref<1x296x32xbf16, #tpu.memory_space<vmem>> -> memref<296x32xbf16, #tpu.memory_space<vmem>>
    %c16 = arith.constant 16 : index
    %c0_56 = arith.constant 0 : index
    %76 = vector.load %75[%c16, %c0_56] : memref<296x32xbf16, #tpu.memory_space<vmem>>, vector<256x32xbf16>
    %c3 = arith.constant 3 : index
    %c0_57 = arith.constant 0 : index
    %c0_58 = arith.constant 0 : index
    %77 = vector.load %arg6[%c3, %c0_57, %c0_58] : memref<9x32x64xbf16, #tpu.memory_space<vmem>>, vector<1x32x64xbf16>
    %78 = vector.shape_cast %77 : vector<1x32x64xbf16> to vector<32x64xbf16>
    %cst_59 = arith.constant dense<0.000000e+00> : vector<256x64xf32>
    %79 = tpu.matmul %76, %78, %cst_59 {dimension_numbers = #tpu.dot_dimension_numbers<[1], [0], [0], [1], [0, 0, 1, 1], [], []>} : vector<256x32xbf16>, vector<32x64xbf16>, vector<256x64xf32> -> vector<256x64xf32>
    %80 = arith.addf %73, %79 : vector<256x64xf32>
    %c0_i32_60 = arith.constant 0 : i32
    %c0_i32_61 = arith.constant 0 : i32
    %c0_i32_62 = arith.constant 0 : i32
    %81 = tpu.memref_slice %arg11[%c0_i32_60, %c0_i32_61, %c0_i32_62] : memref<1x296x32xbf16, #tpu.memory_space<vmem>> -> memref<1x296x32xbf16, #tpu.memory_space<vmem>>
    %82 = tpu.memref_squeeze %81 : memref<1x296x32xbf16, #tpu.memory_space<vmem>> -> memref<296x32xbf16, #tpu.memory_space<vmem>>
    %c17 = arith.constant 17 : index
    %c0_63 = arith.constant 0 : index
    %83 = vector.load %82[%c17, %c0_63] : memref<296x32xbf16, #tpu.memory_space<vmem>>, vector<256x32xbf16>
    %c4 = arith.constant 4 : index
    %c0_64 = arith.constant 0 : index
    %c0_65 = arith.constant 0 : index
    %84 = vector.load %arg6[%c4, %c0_64, %c0_65] : memref<9x32x64xbf16, #tpu.memory_space<vmem>>, vector<1x32x64xbf16>
    %85 = vector.shape_cast %84 : vector<1x32x64xbf16> to vector<32x64xbf16>
    %cst_66 = arith.constant dense<0.000000e+00> : vector<256x64xf32>
    %86 = tpu.matmul %83, %85, %cst_66 {dimension_numbers = #tpu.dot_dimension_numbers<[1], [0], [0], [1], [0, 0, 1, 1], [], []>} : vector<256x32xbf16>, vector<32x64xbf16>, vector<256x64xf32> -> vector<256x64xf32>
    %87 = arith.addf %80, %86 : vector<256x64xf32>
    %c0_i32_67 = arith.constant 0 : i32
    %c0_i32_68 = arith.constant 0 : i32
    %c0_i32_69 = arith.constant 0 : i32
    %88 = tpu.memref_slice %arg11[%c0_i32_67, %c0_i32_68, %c0_i32_69] : memref<1x296x32xbf16, #tpu.memory_space<vmem>> -> memref<1x296x32xbf16, #tpu.memory_space<vmem>>
    %89 = tpu.memref_squeeze %88 : memref<1x296x32xbf16, #tpu.memory_space<vmem>> -> memref<296x32xbf16, #tpu.memory_space<vmem>>
    %c18 = arith.constant 18 : index
    %c0_70 = arith.constant 0 : index
    %90 = vector.load %89[%c18, %c0_70] : memref<296x32xbf16, #tpu.memory_space<vmem>>, vector<256x32xbf16>
    %c5 = arith.constant 5 : index
    %c0_71 = arith.constant 0 : index
    %c0_72 = arith.constant 0 : index
    %91 = vector.load %arg6[%c5, %c0_71, %c0_72] : memref<9x32x64xbf16, #tpu.memory_space<vmem>>, vector<1x32x64xbf16>
    %92 = vector.shape_cast %91 : vector<1x32x64xbf16> to vector<32x64xbf16>
    %cst_73 = arith.constant dense<0.000000e+00> : vector<256x64xf32>
    %93 = tpu.matmul %90, %92, %cst_73 {dimension_numbers = #tpu.dot_dimension_numbers<[1], [0], [0], [1], [0, 0, 1, 1], [], []>} : vector<256x32xbf16>, vector<32x64xbf16>, vector<256x64xf32> -> vector<256x64xf32>
    %94 = arith.addf %87, %93 : vector<256x64xf32>
    %c0_i32_74 = arith.constant 0 : i32
    %c0_i32_75 = arith.constant 0 : i32
    %c0_i32_76 = arith.constant 0 : i32
    %95 = tpu.memref_slice %arg11[%c0_i32_74, %c0_i32_75, %c0_i32_76] : memref<1x296x32xbf16, #tpu.memory_space<vmem>> -> memref<1x296x32xbf16, #tpu.memory_space<vmem>>
    %96 = tpu.memref_squeeze %95 : memref<1x296x32xbf16, #tpu.memory_space<vmem>> -> memref<296x32xbf16, #tpu.memory_space<vmem>>
    %c32 = arith.constant 32 : index
    %c0_77 = arith.constant 0 : index
    %97 = vector.load %96[%c32, %c0_77] : memref<296x32xbf16, #tpu.memory_space<vmem>>, vector<256x32xbf16>
    %c6 = arith.constant 6 : index
    %c0_78 = arith.constant 0 : index
    %c0_79 = arith.constant 0 : index
    %98 = vector.load %arg6[%c6, %c0_78, %c0_79] : memref<9x32x64xbf16, #tpu.memory_space<vmem>>, vector<1x32x64xbf16>
    %99 = vector.shape_cast %98 : vector<1x32x64xbf16> to vector<32x64xbf16>
    %cst_80 = arith.constant dense<0.000000e+00> : vector<256x64xf32>
    %100 = tpu.matmul %97, %99, %cst_80 {dimension_numbers = #tpu.dot_dimension_numbers<[1], [0], [0], [1], [0, 0, 1, 1], [], []>} : vector<256x32xbf16>, vector<32x64xbf16>, vector<256x64xf32> -> vector<256x64xf32>
    %101 = arith.addf %94, %100 : vector<256x64xf32>
    %c0_i32_81 = arith.constant 0 : i32
    %c0_i32_82 = arith.constant 0 : i32
    %c0_i32_83 = arith.constant 0 : i32
    %102 = tpu.memref_slice %arg11[%c0_i32_81, %c0_i32_82, %c0_i32_83] : memref<1x296x32xbf16, #tpu.memory_space<vmem>> -> memref<1x296x32xbf16, #tpu.memory_space<vmem>>
    %103 = tpu.memref_squeeze %102 : memref<1x296x32xbf16, #tpu.memory_space<vmem>> -> memref<296x32xbf16, #tpu.memory_space<vmem>>
    %c33 = arith.constant 33 : index
    %c0_84 = arith.constant 0 : index
    %104 = vector.load %103[%c33, %c0_84] : memref<296x32xbf16, #tpu.memory_space<vmem>>, vector<256x32xbf16>
    %c7 = arith.constant 7 : index
    %c0_85 = arith.constant 0 : index
    %c0_86 = arith.constant 0 : index
    %105 = vector.load %arg6[%c7, %c0_85, %c0_86] : memref<9x32x64xbf16, #tpu.memory_space<vmem>>, vector<1x32x64xbf16>
    %106 = vector.shape_cast %105 : vector<1x32x64xbf16> to vector<32x64xbf16>
    %cst_87 = arith.constant dense<0.000000e+00> : vector<256x64xf32>
    %107 = tpu.matmul %104, %106, %cst_87 {dimension_numbers = #tpu.dot_dimension_numbers<[1], [0], [0], [1], [0, 0, 1, 1], [], []>} : vector<256x32xbf16>, vector<32x64xbf16>, vector<256x64xf32> -> vector<256x64xf32>
    %108 = arith.addf %101, %107 : vector<256x64xf32>
    %c0_i32_88 = arith.constant 0 : i32
    %c0_i32_89 = arith.constant 0 : i32
    %c0_i32_90 = arith.constant 0 : i32
    %109 = tpu.memref_slice %arg11[%c0_i32_88, %c0_i32_89, %c0_i32_90] : memref<1x296x32xbf16, #tpu.memory_space<vmem>> -> memref<1x296x32xbf16, #tpu.memory_space<vmem>>
    %110 = tpu.memref_squeeze %109 : memref<1x296x32xbf16, #tpu.memory_space<vmem>> -> memref<296x32xbf16, #tpu.memory_space<vmem>>
    %c34 = arith.constant 34 : index
    %c0_91 = arith.constant 0 : index
    %111 = vector.load %110[%c34, %c0_91] : memref<296x32xbf16, #tpu.memory_space<vmem>>, vector<256x32xbf16>
    %c8 = arith.constant 8 : index
    %c0_92 = arith.constant 0 : index
    %c0_93 = arith.constant 0 : index
    %112 = vector.load %arg6[%c8, %c0_92, %c0_93] : memref<9x32x64xbf16, #tpu.memory_space<vmem>>, vector<1x32x64xbf16>
    %113 = vector.shape_cast %112 : vector<1x32x64xbf16> to vector<32x64xbf16>
    %cst_94 = arith.constant dense<0.000000e+00> : vector<256x64xf32>
    %114 = tpu.matmul %111, %113, %cst_94 {dimension_numbers = #tpu.dot_dimension_numbers<[1], [0], [0], [1], [0, 0, 1, 1], [], []>} : vector<256x32xbf16>, vector<32x64xbf16>, vector<256x64xf32> -> vector<256x64xf32>
    %115 = arith.addf %108, %114 : vector<256x64xf32>
    %116 = vector.broadcast %4 : vector<1x64xf32> to vector<256x64xf32>
    %117 = arith.addf %115, %116 : vector<256x64xf32>
    %cst_95 = arith.constant 0.000000e+00 : f32
    %118 = vector.broadcast %cst_95 : f32 to vector<256x64xf32>
    %119 = arith.maximumf %117, %118 : vector<256x64xf32>
    %120 = vector.broadcast %5 : vector<1x64xf32> to vector<256x64xf32>
    %121 = arith.mulf %119, %120 : vector<256x64xf32>
    %122 = vector.broadcast %6 : vector<1x64xf32> to vector<256x64xf32>
    %123 = arith.addf %121, %122 : vector<256x64xf32>
    %c0_96 = arith.constant 0 : index
    %c0_97 = arith.constant 0 : index
    %c0_98 = arith.constant 0 : index
    %124 = vector.load %arg12[%c0_96, %c0_97, %c0_98] : memref<1x256x64xf32, #tpu.memory_space<vmem>>, vector<1x256x64xf32>
    %125 = vector.shape_cast %124 : vector<1x256x64xf32> to vector<256x64xf32>
    %126 = vector.shape_cast %123 : vector<256x64xf32> to vector<1x256x64xf32>
    tpu.vector_store %arg12[%c0_96, %c0_97, %c0_98], %126 {strides = array<i32>} : memref<1x256x64xf32, #tpu.memory_space<vmem>>, vector<1x256x64xf32>,
    %c0_i32_99 = arith.constant 0 : i32
    %c0_i32_100 = arith.constant 0 : i32
    %c0_i32_101 = arith.constant 0 : i32
    %127 = tpu.memref_slice %arg12[%c0_i32_99, %c0_i32_100, %c0_i32_101] : memref<1x256x64xf32, #tpu.memory_space<vmem>> -> memref<1x256x64xf32, #tpu.memory_space<vmem>>
    %128 = tpu.memref_squeeze %127 : memref<1x256x64xf32, #tpu.memory_space<vmem>> -> memref<256x64xf32, #tpu.memory_space<vmem>>
    %c0_102 = arith.constant 0 : index
    %c0_103 = arith.constant 0 : index
    %129 = tpu.strided_load %128[%c0_102, %c0_103] {strides = array<i32: 2, 1>} : memref<256x64xf32, #tpu.memory_space<vmem>>, vector<7x64xf32>
    %c0_i32_104 = arith.constant 0 : i32
    %c0_i32_105 = arith.constant 0 : i32
    %c0_i32_106 = arith.constant 0 : i32
    %130 = tpu.memref_slice %arg12[%c0_i32_104, %c0_i32_105, %c0_i32_106] : memref<1x256x64xf32, #tpu.memory_space<vmem>> -> memref<1x256x64xf32, #tpu.memory_space<vmem>>
    %131 = tpu.memref_squeeze %130 : memref<1x256x64xf32, #tpu.memory_space<vmem>> -> memref<256x64xf32, #tpu.memory_space<vmem>>
    %c1_107 = arith.constant 1 : index
    %c0_108 = arith.constant 0 : index
    %132 = tpu.strided_load %131[%c1_107, %c0_108] {strides = array<i32: 2, 1>} : memref<256x64xf32, #tpu.memory_space<vmem>>, vector<7x64xf32>
    %133 = arith.maximumf %129, %132 : vector<7x64xf32>
    %c0_i32_109 = arith.constant 0 : i32
    %c0_i32_110 = arith.constant 0 : i32
    %c0_i32_111 = arith.constant 0 : i32
    %134 = tpu.memref_slice %arg12[%c0_i32_109, %c0_i32_110, %c0_i32_111] : memref<1x256x64xf32, #tpu.memory_space<vmem>> -> memref<1x256x64xf32, #tpu.memory_space<vmem>>
    %135 = tpu.memref_squeeze %134 : memref<1x256x64xf32, #tpu.memory_space<vmem>> -> memref<256x64xf32, #tpu.memory_space<vmem>>
    %c16_112 = arith.constant 16 : index
    %c0_113 = arith.constant 0 : index
    %136 = tpu.strided_load %135[%c16_112, %c0_113] {strides = array<i32: 2, 1>} : memref<256x64xf32, #tpu.memory_space<vmem>>, vector<7x64xf32>
    %c0_i32_114 = arith.constant 0 : i32
    %c0_i32_115 = arith.constant 0 : i32
    %c0_i32_116 = arith.constant 0 : i32
    %137 = tpu.memref_slice %arg12[%c0_i32_114, %c0_i32_115, %c0_i32_116] : memref<1x256x64xf32, #tpu.memory_space<vmem>> -> memref<1x256x64xf32, #tpu.memory_space<vmem>>
    %138 = tpu.memref_squeeze %137 : memref<1x256x64xf32, #tpu.memory_space<vmem>> -> memref<256x64xf32, #tpu.memory_space<vmem>>
    %c17_117 = arith.constant 17 : index
    %c0_118 = arith.constant 0 : index
    %139 = tpu.strided_load %138[%c17_117, %c0_118] {strides = array<i32: 2, 1>} : memref<256x64xf32, #tpu.memory_space<vmem>>, vector<7x64xf32>
    %140 = arith.maximumf %136, %139 : vector<7x64xf32>
    %141 = arith.maximumf %133, %140 : vector<7x64xf32>
    %142 = arith.truncf %141 : vector<7x64xf32> to vector<7x64xbf16>
    %c0_i32_119 = arith.constant 0 : i32
    %c0_i32_120 = arith.constant 0 : i32
    %c0_i32_121 = arith.constant 0 : i32
    %143 = tpu.memref_slice %arg10[%c0_i32_119, %c0_i32_120, %c0_i32_121] : memref<1x49x64xbf16, #tpu.memory_space<vmem>> -> memref<1x49x64xbf16, #tpu.memory_space<vmem>>
    %144 = tpu.memref_squeeze %143 : memref<1x49x64xbf16, #tpu.memory_space<vmem>> -> memref<49x64xbf16, #tpu.memory_space<vmem>>
    %c0_122 = arith.constant 0 : index
    %c0_123 = arith.constant 0 : index
    %145 = vector.load %144[%c0_122, %c0_123] : memref<49x64xbf16, #tpu.memory_space<vmem>>, vector<7x64xbf16>
    tpu.vector_store %144[%c0_122, %c0_123], %142 {strides = array<i32>} : memref<49x64xbf16, #tpu.memory_space<vmem>>, vector<7x64xbf16>,
    %c0_i32_124 = arith.constant 0 : i32
    %c0_i32_125 = arith.constant 0 : i32
    %c0_i32_126 = arith.constant 0 : i32
    %146 = tpu.memref_slice %arg12[%c0_i32_124, %c0_i32_125, %c0_i32_126] : memref<1x256x64xf32, #tpu.memory_space<vmem>> -> memref<1x256x64xf32, #tpu.memory_space<vmem>>
    %147 = tpu.memref_squeeze %146 : memref<1x256x64xf32, #tpu.memory_space<vmem>> -> memref<256x64xf32, #tpu.memory_space<vmem>>
    %c32_127 = arith.constant 32 : index
    %c0_128 = arith.constant 0 : index
    %148 = tpu.strided_load %147[%c32_127, %c0_128] {strides = array<i32: 2, 1>} : memref<256x64xf32, #tpu.memory_space<vmem>>, vector<7x64xf32>
    %c0_i32_129 = arith.constant 0 : i32
    %c0_i32_130 = arith.constant 0 : i32
    %c0_i32_131 = arith.constant 0 : i32
    %149 = tpu.memref_slice %arg12[%c0_i32_129, %c0_i32_130, %c0_i32_131] : memref<1x256x64xf32, #tpu.memory_space<vmem>> -> memref<1x256x64xf32, #tpu.memory_space<vmem>>
    %150 = tpu.memref_squeeze %149 : memref<1x256x64xf32, #tpu.memory_space<vmem>> -> memref<256x64xf32, #tpu.memory_space<vmem>>
    %c33_132 = arith.constant 33 : index
    %c0_133 = arith.constant 0 : index
    %151 = tpu.strided_load %150[%c33_132, %c0_133] {strides = array<i32: 2, 1>} : memref<256x64xf32, #tpu.memory_space<vmem>>, vector<7x64xf32>
    %152 = arith.maximumf %148, %151 : vector<7x64xf32>
    %c0_i32_134 = arith.constant 0 : i32
    %c0_i32_135 = arith.constant 0 : i32
    %c0_i32_136 = arith.constant 0 : i32
    %153 = tpu.memref_slice %arg12[%c0_i32_134, %c0_i32_135, %c0_i32_136] : memref<1x256x64xf32, #tpu.memory_space<vmem>> -> memref<1x256x64xf32, #tpu.memory_space<vmem>>
    %154 = tpu.memref_squeeze %153 : memref<1x256x64xf32, #tpu.memory_space<vmem>> -> memref<256x64xf32, #tpu.memory_space<vmem>>
    %c48 = arith.constant 48 : index
    %c0_137 = arith.constant 0 : index
    %155 = tpu.strided_load %154[%c48, %c0_137] {strides = array<i32: 2, 1>} : memref<256x64xf32, #tpu.memory_space<vmem>>, vector<7x64xf32>
    %c0_i32_138 = arith.constant 0 : i32
    %c0_i32_139 = arith.constant 0 : i32
    %c0_i32_140 = arith.constant 0 : i32
    %156 = tpu.memref_slice %arg12[%c0_i32_138, %c0_i32_139, %c0_i32_140] : memref<1x256x64xf32, #tpu.memory_space<vmem>> -> memref<1x256x64xf32, #tpu.memory_space<vmem>>
    %157 = tpu.memref_squeeze %156 : memref<1x256x64xf32, #tpu.memory_space<vmem>> -> memref<256x64xf32, #tpu.memory_space<vmem>>
    %c49 = arith.constant 49 : index
    %c0_141 = arith.constant 0 : index
    %158 = tpu.strided_load %157[%c49, %c0_141] {strides = array<i32: 2, 1>} : memref<256x64xf32, #tpu.memory_space<vmem>>, vector<7x64xf32>
    %159 = arith.maximumf %155, %158 : vector<7x64xf32>
    %160 = arith.maximumf %152, %159 : vector<7x64xf32>
    %161 = arith.truncf %160 : vector<7x64xf32> to vector<7x64xbf16>
    %c0_i32_142 = arith.constant 0 : i32
    %c0_i32_143 = arith.constant 0 : i32
    %c0_i32_144 = arith.constant 0 : i32
    %162 = tpu.memref_slice %arg10[%c0_i32_142, %c0_i32_143, %c0_i32_144] : memref<1x49x64xbf16, #tpu.memory_space<vmem>> -> memref<1x49x64xbf16, #tpu.memory_space<vmem>>
    %163 = tpu.memref_squeeze %162 : memref<1x49x64xbf16, #tpu.memory_space<vmem>> -> memref<49x64xbf16, #tpu.memory_space<vmem>>
    %c7_145 = arith.constant 7 : index
    %c0_146 = arith.constant 0 : index
    %164 = vector.load %163[%c7_145, %c0_146] : memref<49x64xbf16, #tpu.memory_space<vmem>>, vector<7x64xbf16>
    tpu.vector_store %163[%c7_145, %c0_146], %161 {strides = array<i32>} : memref<49x64xbf16, #tpu.memory_space<vmem>>, vector<7x64xbf16>,
    %c0_i32_147 = arith.constant 0 : i32
    %c0_i32_148 = arith.constant 0 : i32
    %c0_i32_149 = arith.constant 0 : i32
    %165 = tpu.memref_slice %arg12[%c0_i32_147, %c0_i32_148, %c0_i32_149] : memref<1x256x64xf32, #tpu.memory_space<vmem>> -> memref<1x256x64xf32, #tpu.memory_space<vmem>>
    %166 = tpu.memref_squeeze %165 : memref<1x256x64xf32, #tpu.memory_space<vmem>> -> memref<256x64xf32, #tpu.memory_space<vmem>>
    %c64 = arith.constant 64 : index
    %c0_150 = arith.constant 0 : index
    %167 = tpu.strided_load %166[%c64, %c0_150] {strides = array<i32: 2, 1>} : memref<256x64xf32, #tpu.memory_space<vmem>>, vector<7x64xf32>
    %c0_i32_151 = arith.constant 0 : i32
    %c0_i32_152 = arith.constant 0 : i32
    %c0_i32_153 = arith.constant 0 : i32
    %168 = tpu.memref_slice %arg12[%c0_i32_151, %c0_i32_152, %c0_i32_153] : memref<1x256x64xf32, #tpu.memory_space<vmem>> -> memref<1x256x64xf32, #tpu.memory_space<vmem>>
    %169 = tpu.memref_squeeze %168 : memref<1x256x64xf32, #tpu.memory_space<vmem>> -> memref<256x64xf32, #tpu.memory_space<vmem>>
    %c65 = arith.constant 65 : index
    %c0_154 = arith.constant 0 : index
    %170 = tpu.strided_load %169[%c65, %c0_154] {strides = array<i32: 2, 1>} : memref<256x64xf32, #tpu.memory_space<vmem>>, vector<7x64xf32>
    %171 = arith.maximumf %167, %170 : vector<7x64xf32>
    %c0_i32_155 = arith.constant 0 : i32
    %c0_i32_156 = arith.constant 0 : i32
    %c0_i32_157 = arith.constant 0 : i32
    %172 = tpu.memref_slice %arg12[%c0_i32_155, %c0_i32_156, %c0_i32_157] : memref<1x256x64xf32, #tpu.memory_space<vmem>> -> memref<1x256x64xf32, #tpu.memory_space<vmem>>
    %173 = tpu.memref_squeeze %172 : memref<1x256x64xf32, #tpu.memory_space<vmem>> -> memref<256x64xf32, #tpu.memory_space<vmem>>
    %c80 = arith.constant 80 : index
    %c0_158 = arith.constant 0 : index
    %174 = tpu.strided_load %173[%c80, %c0_158] {strides = array<i32: 2, 1>} : memref<256x64xf32, #tpu.memory_space<vmem>>, vector<7x64xf32>
    %c0_i32_159 = arith.constant 0 : i32
    %c0_i32_160 = arith.constant 0 : i32
    %c0_i32_161 = arith.constant 0 : i32
    %175 = tpu.memref_slice %arg12[%c0_i32_159, %c0_i32_160, %c0_i32_161] : memref<1x256x64xf32, #tpu.memory_space<vmem>> -> memref<1x256x64xf32, #tpu.memory_space<vmem>>
    %176 = tpu.memref_squeeze %175 : memref<1x256x64xf32, #tpu.memory_space<vmem>> -> memref<256x64xf32, #tpu.memory_space<vmem>>
    %c81 = arith.constant 81 : index
    %c0_162 = arith.constant 0 : index
    %177 = tpu.strided_load %176[%c81, %c0_162] {strides = array<i32: 2, 1>} : memref<256x64xf32, #tpu.memory_space<vmem>>, vector<7x64xf32>
    %178 = arith.maximumf %174, %177 : vector<7x64xf32>
    %179 = arith.maximumf %171, %178 : vector<7x64xf32>
    %180 = arith.truncf %179 : vector<7x64xf32> to vector<7x64xbf16>
    %c0_i32_163 = arith.constant 0 : i32
    %c0_i32_164 = arith.constant 0 : i32
    %c0_i32_165 = arith.constant 0 : i32
    %181 = tpu.memref_slice %arg10[%c0_i32_163, %c0_i32_164, %c0_i32_165] : memref<1x49x64xbf16, #tpu.memory_space<vmem>> -> memref<1x49x64xbf16, #tpu.memory_space<vmem>>
    %182 = tpu.memref_squeeze %181 : memref<1x49x64xbf16, #tpu.memory_space<vmem>> -> memref<49x64xbf16, #tpu.memory_space<vmem>>
    %c14 = arith.constant 14 : index
    %c0_166 = arith.constant 0 : index
    %183 = vector.load %182[%c14, %c0_166] : memref<49x64xbf16, #tpu.memory_space<vmem>>, vector<7x64xbf16>
    tpu.vector_store %182[%c14, %c0_166], %180 {strides = array<i32>} : memref<49x64xbf16, #tpu.memory_space<vmem>>, vector<7x64xbf16>,
    %c0_i32_167 = arith.constant 0 : i32
    %c0_i32_168 = arith.constant 0 : i32
    %c0_i32_169 = arith.constant 0 : i32
    %184 = tpu.memref_slice %arg12[%c0_i32_167, %c0_i32_168, %c0_i32_169] : memref<1x256x64xf32, #tpu.memory_space<vmem>> -> memref<1x256x64xf32, #tpu.memory_space<vmem>>
    %185 = tpu.memref_squeeze %184 : memref<1x256x64xf32, #tpu.memory_space<vmem>> -> memref<256x64xf32, #tpu.memory_space<vmem>>
    %c96 = arith.constant 96 : index
    %c0_170 = arith.constant 0 : index
    %186 = tpu.strided_load %185[%c96, %c0_170] {strides = array<i32: 2, 1>} : memref<256x64xf32, #tpu.memory_space<vmem>>, vector<7x64xf32>
    %c0_i32_171 = arith.constant 0 : i32
    %c0_i32_172 = arith.constant 0 : i32
    %c0_i32_173 = arith.constant 0 : i32
    %187 = tpu.memref_slice %arg12[%c0_i32_171, %c0_i32_172, %c0_i32_173] : memref<1x256x64xf32, #tpu.memory_space<vmem>> -> memref<1x256x64xf32, #tpu.memory_space<vmem>>
    %188 = tpu.memref_squeeze %187 : memref<1x256x64xf32, #tpu.memory_space<vmem>> -> memref<256x64xf32, #tpu.memory_space<vmem>>
    %c97 = arith.constant 97 : index
    %c0_174 = arith.constant 0 : index
    %189 = tpu.strided_load %188[%c97, %c0_174] {strides = array<i32: 2, 1>} : memref<256x64xf32, #tpu.memory_space<vmem>>, vector<7x64xf32>
    %190 = arith.maximumf %186, %189 : vector<7x64xf32>
    %c0_i32_175 = arith.constant 0 : i32
    %c0_i32_176 = arith.constant 0 : i32
    %c0_i32_177 = arith.constant 0 : i32
    %191 = tpu.memref_slice %arg12[%c0_i32_175, %c0_i32_176, %c0_i32_177] : memref<1x256x64xf32, #tpu.memory_space<vmem>> -> memref<1x256x64xf32, #tpu.memory_space<vmem>>
    %192 = tpu.memref_squeeze %191 : memref<1x256x64xf32, #tpu.memory_space<vmem>> -> memref<256x64xf32, #tpu.memory_space<vmem>>
    %c112 = arith.constant 112 : index
    %c0_178 = arith.constant 0 : index
    %193 = tpu.strided_load %192[%c112, %c0_178] {strides = array<i32: 2, 1>} : memref<256x64xf32, #tpu.memory_space<vmem>>, vector<7x64xf32>
    %c0_i32_179 = arith.constant 0 : i32
    %c0_i32_180 = arith.constant 0 : i32
    %c0_i32_181 = arith.constant 0 : i32
    %194 = tpu.memref_slice %arg12[%c0_i32_179, %c0_i32_180, %c0_i32_181] : memref<1x256x64xf32, #tpu.memory_space<vmem>> -> memref<1x256x64xf32, #tpu.memory_space<vmem>>
    %195 = tpu.memref_squeeze %194 : memref<1x256x64xf32, #tpu.memory_space<vmem>> -> memref<256x64xf32, #tpu.memory_space<vmem>>
    %c113 = arith.constant 113 : index
    %c0_182 = arith.constant 0 : index
    %196 = tpu.strided_load %195[%c113, %c0_182] {strides = array<i32: 2, 1>} : memref<256x64xf32, #tpu.memory_space<vmem>>, vector<7x64xf32>
    %197 = arith.maximumf %193, %196 : vector<7x64xf32>
    %198 = arith.maximumf %190, %197 : vector<7x64xf32>
    %199 = arith.truncf %198 : vector<7x64xf32> to vector<7x64xbf16>
    %c0_i32_183 = arith.constant 0 : i32
    %c0_i32_184 = arith.constant 0 : i32
    %c0_i32_185 = arith.constant 0 : i32
    %200 = tpu.memref_slice %arg10[%c0_i32_183, %c0_i32_184, %c0_i32_185] : memref<1x49x64xbf16, #tpu.memory_space<vmem>> -> memref<1x49x64xbf16, #tpu.memory_space<vmem>>
    %201 = tpu.memref_squeeze %200 : memref<1x49x64xbf16, #tpu.memory_space<vmem>> -> memref<49x64xbf16, #tpu.memory_space<vmem>>
    %c21 = arith.constant 21 : index
    %c0_186 = arith.constant 0 : index
    %202 = vector.load %201[%c21, %c0_186] : memref<49x64xbf16, #tpu.memory_space<vmem>>, vector<7x64xbf16>
    tpu.vector_store %201[%c21, %c0_186], %199 {strides = array<i32>} : memref<49x64xbf16, #tpu.memory_space<vmem>>, vector<7x64xbf16>,
    %c0_i32_187 = arith.constant 0 : i32
    %c0_i32_188 = arith.constant 0 : i32
    %c0_i32_189 = arith.constant 0 : i32
    %203 = tpu.memref_slice %arg12[%c0_i32_187, %c0_i32_188, %c0_i32_189] : memref<1x256x64xf32, #tpu.memory_space<vmem>> -> memref<1x256x64xf32, #tpu.memory_space<vmem>>
    %204 = tpu.memref_squeeze %203 : memref<1x256x64xf32, #tpu.memory_space<vmem>> -> memref<256x64xf32, #tpu.memory_space<vmem>>
    %c128 = arith.constant 128 : index
    %c0_190 = arith.constant 0 : index
    %205 = tpu.strided_load %204[%c128, %c0_190] {strides = array<i32: 2, 1>} : memref<256x64xf32, #tpu.memory_space<vmem>>, vector<7x64xf32>
    %c0_i32_191 = arith.constant 0 : i32
    %c0_i32_192 = arith.constant 0 : i32
    %c0_i32_193 = arith.constant 0 : i32
    %206 = tpu.memref_slice %arg12[%c0_i32_191, %c0_i32_192, %c0_i32_193] : memref<1x256x64xf32, #tpu.memory_space<vmem>> -> memref<1x256x64xf32, #tpu.memory_space<vmem>>
    %207 = tpu.memref_squeeze %206 : memref<1x256x64xf32, #tpu.memory_space<vmem>> -> memref<256x64xf32, #tpu.memory_space<vmem>>
    %c129 = arith.constant 129 : index
    %c0_194 = arith.constant 0 : index
    %208 = tpu.strided_load %207[%c129, %c0_194] {strides = array<i32: 2, 1>} : memref<256x64xf32, #tpu.memory_space<vmem>>, vector<7x64xf32>
    %209 = arith.maximumf %205, %208 : vector<7x64xf32>
    %c0_i32_195 = arith.constant 0 : i32
    %c0_i32_196 = arith.constant 0 : i32
    %c0_i32_197 = arith.constant 0 : i32
    %210 = tpu.memref_slice %arg12[%c0_i32_195, %c0_i32_196, %c0_i32_197] : memref<1x256x64xf32, #tpu.memory_space<vmem>> -> memref<1x256x64xf32, #tpu.memory_space<vmem>>
    %211 = tpu.memref_squeeze %210 : memref<1x256x64xf32, #tpu.memory_space<vmem>> -> memref<256x64xf32, #tpu.memory_space<vmem>>
    %c144 = arith.constant 144 : index
    %c0_198 = arith.constant 0 : index
    %212 = tpu.strided_load %211[%c144, %c0_198] {strides = array<i32: 2, 1>} : memref<256x64xf32, #tpu.memory_space<vmem>>, vector<7x64xf32>
    %c0_i32_199 = arith.constant 0 : i32
    %c0_i32_200 = arith.constant 0 : i32
    %c0_i32_201 = arith.constant 0 : i32
    %213 = tpu.memref_slice %arg12[%c0_i32_199, %c0_i32_200, %c0_i32_201] : memref<1x256x64xf32, #tpu.memory_space<vmem>> -> memref<1x256x64xf32, #tpu.memory_space<vmem>>
    %214 = tpu.memref_squeeze %213 : memref<1x256x64xf32, #tpu.memory_space<vmem>> -> memref<256x64xf32, #tpu.memory_space<vmem>>
    %c145 = arith.constant 145 : index
    %c0_202 = arith.constant 0 : index
    %215 = tpu.strided_load %214[%c145, %c0_202] {strides = array<i32: 2, 1>} : memref<256x64xf32, #tpu.memory_space<vmem>>, vector<7x64xf32>
    %216 = arith.maximumf %212, %215 : vector<7x64xf32>
    %217 = arith.maximumf %209, %216 : vector<7x64xf32>
    %218 = arith.truncf %217 : vector<7x64xf32> to vector<7x64xbf16>
    %c0_i32_203 = arith.constant 0 : i32
    %c0_i32_204 = arith.constant 0 : i32
    %c0_i32_205 = arith.constant 0 : i32
    %219 = tpu.memref_slice %arg10[%c0_i32_203, %c0_i32_204, %c0_i32_205] : memref<1x49x64xbf16, #tpu.memory_space<vmem>> -> memref<1x49x64xbf16, #tpu.memory_space<vmem>>
    %220 = tpu.memref_squeeze %219 : memref<1x49x64xbf16, #tpu.memory_space<vmem>> -> memref<49x64xbf16, #tpu.memory_space<vmem>>
    %c28 = arith.constant 28 : index
    %c0_206 = arith.constant 0 : index
    %221 = vector.load %220[%c28, %c0_206] : memref<49x64xbf16, #tpu.memory_space<vmem>>, vector<7x64xbf16>
    tpu.vector_store %220[%c28, %c0_206], %218 {strides = array<i32>} : memref<49x64xbf16, #tpu.memory_space<vmem>>, vector<7x64xbf16>,
    %c0_i32_207 = arith.constant 0 : i32
    %c0_i32_208 = arith.constant 0 : i32
    %c0_i32_209 = arith.constant 0 : i32
    %222 = tpu.memref_slice %arg12[%c0_i32_207, %c0_i32_208, %c0_i32_209] : memref<1x256x64xf32, #tpu.memory_space<vmem>> -> memref<1x256x64xf32, #tpu.memory_space<vmem>>
    %223 = tpu.memref_squeeze %222 : memref<1x256x64xf32, #tpu.memory_space<vmem>> -> memref<256x64xf32, #tpu.memory_space<vmem>>
    %c160 = arith.constant 160 : index
    %c0_210 = arith.constant 0 : index
    %224 = tpu.strided_load %223[%c160, %c0_210] {strides = array<i32: 2, 1>} : memref<256x64xf32, #tpu.memory_space<vmem>>, vector<7x64xf32>
    %c0_i32_211 = arith.constant 0 : i32
    %c0_i32_212 = arith.constant 0 : i32
    %c0_i32_213 = arith.constant 0 : i32
    %225 = tpu.memref_slice %arg12[%c0_i32_211, %c0_i32_212, %c0_i32_213] : memref<1x256x64xf32, #tpu.memory_space<vmem>> -> memref<1x256x64xf32, #tpu.memory_space<vmem>>
    %226 = tpu.memref_squeeze %225 : memref<1x256x64xf32, #tpu.memory_space<vmem>> -> memref<256x64xf32, #tpu.memory_space<vmem>>
    %c161 = arith.constant 161 : index
    %c0_214 = arith.constant 0 : index
    %227 = tpu.strided_load %226[%c161, %c0_214] {strides = array<i32: 2, 1>} : memref<256x64xf32, #tpu.memory_space<vmem>>, vector<7x64xf32>
    %228 = arith.maximumf %224, %227 : vector<7x64xf32>
    %c0_i32_215 = arith.constant 0 : i32
    %c0_i32_216 = arith.constant 0 : i32
    %c0_i32_217 = arith.constant 0 : i32
    %229 = tpu.memref_slice %arg12[%c0_i32_215, %c0_i32_216, %c0_i32_217] : memref<1x256x64xf32, #tpu.memory_space<vmem>> -> memref<1x256x64xf32, #tpu.memory_space<vmem>>
    %230 = tpu.memref_squeeze %229 : memref<1x256x64xf32, #tpu.memory_space<vmem>> -> memref<256x64xf32, #tpu.memory_space<vmem>>
    %c176 = arith.constant 176 : index
    %c0_218 = arith.constant 0 : index
    %231 = tpu.strided_load %230[%c176, %c0_218] {strides = array<i32: 2, 1>} : memref<256x64xf32, #tpu.memory_space<vmem>>, vector<7x64xf32>
    %c0_i32_219 = arith.constant 0 : i32
    %c0_i32_220 = arith.constant 0 : i32
    %c0_i32_221 = arith.constant 0 : i32
    %232 = tpu.memref_slice %arg12[%c0_i32_219, %c0_i32_220, %c0_i32_221] : memref<1x256x64xf32, #tpu.memory_space<vmem>> -> memref<1x256x64xf32, #tpu.memory_space<vmem>>
    %233 = tpu.memref_squeeze %232 : memref<1x256x64xf32, #tpu.memory_space<vmem>> -> memref<256x64xf32, #tpu.memory_space<vmem>>
    %c177 = arith.constant 177 : index
    %c0_222 = arith.constant 0 : index
    %234 = tpu.strided_load %233[%c177, %c0_222] {strides = array<i32: 2, 1>} : memref<256x64xf32, #tpu.memory_space<vmem>>, vector<7x64xf32>
    %235 = arith.maximumf %231, %234 : vector<7x64xf32>
    %236 = arith.maximumf %228, %235 : vector<7x64xf32>
    %237 = arith.truncf %236 : vector<7x64xf32> to vector<7x64xbf16>
    %c0_i32_223 = arith.constant 0 : i32
    %c0_i32_224 = arith.constant 0 : i32
    %c0_i32_225 = arith.constant 0 : i32
    %238 = tpu.memref_slice %arg10[%c0_i32_223, %c0_i32_224, %c0_i32_225] : memref<1x49x64xbf16, #tpu.memory_space<vmem>> -> memref<1x49x64xbf16, #tpu.memory_space<vmem>>
    %239 = tpu.memref_squeeze %238 : memref<1x49x64xbf16, #tpu.memory_space<vmem>> -> memref<49x64xbf16, #tpu.memory_space<vmem>>
    %c35 = arith.constant 35 : index
    %c0_226 = arith.constant 0 : index
    %240 = vector.load %239[%c35, %c0_226] : memref<49x64xbf16, #tpu.memory_space<vmem>>, vector<7x64xbf16>
    tpu.vector_store %239[%c35, %c0_226], %237 {strides = array<i32>} : memref<49x64xbf16, #tpu.memory_space<vmem>>, vector<7x64xbf16>,
    %c0_i32_227 = arith.constant 0 : i32
    %c0_i32_228 = arith.constant 0 : i32
    %c0_i32_229 = arith.constant 0 : i32
    %241 = tpu.memref_slice %arg12[%c0_i32_227, %c0_i32_228, %c0_i32_229] : memref<1x256x64xf32, #tpu.memory_space<vmem>> -> memref<1x256x64xf32, #tpu.memory_space<vmem>>
    %242 = tpu.memref_squeeze %241 : memref<1x256x64xf32, #tpu.memory_space<vmem>> -> memref<256x64xf32, #tpu.memory_space<vmem>>
    %c192 = arith.constant 192 : index
    %c0_230 = arith.constant 0 : index
    %243 = tpu.strided_load %242[%c192, %c0_230] {strides = array<i32: 2, 1>} : memref<256x64xf32, #tpu.memory_space<vmem>>, vector<7x64xf32>
    %c0_i32_231 = arith.constant 0 : i32
    %c0_i32_232 = arith.constant 0 : i32
    %c0_i32_233 = arith.constant 0 : i32
    %244 = tpu.memref_slice %arg12[%c0_i32_231, %c0_i32_232, %c0_i32_233] : memref<1x256x64xf32, #tpu.memory_space<vmem>> -> memref<1x256x64xf32, #tpu.memory_space<vmem>>
    %245 = tpu.memref_squeeze %244 : memref<1x256x64xf32, #tpu.memory_space<vmem>> -> memref<256x64xf32, #tpu.memory_space<vmem>>
    %c193 = arith.constant 193 : index
    %c0_234 = arith.constant 0 : index
    %246 = tpu.strided_load %245[%c193, %c0_234] {strides = array<i32: 2, 1>} : memref<256x64xf32, #tpu.memory_space<vmem>>, vector<7x64xf32>
    %247 = arith.maximumf %243, %246 : vector<7x64xf32>
    %c0_i32_235 = arith.constant 0 : i32
    %c0_i32_236 = arith.constant 0 : i32
    %c0_i32_237 = arith.constant 0 : i32
    %248 = tpu.memref_slice %arg12[%c0_i32_235, %c0_i32_236, %c0_i32_237] : memref<1x256x64xf32, #tpu.memory_space<vmem>> -> memref<1x256x64xf32, #tpu.memory_space<vmem>>
    %249 = tpu.memref_squeeze %248 : memref<1x256x64xf32, #tpu.memory_space<vmem>> -> memref<256x64xf32, #tpu.memory_space<vmem>>
    %c208 = arith.constant 208 : index
    %c0_238 = arith.constant 0 : index
    %250 = tpu.strided_load %249[%c208, %c0_238] {strides = array<i32: 2, 1>} : memref<256x64xf32, #tpu.memory_space<vmem>>, vector<7x64xf32>
    %c0_i32_239 = arith.constant 0 : i32
    %c0_i32_240 = arith.constant 0 : i32
    %c0_i32_241 = arith.constant 0 : i32
    %251 = tpu.memref_slice %arg12[%c0_i32_239, %c0_i32_240, %c0_i32_241] : memref<1x256x64xf32, #tpu.memory_space<vmem>> -> memref<1x256x64xf32, #tpu.memory_space<vmem>>
    %252 = tpu.memref_squeeze %251 : memref<1x256x64xf32, #tpu.memory_space<vmem>> -> memref<256x64xf32, #tpu.memory_space<vmem>>
    %c209 = arith.constant 209 : index
    %c0_242 = arith.constant 0 : index
    %253 = tpu.strided_load %252[%c209, %c0_242] {strides = array<i32: 2, 1>} : memref<256x64xf32, #tpu.memory_space<vmem>>, vector<7x64xf32>
    %254 = arith.maximumf %250, %253 : vector<7x64xf32>
    %255 = arith.maximumf %247, %254 : vector<7x64xf32>
    %256 = arith.truncf %255 : vector<7x64xf32> to vector<7x64xbf16>
    %c0_i32_243 = arith.constant 0 : i32
    %c0_i32_244 = arith.constant 0 : i32
    %c0_i32_245 = arith.constant 0 : i32
    %257 = tpu.memref_slice %arg10[%c0_i32_243, %c0_i32_244, %c0_i32_245] : memref<1x49x64xbf16, #tpu.memory_space<vmem>> -> memref<1x49x64xbf16, #tpu.memory_space<vmem>>
    %258 = tpu.memref_squeeze %257 : memref<1x49x64xbf16, #tpu.memory_space<vmem>> -> memref<49x64xbf16, #tpu.memory_space<vmem>>
    %c42 = arith.constant 42 : index
    %c0_246 = arith.constant 0 : index
    %259 = vector.load %258[%c42, %c0_246] : memref<49x64xbf16, #tpu.memory_space<vmem>>, vector<7x64xbf16>
    tpu.vector_store %258[%c42, %c0_246], %256 {strides = array<i32>} : memref<49x64xbf16, #tpu.memory_space<vmem>>, vector<7x64xbf16>,
    return
  }
  func.func @transform_0(%arg0: i32) -> (i32, i32) {
    %c0_i32 = arith.constant 0 : i32
    %c0_i32_0 = arith.constant 0 : i32
    return %arg0, %c0_i32 : i32, i32
  }
  func.func @transform_1(%arg0: i32) -> (i32, i32) {
    %c0_i32 = arith.constant 0 : i32
    %c0_i32_0 = arith.constant 0 : i32
    %c0_i32_1 = arith.constant 0 : i32
    return %c0_i32, %c0_i32_0 : i32, i32
  }
  func.func @transform_2(%arg0: i32) -> (i32, i32) {
    %c0_i32 = arith.constant 0 : i32
    %c0_i32_0 = arith.constant 0 : i32
    %c0_i32_1 = arith.constant 0 : i32
    return %c0_i32, %c0_i32_0 : i32, i32
  }
  func.func @transform_3(%arg0: i32) -> (i32, i32) {
    %c0_i32 = arith.constant 0 : i32
    %c0_i32_0 = arith.constant 0 : i32
    %c0_i32_1 = arith.constant 0 : i32
    return %c0_i32, %c0_i32_0 : i32, i32
  }
  func.func @transform_4(%arg0: i32) -> (i32, i32) {
    %c0_i32 = arith.constant 0 : i32
    %c0_i32_0 = arith.constant 0 : i32
    %c0_i32_1 = arith.constant 0 : i32
    return %c0_i32, %c0_i32_0 : i32, i32
  }
  func.func @transform_5(%arg0: i32) -> (i32, i32, i32) {
    %c0_i32 = arith.constant 0 : i32
    %c0_i32_0 = arith.constant 0 : i32
    %c0_i32_1 = arith.constant 0 : i32
    %c0_i32_2 = arith.constant 0 : i32
    return %c0_i32, %c0_i32_0, %c0_i32_1 : i32, i32, i32
  }
  func.func @transform_6(%arg0: i32) -> (i32, i32) {
    %c0_i32 = arith.constant 0 : i32
    %c0_i32_0 = arith.constant 0 : i32
    %c0_i32_1 = arith.constant 0 : i32
    return %c0_i32, %c0_i32_0 : i32, i32
  }
  func.func @transform_7(%arg0: i32) -> (i32, i32) {
    %c0_i32 = arith.constant 0 : i32
    %c0_i32_0 = arith.constant 0 : i32
    %c0_i32_1 = arith.constant 0 : i32
    return %c0_i32, %c0_i32_0 : i32, i32
  }
  func.func @transform_8(%arg0: i32) -> (i32, i32) {
    %c0_i32 = arith.constant 0 : i32
    %c0_i32_0 = arith.constant 0 : i32
    %c0_i32_1 = arith.constant 0 : i32
    return %c0_i32, %c0_i32_0 : i32, i32
  }
  func.func @transform_9(%arg0: i32) -> (i32, i32, i32) {
    %c0_i32 = arith.constant 0 : i32
    %c0_i32_0 = arith.constant 0 : i32
    %c0_i32_1 = arith.constant 0 : i32
    return %arg0, %c0_i32, %c0_i32_0 : i32, i32, i32
  }
}

module attributes {stable_mosaic.version = 11 : i64} {
  func.func @mlp_kernel(%arg0: memref<2x3136xbf16, #tpu.memory_space<vmem>>, %arg1: memref<3136x128xbf16, #tpu.memory_space<vmem>>, %arg2: memref<1x128xf32, #tpu.memory_space<vmem>>, %arg3: memref<128x64xbf16, #tpu.memory_space<vmem>>, %arg4: memref<1x64xf32, #tpu.memory_space<vmem>>, %arg5: memref<64x10xbf16, #tpu.memory_space<vmem>>, %arg6: memref<1x10xf32, #tpu.memory_space<vmem>>, %arg7: memref<2x10xf32, #tpu.memory_space<vmem>>) attributes {dimension_semantics = [], scalar_prefetch = 0 : i64, scratch_operands = 0 : i64, tpu.core_type = #tpu.core_type<tc>} {
    %c0 = arith.constant 0 : index
    %c0_0 = arith.constant 0 : index
    %0 = vector.load %arg0[%c0, %c0_0] : memref<2x3136xbf16, #tpu.memory_space<vmem>>, vector<2x3136xbf16>
    %c0_1 = arith.constant 0 : index
    %c0_2 = arith.constant 0 : index
    %1 = vector.load %arg1[%c0_1, %c0_2] : memref<3136x128xbf16, #tpu.memory_space<vmem>>, vector<3136x128xbf16>
    %cst = arith.constant dense<0.000000e+00> : vector<2x128xf32>
    %2 = tpu.matmul %0, %1, %cst {dimension_numbers = #tpu.dot_dimension_numbers<[1], [0], [0], [1], [0, 0, 1, 1], [], []>} : vector<2x3136xbf16>, vector<3136x128xbf16>, vector<2x128xf32> -> vector<2x128xf32>
    %c0_3 = arith.constant 0 : index
    %c0_4 = arith.constant 0 : index
    %3 = vector.load %arg2[%c0_3, %c0_4] : memref<1x128xf32, #tpu.memory_space<vmem>>, vector<1x128xf32>
    %4 = vector.broadcast %3 : vector<1x128xf32> to vector<2x128xf32>
    %5 = arith.addf %2, %4 : vector<2x128xf32>
    %cst_5 = arith.constant 0.000000e+00 : f32
    %6 = vector.broadcast %cst_5 : f32 to vector<2x128xf32>
    %7 = arith.maximumf %5, %6 : vector<2x128xf32>
    %8 = arith.truncf %7 : vector<2x128xf32> to vector<2x128xbf16>
    %c0_6 = arith.constant 0 : index
    %c0_7 = arith.constant 0 : index
    %9 = vector.load %arg3[%c0_6, %c0_7] : memref<128x64xbf16, #tpu.memory_space<vmem>>, vector<128x64xbf16>
    %cst_8 = arith.constant dense<0.000000e+00> : vector<2x64xf32>
    %10 = tpu.matmul %8, %9, %cst_8 {dimension_numbers = #tpu.dot_dimension_numbers<[1], [0], [0], [1], [0, 0, 1, 1], [], []>} : vector<2x128xbf16>, vector<128x64xbf16>, vector<2x64xf32> -> vector<2x64xf32>
    %c0_9 = arith.constant 0 : index
    %c0_10 = arith.constant 0 : index
    %11 = vector.load %arg4[%c0_9, %c0_10] : memref<1x64xf32, #tpu.memory_space<vmem>>, vector<1x64xf32>
    %12 = vector.broadcast %11 : vector<1x64xf32> to vector<2x64xf32>
    %13 = arith.addf %10, %12 : vector<2x64xf32>
    %cst_11 = arith.constant 0.000000e+00 : f32
    %14 = vector.broadcast %cst_11 : f32 to vector<2x64xf32>
    %15 = arith.maximumf %13, %14 : vector<2x64xf32>
    %16 = arith.truncf %15 : vector<2x64xf32> to vector<2x64xbf16>
    %c0_12 = arith.constant 0 : index
    %c0_13 = arith.constant 0 : index
    %17 = vector.load %arg5[%c0_12, %c0_13] : memref<64x10xbf16, #tpu.memory_space<vmem>>, vector<64x10xbf16>
    %cst_14 = arith.constant dense<0.000000e+00> : vector<2x10xf32>
    %18 = tpu.matmul %16, %17, %cst_14 {dimension_numbers = #tpu.dot_dimension_numbers<[1], [0], [0], [1], [0, 0, 1, 1], [], []>} : vector<2x64xbf16>, vector<64x10xbf16>, vector<2x10xf32> -> vector<2x10xf32>
    %c0_15 = arith.constant 0 : index
    %c0_16 = arith.constant 0 : index
    %19 = vector.load %arg6[%c0_15, %c0_16] : memref<1x10xf32, #tpu.memory_space<vmem>>, vector<1x10xf32>
    %20 = vector.broadcast %19 : vector<1x10xf32> to vector<2x10xf32>
    %21 = arith.addf %18, %20 : vector<2x10xf32>
    %c0_17 = arith.constant 0 : index
    %c0_18 = arith.constant 0 : index
    %22 = vector.load %arg7[%c0_17, %c0_18] : memref<2x10xf32, #tpu.memory_space<vmem>>, vector<2x10xf32>
    tpu.vector_store %arg7[%c0_17, %c0_18], %21 {strides = array<i32>} : memref<2x10xf32, #tpu.memory_space<vmem>>, vector<2x10xf32>,
    return
  }
}

</mosaic_0001>

<bundles_post_ra>
// kernel: my_nn_forward.3
= control target key start
LH: loop header
LB: loop body
LE: loop exit
PB: predicated region body
PF: predicated region fallthrough
CT: control target
= control target key end

     0   :  { %v439_v27 = vlaneseq  ;;  %v3313_v35 = vmov 1966171168   ;;  %vm3315_vm0 = vmmov 0   ;;  %s4074_s0 = inlined_call_operand.vmem [shape: bf16[2,3136], index: 0, kind: input, shape index: {}]   ;;  %s4075_s1 = inlined_call_operand.vmem [shape: bf16[3136,128], index: 1, kind: input, shape index: {}]   ;;  %s4076_s2 = inlined_call_operand.vmem [shape: f32[1,128], index: 2, kind: input, shape index: {}]   ;;  %s4077_s3 = inlined_call_operand.vmem [shape: bf16[128,64], index: 3, kind: input, shape index: {}]   ;;  %s4078_s4 = inlined_call_operand.vmem [shape: f32[1,64], index: 4, kind: input, shape index: {}]   ;;  %s4079_s5 = inlined_call_operand.vmem [shape: bf16[64,10], index: 5, kind: input, shape index: {}]   ;;  %s4080_s6 = inlined_call_operand.vmem [shape: f32[1,10], index: 6, kind: input, shape index: {}]   ;;  %s4081_s7 = inlined_call_operand.hbm [shape: f32[2,10], index: 7, kind: output, shape index: {}]  }
   0x1   :  { %v3078_v0 = vld [vmem:[%s4075_s1 + $0x40] sm:$0xff]   ;;  %v3082_v4 = vld [vmem:[%s4075_s1 + $0x48] sm:$0xff]   ;;  %v3086_v8 = vld [vmem:[%s4075_s1 + $0x50] sm:$0xff]   ;;  %v437_v36 = vunpack.c.l.s4 %v3313_v35 }
   0x2   :  { %v3079_v1 = vld [vmem:[%s4075_s1] sm:$0xff]   ;;  %2747 = vmatprep.subr.bf16.mxu0 %v3078_v0  ;;  %v3083_v5 = vld [vmem:[%s4075_s1 + $0x8] sm:$0xff]   ;;  %v3087_v9 = vld [vmem:[%s4075_s1 + $0x10] sm:$0xff]   ;;  %v440_v32 = vshrl.u32 %v439_v27, 7 }
   0x3   :  { %v3080_v2 = vld [vmem:[%s4075_s1 + $0xc0] sm:$0xff]   ;;  %2748 = vmatpush3.bf16.msra.mxu0 %v3079_v1  ;;  %v3084_v6 = vld [vmem:[%s4075_s1 + $0xc8] sm:$0xff]   ;;  %v3088_v10 = vld [vmem:[%s4075_s1 + $0xd0] sm:$0xff]   ;;  %v438_v39 = vunpack.c.0.s8 %v437_v36 }
   0x4   :  { %v3081_v3 = vld [vmem:[%s4075_s1 + $0x80] sm:$0xff]   ;;  %2769 = vmatprep.subr.bf16.mxu1 %v3080_v2  ;;  %2749 = vmatprep.subr.bf16.mxu0 %v3082_v4  ;;  %v3085_v7 = vld [vmem:[%s4075_s1 + $0x88] sm:$0xff]   ;;  %v3089_v11 = vld [vmem:[%s4075_s1 + $0x90] sm:$0xff]  }
   0x5   :  { %2770 = vmatpush3.bf16.msra.mxu1 %v3081_v3  ;;  %v3090_v12 = vld [vmem:[%s4075_s1 + $0x58] sm:$0xff]   ;;  %v3094_v16 = vld [vmem:[%s4075_s1 + $0x60] sm:$0xff]   ;;  %v3098_v20 = vld [vmem:[%s4075_s1 + $0x68] sm:$0xff]   ;;  %v3462_v41 = vsub.s32 %v438_v39, %v440_v32 }
   0x6   :  { %2771 = vmatprep.subr.bf16.mxu1 %v3084_v6  ;;  %v3091_v13 = vld [vmem:[%s4075_s1 + $0x18] sm:$0xff]   ;;  %v3095_v17 = vld [vmem:[%s4075_s1 + $0x20] sm:$0xff]   ;;  %v3099_v21 = vld [vmem:[%s4075_s1 + $0x28] sm:$0xff]  }
   0x7   :  { %2750 = vmatpush3.bf16.msra.mxu0 %v3083_v5  ;;  %v3092_v14 = vld [vmem:[%s4075_s1 + $0xd8] sm:$0xff]   ;;  %v3096_v18 = vld [vmem:[%s4075_s1 + $0xe0] sm:$0xff]   ;;  %v3100_v22 = vld [vmem:[%s4075_s1 + $0xe8] sm:$0xff]  }
   0x8   :  { %2751 = vmatprep.subr.bf16.mxu0 %v3086_v8  ;;  %v3093_v15 = vld [vmem:[%s4075_s1 + $0x98] sm:$0xff]   ;;  %v3097_v19 = vld [vmem:[%s4075_s1 + $0xa0] sm:$0xff]   ;;  %v3101_v23 = vld [vmem:[%s4075_s1 + $0xa8] sm:$0xff]  }
   0x9   :  { %2772 = vmatpush3.bf16.msra.mxu1 %v3085_v7  ;;  %v3102_v24 = vld [vmem:[%s4075_s1 + $0x70] sm:$0xff]   ;;  %v3106_v29 = vld [vmem:[%s4075_s1 + $0x78] sm:$0xff]   ;;  %v28_v33 = vld [vmem:[%s4074_s0] sm:$0xff] }
   0xa   :  { %2773 = vmatprep.subr.bf16.mxu1 %v3088_v10  ;;  %v3103_v25 = vld [vmem:[%s4075_s1 + $0x30] sm:$0xff]   ;;  %v3107_v30 = vld [vmem:[%s4075_s1 + $0x38] sm:$0xff]   ;;  %v3111_v37 = vld [vmem:[%s4075_s1 + $0x140] sm:$0xff]   ;;  %v435_v38 = vcombine.high %v28_v33, %v28_v33  ;;  %v442_v42 = vrot.slane %v28_v33, %v3462_v41 }
   0xb   :  { %2752 = vmatpush3.bf16.msra.mxu0 %v3087_v9  ;;  %v3104_v26 = vld [vmem:[%s4075_s1 + $0xf0] sm:$0xff]   ;;  %v3108_v31 = vld [vmem:[%s4075_s1 + $0xf8] sm:$0xff]   ;;  %v3113_v40 = vld [vmem:[%s4075_s1 + $0x1c0] sm:$0xff]  }
   0xc   :  { %2753 = vmatprep.subr.bf16.mxu0 %v3090_v12  ;;  %v3105_v28 = vld [vmem:[%s4075_s1 + $0xb0] sm:$0xff]   ;;  %v3110_v34 = vld [vmem:[%s4075_s1 + $0xb8] sm:$0xff]   ;;  %v3466_v43 = vrot.slane %v435_v38, %v3462_v41  ;;  %v450_v44 = vcombine.high %v442_v42, %v442_v42  ;;  %v458_v45 = vrot.slane %v442_v42, %v3462_v41  ;;  %v3112_v48 = vld [vmem:[%s4075_s1 + $0x100] sm:$0xff]  }
   0xd   :  { %2774 = vmatpush3.bf16.msra.mxu1 %v3089_v11  ;;  %v3115_v51 = vld [vmem:[%s4075_s1 + $0x148] sm:$0xff]   ;;  %v3114_v53 = vld [vmem:[%s4075_s1 + $0x180] sm:$0xff]   ;;  %v3119_v57 = vld [vmem:[%s4075_s1 + $0x150] sm:$0xff]  }
   0xe   :  { %2775 = vmatprep.subr.bf16.mxu1 %v3092_v14  ;;  %v451_v46 = vcombine.high %v3466_v43, %v3466_v43  ;;  %v472_v47 = vrot.slane %v450_v44, %v3462_v41  ;;  %v480_v50 = vcombine.high %v458_v45, %v458_v45  ;;  %v3117_v54 = vld [vmem:[%s4075_s1 + $0x1c8] sm:$0xff]   ;;  %v3121_v59 = vld [vmem:[%s4075_s1 + $0x1d0] sm:$0xff]   ;;  %v3123_v61 = vld [vmem:[%s4075_s1 + $0x158] sm:$0xff]  }
   0xf   :  { %2754 = vmatpush3.bf16.msra.mxu0 %v3091_v13  ;;  %v3116_v56 = vld [vmem:[%s4075_s1 + $0x108] sm:$0xff]   ;;  %v3120_v60 = vld [vmem:[%s4075_s1 + $0x110] sm:$0xff]   ;;  %v3125_v63 = vld [vmem:[%s4075_s1 + $0x1d8] sm:$0xff]  }
  0x10   :  { %2755 = vmatprep.subr.bf16.mxu0 %v3094_v16  ;;  %v479_v49 = vrot.slane %v451_v46, %v3462_v41  ;;  %1832 = vmatprep.mubr.bf16.mxu0 %v472_v47  ;;  %v482_v52 = vcombine.high %v472_v47, %v472_v47  ;;  %v3118_v58 = vld [vmem:[%s4075_s1 + $0x188] sm:$0xff]   ;;  %v3122_v62 = vld [vmem:[%s4075_s1 + $0x190] sm:$0xff]   ;;  %v3124_v0 = vld [vmem:[%s4075_s1 + $0x118] sm:$0xff]  }
  0x11   :  { %2776 = vmatpush3.bf16.msra.mxu1 %v3093_v15  ;;  %v3127_v1 = vld [vmem:[%s4075_s1 + $0x160] sm:$0xff]   ;;  %v3126_v2 = vld [vmem:[%s4075_s1 + $0x198] sm:$0xff]   ;;  %v3131_v5 = vld [vmem:[%s4075_s1 + $0x168] sm:$0xff]  }
  0x12   :  { %2777 = vmatprep.subr.bf16.mxu1 %v3096_v18  ;;  %v483_v55 = vcombine.high %v479_v49, %v479_v49  ;;  %1872 = vmatprep.mubr.bf16.mxu1 %v482_v52  ;;  %v3129_v3 = vld [vmem:[%s4075_s1 + $0x1e0] sm:$0xff]   ;;  %v3133_v7 = vld [vmem:[%s4075_s1 + $0x1e8] sm:$0xff]   ;;  %v3135_v9 = vld [vmem:[%s4075_s1 + $0x170] sm:$0xff]  }
  0x13   :  { %2756 = vmatpush3.bf16.msra.mxu0 %v3095_v17  ;;  %v3128_v4 = vld [vmem:[%s4075_s1 + $0x120] sm:$0xff]   ;;  %v3132_v8 = vld [vmem:[%s4075_s1 + $0x128] sm:$0xff]   ;;  %v3137_v11 = vld [vmem:[%s4075_s1 + $0x1f0] sm:$0xff]   ;;  %v465_v17 = vrot.slane %v3466_v43, %v3462_v41 }
  0x14   :  { %2757 = vmatprep.subr.bf16.mxu0 %v3098_v20  ;;  %v3130_v6 = vld [vmem:[%s4075_s1 + $0x1a0] sm:$0xff]   ;;  %v3134_v10 = vld [vmem:[%s4075_s1 + $0x1a8] sm:$0xff]   ;;  %v3136_v12 = vld [vmem:[%s4075_s1 + $0x130] sm:$0xff]  }
  0x15   :  { %2778 = vmatpush3.bf16.msra.mxu1 %v3097_v19  ;;  %v3139_v13 = vld [vmem:[%s4075_s1 + $0x178] sm:$0xff]   ;;  %v3138_v14 = vld [vmem:[%s4075_s1 + $0x1b0] sm:$0xff]   ;;  %v3143_v18 = vld [vmem:[%s4075_s1 + $0x240] sm:$0xff]  }
  0x16   :  { %2779 = vmatprep.subr.bf16.mxu1 %v3100_v22  ;;  %v3141_v15 = vld [vmem:[%s4075_s1 + $0x1f8] sm:$0xff]   ;;  %v3145_v20 = vld [vmem:[%s4075_s1 + $0x2c0] sm:$0xff]   ;;  %v481_v22 = vcombine.high %v465_v17, %v465_v17  ;;  %v3151_v27 = vld [vmem:[%s4075_s1 + $0x250] sm:$0xff]  }
  0x17   :  { %2758 = vmatpush3.bf16.msra.mxu0 %v3099_v21  ;;  %v3140_v16 = vld [vmem:[%s4075_s1 + $0x138] sm:$0xff]   ;;  %v3144_v21 = vld [vmem:[%s4075_s1 + $0x200] sm:$0xff]   ;;  %v3154_v32 = vld [vmem:[%s4075_s1 + $0x290] sm:$0xff]  }
  0x18   :  { %2759 = vmatprep.subr.bf16.mxu0 %v3102_v24  ;;  %v3142_v19 = vld [vmem:[%s4075_s1 + $0x1b8] sm:$0xff]   ;;  %v3146_v24 = vld [vmem:[%s4075_s1 + $0x280] sm:$0xff]   ;;  %v3163_v39 = vld [vmem:[%s4075_s1 + $0x268] sm:$0xff]  }
  0x19   :  { %2780 = vmatpush3.bf16.msra.mxu1 %v3101_v23  ;;  %v3147_v23 = vld [vmem:[%s4075_s1 + $0x248] sm:$0xff]   ;;  %v3157_v33 = vld [vmem:[%s4075_s1 + $0x2d8] sm:$0xff]   ;;  %v3159_v35 = vld [vmem:[%s4075_s1 + $0x260] sm:$0xff]  }
  0x1a   :  { %2781 = vmatprep.subr.bf16.mxu1 %v3104_v26  ;;  %v3148_v26 = vld [vmem:[%s4075_s1 + $0x208] sm:$0xff]   ;;  %v3158_v36 = vld [vmem:[%s4075_s1 + $0x298] sm:$0xff]   ;;  %v3160_v38 = vld [vmem:[%s4075_s1 + $0x220] sm:$0xff]  }
  0x1b   :  { %2760 = vmatpush3.bf16.msra.mxu0 %v3103_v25  ;;  %v3149_v25 = vld [vmem:[%s4075_s1 + $0x2c8] sm:$0xff]   ;;  %v3167_v44 = vld [vmem:[%s4075_s1 + $0x270] sm:$0xff]  }
  0x1c   :  { %2761 = vmatprep.subr.bf16.mxu0 %v3106_v29  ;;  %v3153_v29 = vld [vmem:[%s4075_s1 + $0x2d0] sm:$0xff]   ;;  %v3165_v42 = vld [vmem:[%s4075_s1 + $0x2e8] sm:$0xff]  }
  0x1d   :  { %2782 = vmatpush3.bf16.msra.mxu1 %v3105_v28  ;;  %v3150_v28 = vld [vmem:[%s4075_s1 + $0x288] sm:$0xff]  }
  0x1e   :  { %2783 = vmatprep.subr.bf16.mxu1 %v3108_v31  ;;  %v3155_v31 = vld [vmem:[%s4075_s1 + $0x258] sm:$0xff]   ;;  %v3164_v43 = vld [vmem:[%s4075_s1 + $0x228] sm:$0xff]  }
  0x1f   :  { %2762 = vmatpush3.bf16.msra.mxu0 %v3107_v30  ;;  %v3152_v30 = vld [vmem:[%s4075_s1 + $0x210] sm:$0xff]   ;;  %v3166_v46 = vld [vmem:[%s4075_s1 + $0x2a8] sm:$0xff]  }
  0x20   :  { %2791 = vmatprep.subr.bf16.mxu0 %v3111_v37  ;;  %v3161_v37 = vld [vmem:[%s4075_s1 + $0x2e0] sm:$0xff]  }
  0x21   :  { %2784 = vmatpush3.bf16.msra.mxu1 %v3110_v34  ;;  %v3156_v34 = vld [vmem:[%s4075_s1 + $0x218] sm:$0xff]  }
  0x22   :  { %2813 = vmatprep.subr.bf16.mxu1 %v3113_v40  ;;  %1833 = vmatmul.mubr.bf16.vlgmr.msra.gmra.mrb[0].mxu0 %v458_v45  ;;  %v3162_v40 = vld [vmem:[%s4075_s1 + $0x2a0] sm:$0xff]   ;;  %v29_v45 = vld [vmem:[%s4074_s0 + $0x8] sm:$0xff] }
  0x23   :  { %2792 = vmatpush3.bf16.msra.mxu0 %v3112_v48  ;;  %1912 = vmatprep.mubr.bf16.mxu0 %v479_v49  ;;  %v491_v47 = vrot.slane %v29_v45, %v3462_v41  ;;  %v484_v48 = vcombine.high %v29_v45, %v29_v45  ;;  %v3169_v49 = vld [vmem:[%s4075_s1 + $0x2f0] sm:$0xff]  }
  0x24   :  { %1873 = vmatmul.mubr.bf16.vlgmr.msra.gmra.mrb[0].mxu1 %v480_v50  ;;  %2793 = vmatprep.subr.bf16.mxu0 %v3115_v51  ;;  %v3168_v50 = vld [vmem:[%s4075_s1 + $0x230] sm:$0xff]  }
  0x25   :  { %2814 = vmatpush3.bf16.msra.mxu1 %v3114_v53  ;;  %1952 = vmatprep.mubr.bf16.mxu1 %v483_v55  ;;  %v499_v51 = vcombine.high %v491_v47, %v491_v47  ;;  %v3651_v52 = vrot.slane %v484_v48, %v3462_v41  ;;  %v3171_v53 = vld [vmem:[%s4075_s1 + $0x278] sm:$0xff]   ;;  %v3218_v45 = vld [vmem:[%s4075_s1 + $0x4d0] sm:$0xff]  }
  0x26   :  { %2815 = vmatprep.subr.bf16.mxu1 %v3117_v54  ;;  %v3170_v54 = vld [vmem:[%s4075_s1 + $0x2b0] sm:$0xff]  }
  0x27   :  { %2794 = vmatpush3.bf16.msra.mxu0 %v3116_v56  ;;  %v521_v55 = vrot.slane %v499_v51, %v3462_v41  ;;  %v500_v56 = vcombine.high %v3651_v52, %v3651_v52  ;;  %v3219_v48 = vld [vmem:[%s4075_s1 + $0x490] sm:$0xff]   ;;  %v3224_v51 = vld [vmem:[%s4075_s1 + $0x460] sm:$0xff]  }
  0x28   :  { %2795 = vmatprep.subr.bf16.mxu0 %v3119_v57  ;;  %v3173_v57 = vld [vmem:[%s4075_s1 + $0x2f8] sm:$0xff]  }
  0x29   :  { %2816 = vmatpush3.bf16.msra.mxu1 %v3118_v58  ;;  %v3172_v58 = vld [vmem:[%s4075_s1 + $0x238] sm:$0xff]  }
  0x2a   :  { %2817 = vmatprep.subr.bf16.mxu1 %v3121_v59  ;;  %v531_v59 = vcombine.high %v521_v55, %v521_v55 }
  0x2b   :  { %2796 = vmatpush3.bf16.msra.mxu0 %v3120_v60  ;;  %v507_v60 = vrot.slane %v491_v47, %v3462_v41  ;;  %v3220_v47 = vld [vmem:[%s4075_s1 + $0x458] sm:$0xff]  }
  0x2c   :  { %2797 = vmatprep.subr.bf16.mxu0 %v3123_v61  ;;  %v3175_v61 = vld [vmem:[%s4075_s1 + $0x340] sm:$0xff]  }
  0x2d   :  { %2818 = vmatpush3.bf16.msra.mxu1 %v3122_v62  ;;  %v3174_v62 = vld [vmem:[%s4075_s1 + $0x2b8] sm:$0xff]  }
  0x2e   :  { %2819 = vmatprep.subr.bf16.mxu1 %v3125_v63  ;;  %v528_v63 = vrot.slane %v500_v56, %v3462_v41  ;;  %v3227_v56 = vld [vmem:[%s4075_s1 + $0x4a0] sm:$0xff]  }
  0x2f   :  { %2798 = vmatpush3.bf16.msra.mxu0 %v3124_v0  ;;  %v3177_v0 = vld [vmem:[%s4075_s1 + $0x3c0] sm:$0xff]  }
  0x30   :  { %2799 = vmatprep.subr.bf16.mxu0 %v3127_v1  ;;  %v3176_v1 = vld [vmem:[%s4075_s1 + $0x300] sm:$0xff]  }
  0x31   :  { %2820 = vmatpush3.bf16.msra.mxu1 %v3126_v2  ;;  %v529_v2 = vcombine.high %v507_v60, %v507_v60 }
  0x32   :  { %2821 = vmatprep.subr.bf16.mxu1 %v3129_v3  ;;  %v3179_v3 = vld [vmem:[%s4075_s1 + $0x348] sm:$0xff]  }
  0x33   :  { %2800 = vmatpush3.bf16.msra.mxu0 %v3128_v4  ;;  %v3178_v4 = vld [vmem:[%s4075_s1 + $0x380] sm:$0xff]  }
  0x34   :  { %2801 = vmatprep.subr.bf16.mxu0 %v3131_v5  ;;  %v532_v5 = vcombine.high %v528_v63, %v528_v63 }
  0x35   :  { %2822 = vmatpush3.bf16.msra.mxu1 %v3130_v6  ;;  %v3181_v6 = vld [vmem:[%s4075_s1 + $0x3c8] sm:$0xff]  }
  0x36   :  { %2823 = vmatprep.subr.bf16.mxu1 %v3133_v7  ;;  %v3180_v7 = vld [vmem:[%s4075_s1 + $0x308] sm:$0xff]  }
  0x37   :  { %2802 = vmatpush3.bf16.msra.mxu0 %v3132_v8  ;;  %v3183_v8 = vld [vmem:[%s4075_s1 + $0x350] sm:$0xff]  }
  0x38   :  { %2803 = vmatprep.subr.bf16.mxu0 %v3135_v9  ;;  %v3182_v9 = vld [vmem:[%s4075_s1 + $0x388] sm:$0xff]  }
  0x39   :  { %2824 = vmatpush3.bf16.msra.mxu1 %v3134_v10  ;;  %v3185_v10 = vld [vmem:[%s4075_s1 + $0x3d0] sm:$0xff]  }
  0x3a   :  { %2825 = vmatprep.subr.bf16.mxu1 %v3137_v11  ;;  %v3184_v11 = vld [vmem:[%s4075_s1 + $0x310] sm:$0xff]  }
  0x3b   :  { %2804 = vmatpush3.bf16.msra.mxu0 %v3136_v12  ;;  %v3187_v12 = vld [vmem:[%s4075_s1 + $0x358] sm:$0xff]  }
  0x3c   :  { %2805 = vmatprep.subr.bf16.mxu0 %v3139_v13  ;;  %v3186_v13 = vld [vmem:[%s4075_s1 + $0x390] sm:$0xff]  }
  0x3d   :  { %2826 = vmatpush3.bf16.msra.mxu1 %v3138_v14  ;;  %v3189_v14 = vld [vmem:[%s4075_s1 + $0x3d8] sm:$0xff]  }
  0x3e   :  { %2827 = vmatprep.subr.bf16.mxu1 %v3141_v15  ;;  %v3188_v15 = vld [vmem:[%s4075_s1 + $0x318] sm:$0xff]  }
  0x3f   :  { %2806 = vmatpush3.bf16.msra.mxu0 %v3140_v16  ;;  %v3191_v16 = vld [vmem:[%s4075_s1 + $0x360] sm:$0xff]  }
  0x40   :  { %2835 = vmatprep.subr.bf16.mxu0 %v3143_v18  ;;  %v3193_v18 = vld [vmem:[%s4075_s1 + $0x3e0] sm:$0xff]  }
  0x41   :  { %2828 = vmatpush3.bf16.msra.mxu1 %v3142_v19  ;;  %v3192_v19 = vld [vmem:[%s4075_s1 + $0x320] sm:$0xff]  }
  0x42   :  { %1913 = vmatmul.mubr.bf16.vlgmr.msra.gmra.mrb[4].mxu0 %v465_v17  ;;  %2857 = vmatprep.subr.bf16.mxu1 %v3145_v20  ;;  %v3190_v17 = vld [vmem:[%s4075_s1 + $0x398] sm:$0xff]   ;;  %v3195_v20 = vld [vmem:[%s4075_s1 + $0x368] sm:$0xff]  }
  0x43   :  { %2836 = vmatpush3.bf16.msra.mxu0 %v3144_v21  ;;  %1992 = vmatprep.mubr.bf16.mxu0 %v521_v55  ;;  %v3194_v21 = vld [vmem:[%s4075_s1 + $0x3a0] sm:$0xff]   ;;  %v3228_v55 = vld [vmem:[%s4075_s1 + $0x468] sm:$0xff]  }
  0x44   :  { %1953 = vmatmul.mubr.bf16.vlgmr.msra.gmra.mrb[4].mxu1 %v481_v22  ;;  %2837 = vmatprep.subr.bf16.mxu0 %v3147_v23  ;;  %v3197_v22 = vld [vmem:[%s4075_s1 + $0x3e8] sm:$0xff]  }
  0x45   :  { %2858 = vmatpush3.bf16.msra.mxu1 %v3146_v24  ;;  %2032 = vmatprep.mubr.bf16.mxu1 %v531_v59  ;;  %v3196_v23 = vld [vmem:[%s4075_s1 + $0x328] sm:$0xff]   ;;  %v3199_v24 = vld [vmem:[%s4075_s1 + $0x370] sm:$0xff]  }
  0x46   :  { %2859 = vmatprep.subr.bf16.mxu1 %v3149_v25  ;;  %v3198_v25 = vld [vmem:[%s4075_s1 + $0x3a8] sm:$0xff]   ;;  %v3232_v59 = vld [vmem:[%s4075_s1 + $0x470] sm:$0xff]  }
  0x47   :  { %2838 = vmatpush3.bf16.msra.mxu0 %v3148_v26  ;;  %v3201_v26 = vld [vmem:[%s4075_s1 + $0x3f0] sm:$0xff]  }
  0x48   :  { %2839 = vmatprep.subr.bf16.mxu0 %v3151_v27  ;;  %v3200_v27 = vld [vmem:[%s4075_s1 + $0x330] sm:$0xff]  }
  0x49   :  { %2860 = vmatpush3.bf16.msra.mxu1 %v3150_v28  ;;  %v3203_v28 = vld [vmem:[%s4075_s1 + $0x378] sm:$0xff]  }
  0x4a   :  { %2861 = vmatprep.subr.bf16.mxu1 %v3153_v29  ;;  %v3202_v29 = vld [vmem:[%s4075_s1 + $0x3b0] sm:$0xff]  }
  0x4b   :  { %2840 = vmatpush3.bf16.msra.mxu0 %v3152_v30  ;;  %v3205_v30 = vld [vmem:[%s4075_s1 + $0x3f8] sm:$0xff]  }
  0x4c   :  { %2841 = vmatprep.subr.bf16.mxu0 %v3155_v31  ;;  %v3204_v31 = vld [vmem:[%s4075_s1 + $0x338] sm:$0xff]  }
  0x4d   :  { %2862 = vmatpush3.bf16.msra.mxu1 %v3154_v32  ;;  %v514_v32 = vrot.slane %v3651_v52, %v3462_v41  ;;  %v3223_v52 = vld [vmem:[%s4075_s1 + $0x498] sm:$0xff]  }
  0x4e   :  { %2863 = vmatprep.subr.bf16.mxu1 %v3157_v33  ;;  %v3208_v33 = vld [vmem:[%s4075_s1 + $0x440] sm:$0xff]  }
  0x4f   :  { %2842 = vmatpush3.bf16.msra.mxu0 %v3156_v34  ;;  %v3207_v34 = vld [vmem:[%s4075_s1 + $0x3b8] sm:$0xff]  }
  0x50   :  { %2843 = vmatprep.subr.bf16.mxu0 %v3159_v35  ;;  %v3210_v35 = vld [vmem:[%s4075_s1 + $0x4c0] sm:$0xff]  }
  0x51   :  { %2864 = vmatpush3.bf16.msra.mxu1 %v3158_v36  ;;  %v3209_v36 = vld [vmem:[%s4075_s1 + $0x400] sm:$0xff]  }
  0x52   :  { %2865 = vmatprep.subr.bf16.mxu1 %v3161_v37  ;;  %v530_v37 = vcombine.high %v514_v32, %v514_v32 }
  0x53   :  { %2844 = vmatpush3.bf16.msra.mxu0 %v3160_v38  ;;  %v3212_v38 = vld [vmem:[%s4075_s1 + $0x448] sm:$0xff]  }
  0x54   :  { %2845 = vmatprep.subr.bf16.mxu0 %v3163_v39  ;;  %v3211_v39 = vld [vmem:[%s4075_s1 + $0x480] sm:$0xff]  }
  0x55   :  { %2866 = vmatpush3.bf16.msra.mxu1 %v3162_v40  ;;  %v3214_v40 = vld [vmem:[%s4075_s1 + $0x4c8] sm:$0xff]  }
  0x56   :  { %2867 = vmatprep.subr.bf16.mxu1 %v3165_v42  ;;  %v3213_v42 = vld [vmem:[%s4075_s1 + $0x408] sm:$0xff]  }
  0x57   :  { %2846 = vmatpush3.bf16.msra.mxu0 %v3164_v43  ;;  %v3216_v43 = vld [vmem:[%s4075_s1 + $0x450] sm:$0xff]  }
  0x58   :  { %2847 = vmatprep.subr.bf16.mxu0 %v3167_v44  ;;  %v3215_v44 = vld [vmem:[%s4075_s1 + $0x488] sm:$0xff]  }
  0x59   :  { %2868 = vmatpush3.bf16.msra.mxu1 %v3166_v46  ;;  %v3217_v46 = vld [vmem:[%s4075_s1 + $0x410] sm:$0xff]  }
  0x5a   :  { %2869 = vmatprep.subr.bf16.mxu1 %v3169_v49  ;;  %v3222_v49 = vld [vmem:[%s4075_s1 + $0x4d8] sm:$0xff]  }
  0x5b   :  { %2848 = vmatpush3.bf16.msra.mxu0 %v3168_v50  ;;  %v3221_v50 = vld [vmem:[%s4075_s1 + $0x418] sm:$0xff]  }
  0x5c   :  { %2849 = vmatprep.subr.bf16.mxu0 %v3171_v53  ;;  %v3226_v53 = vld [vmem:[%s4075_s1 + $0x4e0] sm:$0xff]  }
  0x5d   :  { %2870 = vmatpush3.bf16.msra.mxu1 %v3170_v54  ;;  %v3225_v54 = vld [vmem:[%s4075_s1 + $0x420] sm:$0xff]  }
  0x5e   :  { %2871 = vmatprep.subr.bf16.mxu1 %v3173_v57  ;;  %v3230_v57 = vld [vmem:[%s4075_s1 + $0x4e8] sm:$0xff]  }
  0x5f   :  { %2850 = vmatpush3.bf16.msra.mxu0 %v3172_v58  ;;  %v3229_v58 = vld [vmem:[%s4075_s1 + $0x428] sm:$0xff]  }
  0x60   :  { %2879 = vmatprep.subr.bf16.mxu0 %v3175_v61  ;;  %v3231_v61 = vld [vmem:[%s4075_s1 + $0x4a8] sm:$0xff]  }
  0x61   :  { %2872 = vmatpush3.bf16.msra.mxu1 %v3174_v62 }
  0x62   :  { %1993 = vmatmul.mubr.bf16.vlgmr.msra.gmra.mrb[8].mxu0 %v507_v60  ;;  %2901 = vmatprep.subr.bf16.mxu1 %v3177_v0  ;;  %v30_v60 = vld [vmem:[%s4074_s0 + $0x10] sm:$0xff] }
  0x63   :  { %2880 = vmatpush3.bf16.msra.mxu0 %v3176_v1  ;;  %2072 = vmatprep.mubr.bf16.mxu0 %v528_v63  ;;  %v540_v62 = vrot.slane %v30_v60, %v3462_v41  ;;  %v533_v63 = vcombine.high %v30_v60, %v30_v60  ;;  %v3234_v0 = vld [vmem:[%s4075_s1 + $0x4f0] sm:$0xff]  }
  0x64   :  { %2033 = vmatmul.mubr.bf16.vlgmr.msra.gmra.mrb[8].mxu1 %v529_v2  ;;  %2881 = vmatprep.subr.bf16.mxu0 %v3179_v3  ;;  %v3233_v1 = vld [vmem:[%s4075_s1 + $0x430] sm:$0xff]  }
  0x65   :  { %2902 = vmatpush3.bf16.msra.mxu1 %v3178_v4  ;;  %2112 = vmatprep.mubr.bf16.mxu1 %v532_v5  ;;  %v548_v2 = vcombine.high %v540_v62, %v540_v62  ;;  %v3857_v3 = vrot.slane %v533_v63, %v3462_v41  ;;  %v3236_v4 = vld [vmem:[%s4075_s1 + $0x478] sm:$0xff]   ;;  %v3235_v5 = vld [vmem:[%s4075_s1 + $0x4b0] sm:$0xff]  }
  0x66   :  { %2903 = vmatprep.subr.bf16.mxu1 %v3181_v6 }
  0x67   :  { %2882 = vmatpush3.bf16.msra.mxu0 %v3180_v7  ;;  %v570_v6 = vrot.slane %v548_v2, %v3462_v41  ;;  %v549_v7 = vcombine.high %v3857_v3, %v3857_v3 }
  0x68   :  { %2883 = vmatprep.subr.bf16.mxu0 %v3183_v8  ;;  %v3238_v8 = vld [vmem:[%s4075_s1 + $0x4f8] sm:$0xff]  }
  0x69   :  { %2904 = vmatpush3.bf16.msra.mxu1 %v3182_v9  ;;  %v3237_v9 = vld [vmem:[%s4075_s1 + $0x438] sm:$0xff]  }
  0x6a   :  { %2905 = vmatprep.subr.bf16.mxu1 %v3185_v10  ;;  %v580_v10 = vcombine.high %v570_v6, %v570_v6 }
  0x6b   :  { %2884 = vmatpush3.bf16.msra.mxu0 %v3184_v11  ;;  %v556_v11 = vrot.slane %v540_v62, %v3462_v41 }
  0x6c   :  { %2885 = vmatprep.subr.bf16.mxu0 %v3187_v12  ;;  %v3240_v12 = vld [vmem:[%s4075_s1 + $0x540] sm:$0xff]  }
  0x6d   :  { %2906 = vmatpush3.bf16.msra.mxu1 %v3186_v13  ;;  %v3239_v13 = vld [vmem:[%s4075_s1 + $0x4b8] sm:$0xff]  }
  0x6e   :  { %2907 = vmatprep.subr.bf16.mxu1 %v3189_v14  ;;  %v577_v14 = vrot.slane %v549_v7, %v3462_v41 }
  0x6f   :  { %2886 = vmatpush3.bf16.msra.mxu0 %v3188_v15  ;;  %v3242_v15 = vld [vmem:[%s4075_s1 + $0x5c0] sm:$0xff]  }
  0x70   :  { %2887 = vmatprep.subr.bf16.mxu0 %v3191_v16  ;;  %v3241_v16 = vld [vmem:[%s4075_s1 + $0x500] sm:$0xff]  }
  0x71   :  { %2908 = vmatpush3.bf16.msra.mxu1 %v3190_v17  ;;  %v578_v17 = vcombine.high %v556_v11, %v556_v11 }
  0x72   :  { %2909 = vmatprep.subr.bf16.mxu1 %v3193_v18  ;;  %v3244_v18 = vld [vmem:[%s4075_s1 + $0x548] sm:$0xff]  }
  0x73   :  { %2888 = vmatpush3.bf16.msra.mxu0 %v3192_v19  ;;  %v3243_v19 = vld [vmem:[%s4075_s1 + $0x580] sm:$0xff]  }
  0x74   :  { %2889 = vmatprep.subr.bf16.mxu0 %v3195_v20  ;;  %v581_v20 = vcombine.high %v577_v14, %v577_v14 }
  0x75   :  { %2910 = vmatpush3.bf16.msra.mxu1 %v3194_v21  ;;  %v3246_v21 = vld [vmem:[%s4075_s1 + $0x5c8] sm:$0xff]  }
  0x76   :  { %2911 = vmatprep.subr.bf16.mxu1 %v3197_v22  ;;  %v3245_v22 = vld [vmem:[%s4075_s1 + $0x508] sm:$0xff]  }
  0x77   :  { %2890 = vmatpush3.bf16.msra.mxu0 %v3196_v23  ;;  %v3248_v23 = vld [vmem:[%s4075_s1 + $0x550] sm:$0xff]  }
  0x78   :  { %2891 = vmatprep.subr.bf16.mxu0 %v3199_v24  ;;  %v3247_v24 = vld [vmem:[%s4075_s1 + $0x588] sm:$0xff]  }
  0x79   :  { %2912 = vmatpush3.bf16.msra.mxu1 %v3198_v25  ;;  %v3250_v25 = vld [vmem:[%s4075_s1 + $0x5d0] sm:$0xff]  }
  0x7a   :  { %2913 = vmatprep.subr.bf16.mxu1 %v3201_v26  ;;  %v3249_v26 = vld [vmem:[%s4075_s1 + $0x510] sm:$0xff]  }
  0x7b   :  { %2892 = vmatpush3.bf16.msra.mxu0 %v3200_v27  ;;  %v3252_v27 = vld [vmem:[%s4075_s1 + $0x558] sm:$0xff]  }
  0x7c   :  { %2893 = vmatprep.subr.bf16.mxu0 %v3203_v28  ;;  %v3251_v28 = vld [vmem:[%s4075_s1 + $0x590] sm:$0xff]  }
  0x7d   :  { %2914 = vmatpush3.bf16.msra.mxu1 %v3202_v29  ;;  %v3254_v29 = vld [vmem:[%s4075_s1 + $0x5d8] sm:$0xff]  }
  0x7e   :  { %2915 = vmatprep.subr.bf16.mxu1 %v3205_v30  ;;  %v3253_v30 = vld [vmem:[%s4075_s1 + $0x518] sm:$0xff]  }
  0x7f   :  { %2894 = vmatpush3.bf16.msra.mxu0 %v3204_v31  ;;  %v3256_v31 = vld [vmem:[%s4075_s1 + $0x560] sm:$0xff]  }
  0x80   :  { %2923 = vmatprep.subr.bf16.mxu0 %v3208_v33  ;;  %v3258_v33 = vld [vmem:[%s4075_s1 + $0x5e0] sm:$0xff]  }
  0x81   :  { %2916 = vmatpush3.bf16.msra.mxu1 %v3207_v34  ;;  %v3257_v34 = vld [vmem:[%s4075_s1 + $0x520] sm:$0xff]  }
  0x82   :  { %2073 = vmatmul.mubr.bf16.vlgmr.msra.gmra.mrb[12].mxu0 %v514_v32  ;;  %2945 = vmatprep.subr.bf16.mxu1 %v3210_v35  ;;  %v3255_v32 = vld [vmem:[%s4075_s1 + $0x598] sm:$0xff]   ;;  %v3260_v35 = vld [vmem:[%s4075_s1 + $0x568] sm:$0xff]  }
  0x83   :  { %2924 = vmatpush3.bf16.msra.mxu0 %v3209_v36  ;;  %2152 = vmatprep.mubr.bf16.mxu0 %v570_v6  ;;  %v3259_v36 = vld [vmem:[%s4075_s1 + $0x5a0] sm:$0xff]  }
  0x84   :  { %2113 = vmatmul.mubr.bf16.vlgmr.msra.gmra.mrb[12].mxu1 %v530_v37  ;;  %2925 = vmatprep.subr.bf16.mxu0 %v3212_v38  ;;  %v3262_v37 = vld [vmem:[%s4075_s1 + $0x5e8] sm:$0xff]  }
  0x85   :  { %2946 = vmatpush3.bf16.msra.mxu1 %v3211_v39  ;;  %2192 = vmatprep.mubr.bf16.mxu1 %v580_v10  ;;  %v3261_v38 = vld [vmem:[%s4075_s1 + $0x528] sm:$0xff]   ;;  %v3264_v39 = vld [vmem:[%s4075_s1 + $0x570] sm:$0xff]  }
  0x86   :  { %2947 = vmatprep.subr.bf16.mxu1 %v3214_v40  ;;  %v3263_v40 = vld [vmem:[%s4075_s1 + $0x5a8] sm:$0xff]  }
  0x87   :  { %2926 = vmatpush3.bf16.msra.mxu0 %v3213_v42  ;;  %v3266_v42 = vld [vmem:[%s4075_s1 + $0x5f0] sm:$0xff]  }
  0x88   :  { %2927 = vmatprep.subr.bf16.mxu0 %v3216_v43  ;;  %v3265_v43 = vld [vmem:[%s4075_s1 + $0x530] sm:$0xff]  }
  0x89   :  { %2948 = vmatpush3.bf16.msra.mxu1 %v3215_v44  ;;  %v3268_v44 = vld [vmem:[%s4075_s1 + $0x578] sm:$0xff]  }
  0x8a   :  { %2949 = vmatprep.subr.bf16.mxu1 %v3218_v45  ;;  %v3267_v45 = vld [vmem:[%s4075_s1 + $0x5b0] sm:$0xff]  }
  0x8b   :  { %2928 = vmatpush3.bf16.msra.mxu0 %v3217_v46  ;;  %v3269_v46 = vld [vmem:[%s4075_s1 + $0x538] sm:$0xff]  }
  0x8c   :  { %2929 = vmatprep.subr.bf16.mxu0 %v3220_v47  ;;  %v3270_v47 = vld [vmem:[%s4075_s1 + $0x5f8] sm:$0xff]  }
  0x8d   :  { %2950 = vmatpush3.bf16.msra.mxu1 %v3219_v48  ;;  %v3272_v48 = vld [vmem:[%s4075_s1 + $0x5b8] sm:$0xff]  }
  0x8e   :  { %2951 = vmatprep.subr.bf16.mxu1 %v3222_v49  ;;  %v563_v49 = vrot.slane %v3857_v3, %v3462_v41 }
  0x8f   :  { %2930 = vmatpush3.bf16.msra.mxu0 %v3221_v50  ;;  %v3273_v50 = vld [vmem:[%s4075_s1 + $0x600] sm:$0xff]  }
  0x90   :  { %2931 = vmatprep.subr.bf16.mxu0 %v3224_v51  ;;  %v3314_v51 = vmov 0.0  }
  0x91   :  { %2952 = vmatpush3.bf16.msra.mxu1 %v3223_v52  ;;  %v579_v52 = vcombine.high %v563_v49, %v563_v49 }
  0x92   :  { %2953 = vmatprep.subr.bf16.mxu1 %v3226_v53  ;;  %v3274_v53 = vld [vmem:[%s4075_s1 + $0x608] sm:$0xff]  }
  0x93   :  { %2932 = vmatpush3.bf16.msra.mxu0 %v3225_v54 }
  0x94   :  { %2933 = vmatprep.subr.bf16.mxu0 %v3228_v55 }
  0x95   :  { %2954 = vmatpush3.bf16.msra.mxu1 %v3227_v56 }
  0x96   :  { %2955 = vmatprep.subr.bf16.mxu1 %v3230_v57 }
  0x97   :  { %2934 = vmatpush3.bf16.msra.mxu0 %v3229_v58 }
  0x98   :  { %2935 = vmatprep.subr.bf16.mxu0 %v3232_v59 }
  0x99   :  { %2956 = vmatpush3.bf16.msra.mxu1 %v3231_v61 }
  0x9a   :  { %2957 = vmatprep.subr.bf16.mxu1 %v3234_v0 }
  0x9b   :  { %2936 = vmatpush3.bf16.msra.mxu0 %v3233_v1 }
  0x9c   :  { %2937 = vmatprep.subr.bf16.mxu0 %v3236_v4 }
  0x9d   :  { %2958 = vmatpush3.bf16.msra.mxu1 %v3235_v5 }
  0x9e   :  { %2959 = vmatprep.subr.bf16.mxu1 %v3238_v8 }
  0x9f   :  { %2938 = vmatpush3.bf16.msra.mxu0 %v3237_v9 }
  0xa0   :  { %2967 = vmatprep.subr.bf16.mxu0 %v3240_v12 }
  0xa1   :  { %2960 = vmatpush3.bf16.msra.mxu1 %v3239_v13 }
  0xa2   :  { %2153 = vmatmul.mubr.bf16.vlgmr.msra.gmra.mrb[16].mxu0 %v556_v11  ;;  %2989 = vmatprep.subr.bf16.mxu1 %v3242_v15 }
  0xa3   :  { %2968 = vmatpush3.bf16.msra.mxu0 %v3241_v16  ;;  %2232 = vmatprep.mubr.bf16.mxu0 %v577_v14 }
  0xa4   :  { %2193 = vmatmul.mubr.bf16.vlgmr.msra.gmra.mrb[16].mxu1 %v578_v17  ;;  %2969 = vmatprep.subr.bf16.mxu0 %v3244_v18 }
  0xa5   :  { %2990 = vmatpush3.bf16.msra.mxu1 %v3243_v19  ;;  %2272 = vmatprep.mubr.bf16.mxu1 %v581_v20 }
  0xa6   :  { %2991 = vmatprep.subr.bf16.mxu1 %v3246_v21 }
  0xa7   :  { %2970 = vmatpush3.bf16.msra.mxu0 %v3245_v22 }
  0xa8   :  { %2971 = vmatprep.subr.bf16.mxu0 %v3248_v23 }
  0xa9   :  { %2992 = vmatpush3.bf16.msra.mxu1 %v3247_v24 }
  0xaa   :  { %2993 = vmatprep.subr.bf16.mxu1 %v3250_v25 }
  0xab   :  { %2972 = vmatpush3.bf16.msra.mxu0 %v3249_v26 }
  0xac   :  { %2973 = vmatprep.subr.bf16.mxu0 %v3252_v27 }
  0xad   :  { %2994 = vmatpush3.bf16.msra.mxu1 %v3251_v28 }
  0xae   :  { %2995 = vmatprep.subr.bf16.mxu1 %v3254_v29 }
  0xaf   :  { %2974 = vmatpush3.bf16.msra.mxu0 %v3253_v30 }
  0xb0   :  { %2975 = vmatprep.subr.bf16.mxu0 %v3256_v31 }
  0xb1   :  { %2996 = vmatpush3.bf16.msra.mxu1 %v3255_v32 }
  0xb2   :  { %2997 = vmatprep.subr.bf16.mxu1 %v3258_v33 }
  0xb3   :  { %2976 = vmatpush3.bf16.msra.mxu0 %v3257_v34 }
  0xb4   :  { %2977 = vmatprep.subr.bf16.mxu0 %v3260_v35 }
  0xb5   :  { %2998 = vmatpush3.bf16.msra.mxu1 %v3259_v36 }
  0xb6   :  { %2999 = vmatprep.subr.bf16.mxu1 %v3262_v37 }
  0xb7   :  { %2978 = vmatpush3.bf16.msra.mxu0 %v3261_v38 }
  0xb8   :  { %2979 = vmatprep.subr.bf16.mxu0 %v3264_v39 }
  0xb9   :  { %3000 = vmatpush3.bf16.msra.mxu1 %v3263_v40 }
  0xba   :  { %3001 = vmatprep.subr.bf16.mxu1 %v3266_v42 }
  0xbb   :  { %2980 = vmatpush3.bf16.msra.mxu0 %v3265_v43 }
  0xbc   :  { %2981 = vmatprep.subr.bf16.mxu0 %v3268_v44 }
  0xbd   :  { %3002 = vmatpush3.bf16.msra.mxu1 %v3267_v45 }
  0xbe   :  { %3003 = vmatprep.subr.bf16.mxu1 %v3270_v47 }
  0xbf   :  { %2982 = vmatpush3.bf16.msra.mxu0 %v3269_v46 }
  0xc0   :  { %3030 = vmatprep.subr.bf16.mxu0 %v3314_v51 }
  0xc1   :  { %3004 = vmatpush3.bf16.msra.mxu1 %v3272_v48 }
  0xc2   :  { %2233 = vmatmul.mubr.bf16.vlgmr.msra.gmra.mrb[20].mxu0 %v563_v49  ;;  %3042 = vmatprep.subr.bf16.mxu1 %v3314_v51 }
  0xc3   :  { %3031 = vmatpush3.bf16.msra.mxu0 %v3273_v50  ;;  %3038 = vmatprep.mubr.msk.bf16.mxu0 %vm3315_vm0, %v3314_v51 }
  0xc4   :  { %12 = vsyncpa [#allocation3], 0  ;;  %2273 = vmatmul.mubr.bf16.vlgmr.msra.gmra.mrb[20].mxu1 %v579_v52  ;;  %3032 = vmatprep.subr.bf16.mxu0 %v3314_v51  ;;  %v3275_v54 = vld [vmem:[%s4075_s1 + $0x610] sm:$0xff]   ;;  %v3276_v55 = vld [vmem:[%s4075_s1 + $0x618] sm:$0xff]   ;;  %vm1796_vm1 = vcmask 523264   ;;  %s3316_s11 = smov [#allocation2]  }
  0xc5   :  { %3058 = vmatprep.mubr.msk.bf16.mxu1 %vm3315_vm0, %v3314_v51  ;;  %v2534_v56 = vld.sshfl [vmem:[%s4074_s0 + $0x18] sm:$0x1 pattern:$0x75316420]  ;;  %v2533_v59 = vld [vmem:[%s4076_s2] ss:$0 sm:$0xff] }
  0xc6   :  { %v595_v57 = vrot.slane %v2534_v56, %v3462_v41  ;;  %v3277_v6 = vld [vmem:[%s4077_s3] sm:$0xff]   ;;  %v3278_v7 = vld [vmem:[%s4077_s3 + $0x8] sm:$0xff]   ;;  %v3279_v8 = vld [vmem:[%s4077_s3 + $0x10] sm:$0xff]   ;;  %vm2517_vm2 = vcmask 74752  }
  0xc7   :  { %3033 = vmatpush3.bf16.msra.mxu0 %v3274_v53  ;;  %3043 = vmatpush3.bf16.msra.mxu1 %v3277_v6  ;;  %v3280_v14 = vld [vmem:[%s4077_s3 + $0x18] sm:$0xff]   ;;  %v3281_v20 = vld [vmem:[%s4077_s3 + $0x20] sm:$0xff]   ;;  %v3282_v23 = vld [vmem:[%s4077_s3 + $0x28] sm:$0xff]  }
  0xc8   :  { %3034 = vmatprep.subr.bf16.mxu0 %v3314_v51  ;;  %3044 = vmatprep.subr.bf16.mxu1 %v3314_v51  ;;  %v3283_v24 = vld [vmem:[%s4077_s3 + $0x30] sm:$0xff]   ;;  %v3284_v25 = vld [vmem:[%s4077_s3 + $0x38] sm:$0xff]   ;;  %v3285_v26 = vld [vmem:[%s4079_s5] sm:$0xff]  }
  0xc9   :  { %v3286_v27 = vld [vmem:[%s4079_s5 + $0x8] sm:$0xff]  }
  0xcb   :  { %3035 = vmatpush3.bf16.msra.mxu0 %v3275_v54  ;;  %3045 = vmatpush3.bf16.msra.mxu1 %v3278_v7 }
  0xcc   :  { %3036 = vmatprep.subr.bf16.mxu0 %v3314_v51  ;;  %3046 = vmatprep.subr.bf16.mxu1 %v3314_v51 }
  0xcf   :  { %3037 = vmatpush3.bf16.msra.mxu0 %v3276_v55  ;;  %3047 = vmatpush3.bf16.msra.mxu1 %v3279_v8 }
  0xd0   :  { %3062 = vmatprep.subr.bf16.mxu0 %v3314_v51  ;;  %3048 = vmatprep.subr.bf16.mxu1 %v3314_v51 }
  0xd2   :  { %3039 = vmatmul.mubr.msk.bf16.vlgmr.msra.gmra.mrb[24].mxu0 %vm1796_vm1, %v595_v57 }
  0xd3   :  { %3070 = vmatprep.mubr.msk.bf16.mxu0 %vm3315_vm0, %v3314_v51  ;;  %3049 = vmatpush3.bf16.msra.mxu1 %v3280_v14 }
  0xd4   :  { %3050 = vmatprep.subr.bf16.mxu1 %v3314_v51  ;;  %3063 = vmatpush3.bf16.msra.mxu0 %v3285_v26 }
  0xd5   :  { %3064 = vmatprep.subr.bf16.mxu0 %v3314_v51 }
  0xd7   :  { %3051 = vmatpush3.bf16.msra.mxu1 %v3281_v20  ;;  %v3287_v20 = vld [vmem:[%s4079_s5 + $0x10] sm:$0xff]  }
  0xd8   :  { %3052 = vmatprep.subr.bf16.mxu1 %v3314_v51  ;;  %3065 = vmatpush3.bf16.msra.mxu0 %v3286_v27 }
  0xd9   :  { %3066 = vmatprep.subr.bf16.mxu0 %v3314_v51 }
  0xdb   :  { %3053 = vmatpush3.bf16.msra.mxu1 %v3282_v23 }
  0xdc   :  { %3054 = vmatprep.subr.bf16.mxu1 %v3314_v51  ;;  %3067 = vmatpush3.bf16.msra.mxu0 %v3287_v20 }
  0xdd   :  { %3068 = vmatprep.subr.bf16.mxu0 %v3314_v51 }
  0xdf   :  { %3055 = vmatpush3.bf16.msra.mxu1 %v3283_v24 }
  0xe0   :  { %3056 = vmatprep.subr.bf16.mxu1 %v3314_v51  ;;  %v2741_v51 = vld [vmem:[%s4080_s6] ss:$0 sm:$0xff] }
  0xe3   :  { %3057 = vmatpush3.bf16.msra.mxu1 %v3284_v25 }
  0xf5   :  { %v2763_v58 = vpop.f32.mrb[0].mxu0 }
  0xf6   :  { %v2764_v60 = vpop.f32.mrb[1].mxu0 }
  0xf7   :  { %v2765_v61 = vadd.f32 %v2764_v60, %v2763_v58  ;;  %v2766_v62 = vpop.f32.mrb[2].mxu0  ;;  %v2785_v63 = vpop.f32.mrb[0].mxu1 }
  0xf8   :  { %v2767_v0 = vpop.f32.mrb[3].mxu0  ;;  %v2786_v41 = vpop.f32.mrb[1].mxu1 }
  0xf9   :  { %v1835_v1 = vadd.f32 %v2765_v61, %v2533_v59  ;;  %v2787_v2 = vadd.f32 %v2786_v41, %v2785_v63  ;;  %v2788_v3 = vpop.f32.mrb[2].mxu1 }
  0xfa   :  { %v2789_v4 = vpop.f32.mrb[3].mxu1 }
  0xfb   :  { %v1875_v5 = vadd.f32 %v2787_v2, %v1835_v1 }
 0x115   :  { %v2807_v9 = vpop.f32.mrb[4].mxu0 }
 0x116   :  { %v2808_v10 = vpop.f32.mrb[5].mxu0 }
 0x117   :  { %v2809_v11 = vadd.f32 %v2808_v10, %v2807_v9  ;;  %v2810_v12 = vpop.f32.mrb[6].mxu0  ;;  %v2829_v13 = vpop.f32.mrb[4].mxu1 }
 0x118   :  { %v2811_v15 = vpop.f32.mrb[7].mxu0  ;;  %v2830_v16 = vpop.f32.mrb[5].mxu1 }
 0x119   :  { %v1915_v17 = vadd.f32 %v2809_v11, %v1875_v5  ;;  %v2831_v18 = vadd.f32 %v2830_v16, %v2829_v13  ;;  %v2832_v19 = vpop.f32.mrb[6].mxu1 }
 0x11a   :  { %v2833_v21 = vpop.f32.mrb[7].mxu1 }
 0x11b   :  { %v1955_v22 = vadd.f32 %v2831_v18, %v1915_v17  ;;  %v3288_v21 = vld [vmem:[%s4079_s5 + $0x18] sm:$0xff]   ;;  %s2525_s5 = sshll.u32 %s3316_s11, 4  ;;  %s2526_s5 = int_to_ptr.vmem [resolvable:$true] %s2525_s5 }
 0x11c   :  { %3069 = vmatpush3.bf16.msra.mxu0 %v3288_v21  ;;  %p3294_p1 = scmp.lt.s32.totalorder %s2526_s5, %s2526_s5 }
 0x135   :  { %v2851_v28 = vpop.f32.mrb[8].mxu0 }
 0x136   :  { %v2852_v29 = vpop.f32.mrb[9].mxu0 }
 0x137   :  { %v2853_v30 = vadd.f32 %v2852_v29, %v2851_v28  ;;  %v2854_v31 = vpop.f32.mrb[10].mxu0  ;;  %v2873_v32 = vpop.f32.mrb[8].mxu1 }
 0x138   :  { %v2855_v33 = vpop.f32.mrb[11].mxu0  ;;  %v2874_v34 = vpop.f32.mrb[9].mxu1 }
 0x139   :  { %v1995_v35 = vadd.f32 %v2853_v30, %v1955_v22  ;;  %v2875_v36 = vadd.f32 %v2874_v34, %v2873_v32  ;;  %v2876_v37 = vpop.f32.mrb[10].mxu1  ;;  %v2732_v22 = vld [vmem:[%s4078_s4] ss:$0 sm:$0xff]  ;;  %s3289_s4 = scalar_lea.vmem %s2526_s5, 32 }
 0x13a   :  { %v2877_v38 = vpop.f32.mrb[11].mxu1  ;;  %p3290_p0 = scmp.ne.s32.totalorder %s2526_s5, %s3289_s4  ;;  %p3295_p2 = scmp.lt.s32.totalorder %s3289_s4, %s3289_s4 }
 0x13b   :  { %v2035_v39 = vadd.f32 %v2875_v36, %v1995_v35 }
 0x13c   :  { %p3296_p3 = por %p3295_p2, %p3294_p1 }
 0x13e   :  { %p3297_p4 = pnand %p3296_p3, %p3290_p0 }
 0x155   :  { %v2895_v40 = vpop.f32.mrb[12].mxu0 }
 0x156   :  { %v2896_v42 = vpop.f32.mrb[13].mxu0 }
 0x157   :  { %v2897_v43 = vadd.f32 %v2896_v42, %v2895_v40  ;;  %v2898_v44 = vpop.f32.mrb[14].mxu0  ;;  %v2917_v45 = vpop.f32.mrb[12].mxu1 }
 0x158   :  { %v2899_v46 = vpop.f32.mrb[15].mxu0  ;;  %v2918_v47 = vpop.f32.mrb[13].mxu1 }
 0x159   :  { %v2075_v48 = vadd.f32 %v2897_v43, %v2035_v39  ;;  %v2919_v49 = vadd.f32 %v2918_v47, %v2917_v45  ;;  %v2920_v50 = vpop.f32.mrb[14].mxu1 }
 0x15a   :  { %v2921_v52 = vpop.f32.mrb[15].mxu1 }
 0x15b   :  { %v2115_v53 = vadd.f32 %v2919_v49, %v2075_v48 }
 0x175   :  { %v2939_v54 = vpop.f32.mrb[16].mxu0 }
 0x176   :  { %v2940_v55 = vpop.f32.mrb[17].mxu0 }
 0x177   :  { %v2941_v56 = vadd.f32 %v2940_v55, %v2939_v54  ;;  %v2942_v57 = vpop.f32.mrb[18].mxu0  ;;  %v2961_v58 = vpop.f32.mrb[16].mxu1 }
 0x178   :  { %v2943_v59 = vpop.f32.mrb[19].mxu0  ;;  %v2962_v60 = vpop.f32.mrb[17].mxu1 }
 0x179   :  { %v2155_v61 = vadd.f32 %v2941_v56, %v2115_v53  ;;  %v2963_v62 = vadd.f32 %v2962_v60, %v2961_v58  ;;  %v2964_v63 = vpop.f32.mrb[18].mxu1 }
 0x17a   :  { %v2965_v0 = vpop.f32.mrb[19].mxu1 }
 0x17b   :  { %v2195_v41 = vadd.f32 %v2963_v62, %v2155_v61 }
 0x195   :  { %v2983_v1 = vpop.f32.mrb[20].mxu0 }
 0x196   :  { %v2984_v2 = vpop.f32.mrb[21].mxu0 }
 0x197   :  { %v2985_v3 = vadd.f32 %v2984_v2, %v2983_v1  ;;  %v2986_v4 = vpop.f32.mrb[22].mxu0  ;;  %v3005_v5 = vpop.f32.mrb[20].mxu1 }
 0x198   :  { %v2987_v6 = vpop.f32.mrb[23].mxu0  ;;  %v3006_v7 = vpop.f32.mrb[21].mxu1 }
 0x199   :  { %v2235_v8 = vadd.f32 %v2985_v3, %v2195_v41  ;;  %v3007_v9 = vadd.f32 %v3006_v7, %v3005_v5  ;;  %v3008_v10 = vpop.f32.mrb[22].mxu1 }
 0x19a   :  { %v3009_v11 = vpop.f32.mrb[23].mxu1 }
 0x19b   :  { %v2275_v12 = vadd.f32 %v3007_v9, %v2235_v8 }
 0x1a5   :  { %v2314_v13 = vpop.f32.mrb[24].mxu0 }
 0x1a6   :  { %v2315_v14 = vadd.f32 %v2314_v13, %v2275_v12  ;;  %v3040_v15 = vpop.f32.mrb[25].mxu0 }
 0x1a7   :  { %v2317_v16 = vpop.f32.mrb[26].mxu0 }
 0x1a8   :  { %v2320_v17 = vmax.f32 %v2315_v14, 0.0  ;;  %v3041_v18 = vpop.f32.mrb[27].mxu0 }
 0x1aa   :  { %v2321_v19 = vpack.c.bf16 %v2320_v17, %v2320_v17 }
 0x1ac   :  { %3059 = vmatmul.mubr.bf16.vlgmr.msra.gmra.mrb[24].mxu1 %v2321_v19 }
 0x27f   :  { %v2427_v23 = vpop.f32.mrb[24].mxu1 }
 0x280   :  { %v2428_v24 = vadd.f32 %v2732_v22, %v2427_v23  ;;  %v3060_v25 = vpop.f32.mrb[25].mxu1 }
 0x281   :  { %v2430_v26 = vpop.f32.mrb[26].mxu1 }
 0x282   :  { %v2433_v27 = vmax.f32 %v2428_v24, 0.0  ;;  %v3061_v28 = vpop.f32.mrb[27].mxu1 }
 0x284   :  { %v2434_v29 = vpack.c.bf16 %v2433_v27, %v2433_v27 }
 0x286   :  { %3071 = vmatmul.mubr.msk.bf16.vlgmr.msra.gmra.mrb[28].mxu0 %vm1796_vm1, %v2434_v29 }
 0x359   :  { %v2511_v30 = vpop.f32.mrb[28].mxu0 }
 0x35a   :  { %v2512_v31 = vadd.f32 %v2741_v51, %v2511_v30  ;;  %v3072_v32 = vpop.f32.mrb[29].mxu0 }
 0x35b   :  { %v2514_v33 = vpop.f32.mrb[30].mxu0 }
 0x35c   :  { %v3073_v34 = vpop.f32.mrb[31].mxu0  ;;  %2518 = vst.msk [vmem:[#allocation2] sm:$0x3] %vm2517_vm2, %v2512_v31 }
 0x35d   :  { %3300 = shalt.err (!%p3297_p4)
}
 0x35e   :  { %s3301_s6 = scalar_lea.hbm %s4081_s7, 32 }
 0x35f   :  { %p3302_p5 = scmp.ne.s32.totalorder %s4081_s7, %s3301_s6  ;;  %p3305_p6 = scmp.lt.u32.totalorder %s3301_s6, %s4081_s7 }
 0x361   :  { %p3307_p7 = pnand %p3305_p6, %p3302_p5 }
 0x363   :  { %3310 = shalt.err (!%p3307_p7)
}
 0x364   :  { %2528 = dma.vmem_to_hbm [thread:$0]  %s2526_s5, 32, %s4081_s7, [#allocation3]  }
 0x365   :  { %3311 = dma.done.wait [#allocation3], 32  }
 0x366   :  { %3312 = vsyncadd [#allocation3], 4294967264 }
 0x367   :  { %2532 = vsyncpa [#allocation3], 1 }

// kernel: my_nn_forward.2
= control target key start
LH: loop header
LB: loop body
LE: loop exit
PB: predicated region body
PF: predicated region fallthrough
CT: control target
= control target key end

     0   :  { %s8129_s30 = smov 0   ;;  %s10857_s0 = inlined_call_operand.vmem [shape: bf16[2048,36], index: 0, kind: input, shape index: {}]   ;;  %s10858_s1 = inlined_call_operand.vmem [shape: bf16[36,32], index: 1, kind: input, shape index: {}]   ;;  %s10859_s2 = inlined_call_operand.vmem [shape: f32[1,32], index: 2, kind: input, shape index: {}]   ;;  %s10860_s3 = inlined_call_operand.vmem [shape: f32[1,32], index: 3, kind: input, shape index: {}]   ;;  %s10861_s4 = inlined_call_operand.vmem [shape: f32[1,32], index: 4, kind: input, shape index: {}]   ;;  %s10862_s5 = inlined_call_operand.vmem [shape: bf16[9,32,64], index: 5, kind: input, shape index: {}]   ;;  %s10863_s6 = inlined_call_operand.vmem [shape: f32[1,64], index: 6, kind: input, shape index: {}]   ;;  %s10864_s7 = inlined_call_operand.vmem [shape: f32[1,64], index: 7, kind: input, shape index: {}]   ;;  %s10865_s8 = inlined_call_operand.vmem [shape: f32[1,64], index: 8, kind: input, shape index: {}]   ;;  %s10866_s9 = inlined_call_operand.vmem [shape: bf16[2,49,64], index: 9, kind: output, shape index: {}]  }
   0x1 LB: > { %s8135_s10 = sadd.s32 4294967295, %s8075_s30   ;;  %p6394_p0 = scmp.ge.s32.totalorder %s8075_s30, 1  ;;  %s8075_s30 = sphi %s8129_s30, %s19_s30  }
   0x2   : > { %p288_p1 = scmp.lt.s32.totalorder %s8075_s30, 3 }
   0x4   : > { %p289_p2 = pnand %p6394_p0, %p288_p1 }
   0x6   : > { %292 = sbr.rel (%p289_p2) target bundleno = 1170 (0x492), region = 56 }
   0xd   : > { %v7884_v0 = vld [vmem:[%s10858_s1] sm:$0xff]   ;;  %v7885_v1 = vld [vmem:[%s10858_s1 + $0x8] sm:$0xff]   ;;  %s6395_s15 = sshll.u32 %s8135_s10, 7  ;;  %v7886_v2 = vld [vmem:[%s10858_s1 + $0x10] ss:$0 sps:$4 sm:$0x33]  }
   0xe   : > { %7154 = vmatprep.subr.bf16.mxu0 %v7884_v0  ;;  %p325_p3 = scmp.lt.s32.totalorder %s6395_s15, 255  ;;  %vm1009_vm0 = vcmask 1041408   ;;  %vm816_vm1 = vcmask 293888   ;;  %p330_p4 = scmp.lt.s32.totalorder %s8135_s10, 1 }
   0xf   : > { %7155 = vmatpush3.bf16.msra.mxu0 %v7884_v0  ;;  %v1011_v3 = vsel %vm1009_vm0, %v7886_v2, 0 }
  0x10   : > { %7156 = vmatprep.subr.bf16.mxu0 %v7885_v1  ;;  %s11249_s15 = smov (!%p325_p3, %s6395_s15), 255  ;;  %s11251_s10 = smov (!%p330_p4, %s8135_s10), 1 }
  0x11   : > { %s6396_s18 = sshll.u32 %s11249_s15, 2  ;;  %s7873_s12 = smul.u32 28, %s11251_s10 }
  0x12   : > { %s8152_s21 = scalar_lea.vmem %s10857_s0, %s6396_s18 }
  0x13   : > { %7157 = vmatpush3.bf16.msra.mxu0 %v7885_v1  ;;  %v7887_v4 = vld [vmem:[%s8152_s21] sm:$0xff]   ;;  %v7888_v5 = vld [vmem:[%s8152_s21 + $0x8] sm:$0xff]   ;;  %v7889_v6 = vld [vmem:[%s8152_s21 + $0x10] sm:$0xff]   ;;  %s10704_s14 = scalar_lea.vmem %s10866_s9, %s7873_s12 }
  0x14   : > { %7872 = vmatprep.subr.msk.bf16.mxu0 %vm1009_vm0, %v7886_v2  ;;  %7160 = vmatprep.mubr.msk.bf16.mxu0 %vm816_vm1, %v7887_v4  ;;  %v7890_v7 = vld [vmem:[%s8152_s21 + $0x18] sm:$0xff]   ;;  %v7891_v8 = vld [vmem:[%s8152_s21 + $0x20] sm:$0xff]   ;;  %v7892_v9 = vld [vmem:[%s8152_s21 + $0x28] sm:$0xff]  }
  0x15   : > { %v7893_v10 = vld [vmem:[%s8152_s21 + $0x30] sm:$0xff]   ;;  %v7894_v11 = vld [vmem:[%s8152_s21 + $0x38] sm:$0xff]   ;;  %v7895_v12 = vld [vmem:[%s8152_s21 + $0x40] sm:$0xff]  }
  0x16   : > { %v7896_v13 = vld [vmem:[%s8152_s21 + $0x48] sm:$0xff]   ;;  %v7897_v14 = vld [vmem:[%s8152_s21 + $0x50] sm:$0xff]   ;;  %v7898_v15 = vld [vmem:[%s8152_s21 + $0x58] sm:$0xff]  }
  0x17   : > { %7159 = vmatpush3.bf16.msra.mxu0 %v1011_v3  ;;  %v7899_v16 = vld [vmem:[%s8152_s21 + $0x60] sm:$0xff]   ;;  %v7900_v17 = vld [vmem:[%s8152_s21 + $0x68] sm:$0xff]   ;;  %v7901_v18 = vld [vmem:[%s8152_s21 + $0x70] sm:$0xff]  }
  0x18   : > { %v7902_v19 = vld [vmem:[%s8152_s21 + $0x78] sm:$0xff]   ;;  %v7903_v20 = vld [vmem:[%s8152_s21 + $0x80] sm:$0xff]   ;;  %v7904_v21 = vld [vmem:[%s8152_s21 + $0x88] sm:$0xff]  }
  0x19   : > { %v7905_v22 = vld [vmem:[%s8152_s21 + $0x90] sm:$0xff]   ;;  %v7906_v23 = vld [vmem:[%s8152_s21 + $0x98] sm:$0xff]   ;;  %v7907_v24 = vld [vmem:[%s8152_s21 + $0xa0] sm:$0xff]  }
  0x1a   : > { %7161 = vmatmul.mubr.msk.bf16.vlgmr.msra.gmra.mrb[0].mxu0 %vm816_vm1, %v7888_v5  ;;  %v7908_v25 = vld [vmem:[%s8152_s21 + $0xa8] sm:$0xff]   ;;  %v7909_v26 = vld [vmem:[%s8152_s21 + $0xb0] sm:$0xff]   ;;  %v7910_v27 = vld [vmem:[%s8152_s21 + $0xb8] sm:$0xff]  }
  0x1b   : > { %7164 = vmatprep.mubr.msk.bf16.mxu0 %vm816_vm1, %v7889_v6  ;;  %v7911_v28 = vld [vmem:[%s8152_s21 + $0xc0] sm:$0xff]   ;;  %v7912_v29 = vld [vmem:[%s8152_s21 + $0xc8] sm:$0xff]   ;;  %v7913_v30 = vld [vmem:[%s8152_s21 + $0xd0] sm:$0xff]  }
  0x1c   : > { %v7914_v31 = vld [vmem:[%s8152_s21 + $0xd8] sm:$0xff]   ;;  %v7915_v32 = vld [vmem:[%s8152_s21 + $0xe0] sm:$0xff]   ;;  %v7916_v33 = vld [vmem:[%s8152_s21 + $0xe8] sm:$0xff]  }
  0x1d   : > { %v7917_v34 = vld [vmem:[%s8152_s21 + $0xf0] sm:$0xff]   ;;  %v7918_v35 = vld [vmem:[%s8152_s21 + $0xf8] sm:$0xff]   ;;  %v7919_v36 = vld [vmem:[%s8152_s21 + $0x100] sm:$0xff]  }
  0x1e   : > { %v7920_v37 = vld [vmem:[%s8152_s21 + $0x108] sm:$0xff]   ;;  %v7921_v38 = vld [vmem:[%s8152_s21 + $0x110] sm:$0xff]   ;;  %v7922_v39 = vld [vmem:[%s8152_s21 + $0x118] sm:$0xff]  }
  0x1f   : > { %v7923_v40 = vld [vmem:[%s8152_s21 + $0x120] sm:$0xff]   ;;  %v7924_v41 = vld [vmem:[%s8152_s21 + $0x128] sm:$0xff]   ;;  %v7925_v42 = vld [vmem:[%s8152_s21 + $0x130] sm:$0xff]  }
  0x20   : > { %v7926_v43 = vld [vmem:[%s8152_s21 + $0x138] sm:$0xff]   ;;  %v7927_v44 = vld [vmem:[%s8152_s21 + $0x140] sm:$0xff]   ;;  %v7928_v45 = vld [vmem:[%s8152_s21 + $0x148] sm:$0xff]  }
  0x21   : > { %v7929_v46 = vld [vmem:[%s8152_s21 + $0x150] sm:$0xff]   ;;  %v7930_v47 = vld [vmem:[%s8152_s21 + $0x158] sm:$0xff]   ;;  %v7931_v48 = vld [vmem:[%s8152_s21 + $0x160] sm:$0xff]  }
  0x22   : > { %7165 = vmatmul.mubr.msk.bf16.gmra.mrb[4].mxu0 %vm816_vm1, %v7890_v7  ;;  %v7932_v49 = vld [vmem:[%s8152_s21 + $0x168] sm:$0xff]   ;;  %v7933_v50 = vld [vmem:[%s8152_s21 + $0x170] sm:$0xff]   ;;  %v7934_v51 = vld [vmem:[%s8152_s21 + $0x178] sm:$0xff]  }
  0x23   : > { %7168 = vmatprep.mubr.msk.bf16.mxu0 %vm816_vm1, %v7891_v8  ;;  %v7935_v52 = vld [vmem:[%s8152_s21 + $0x180] sm:$0xff]   ;;  %v7936_v53 = vld [vmem:[%s8152_s21 + $0x188] sm:$0xff]   ;;  %v7937_v54 = vld [vmem:[%s8152_s21 + $0x190] sm:$0xff]  }
  0x24   : > { %v7938_v55 = vld [vmem:[%s8152_s21 + $0x198] sm:$0xff]   ;;  %v7939_v56 = vld [vmem:[%s8152_s21 + $0x1a0] sm:$0xff]   ;;  %v7940_v57 = vld [vmem:[%s8152_s21 + $0x1a8] sm:$0xff]  }
  0x25   : > { %v7941_v58 = vld [vmem:[%s8152_s21 + $0x1b0] sm:$0xff]   ;;  %v7942_v61 = vld [vmem:[%s8152_s21 + $0x1b8] sm:$0xff]   ;;  %v7943_v63 = vld [vmem:[%s8152_s21 + $0x1c0] sm:$0xff]  }
  0x26   : > { %v7944_v3 = vld [vmem:[%s8152_s21 + $0x1c8] sm:$0xff]   ;;  %v7945_v5 = vld [vmem:[%s8152_s21 + $0x1d0] sm:$0xff]  }
  0x2a   : > { %7169 = vmatmul.mubr.msk.bf16.gmra.mrb[8].mxu0 %vm816_vm1, %v7892_v9  ;;  %v7946_v9 = vld [vmem:[%s8152_s21 + $0x1d8] sm:$0xff]  }
  0x2b   : > { %7172 = vmatprep.mubr.msk.bf16.mxu0 %vm816_vm1, %v7893_v10 }
  0x32   : > { %7173 = vmatmul.mubr.msk.bf16.gmra.mrb[12].mxu0 %vm816_vm1, %v7894_v11  ;;  %v7947_v11 = vld [vmem:[%s8152_s21 + $0x1e0] sm:$0xff]  }
  0x33   : > { %7176 = vmatprep.mubr.msk.bf16.mxu0 %vm816_vm1, %v7895_v12 }
  0x3a   : > { %7177 = vmatmul.mubr.msk.bf16.gmra.mrb[16].mxu0 %vm816_vm1, %v7896_v13 }
  0x3b   : > { %7180 = vmatprep.mubr.msk.bf16.mxu0 %vm816_vm1, %v7897_v14 }
  0x42   : > { %7181 = vmatmul.mubr.msk.bf16.gmra.mrb[20].mxu0 %vm816_vm1, %v7898_v15  ;;  %v7948_v15 = vld [vmem:[%s8152_s21 + $0x1e8] sm:$0xff]  }
  0x43   : > { %7184 = vmatprep.mubr.msk.bf16.mxu0 %vm816_vm1, %v7899_v16 }
  0x4a   : > { %7185 = vmatmul.mubr.msk.bf16.gmra.mrb[24].mxu0 %vm816_vm1, %v7900_v17  ;;  %v7949_v17 = vld [vmem:[%s8152_s21 + $0x1f0] sm:$0xff]  }
  0x4b   : > { %7188 = vmatprep.mubr.msk.bf16.mxu0 %vm816_vm1, %v7901_v18  ;;  %v8281_v18 = vld [vmem:[%s10859_s2] ss:$0 sm:$0xff] }
  0x52   : > { %7189 = vmatmul.mubr.msk.bf16.gmra.mrb[28].mxu0 %vm816_vm1, %v7902_v19 }
  0x53   : > { %7192 = vmatprep.mubr.msk.bf16.mxu0 %vm816_vm1, %v7903_v20 }
  0x5a   : > { %7193 = vmatmul.mubr.msk.bf16.gmra.mrb[32].mxu0 %vm816_vm1, %v7904_v21 }
  0x5b   : > { %7196 = vmatprep.mubr.msk.bf16.mxu0 %vm816_vm1, %v7905_v22 }
  0x62   : > { %7197 = vmatmul.mubr.msk.bf16.gmra.mrb[36].mxu0 %vm816_vm1, %v7906_v23 }
  0x63   : > { %7200 = vmatprep.mubr.msk.bf16.mxu0 %vm816_vm1, %v7907_v24 }
  0x6a   : > { %7201 = vmatmul.mubr.msk.bf16.gmra.mrb[40].mxu0 %vm816_vm1, %v7908_v25  ;;  %v7950_v25 = vld [vmem:[%s8152_s21 + $0x1f8] sm:$0xff]  }
  0x6b   : > { %7204 = vmatprep.mubr.msk.bf16.mxu0 %vm816_vm1, %v7909_v26 }
  0x72   : > { %7205 = vmatmul.mubr.msk.bf16.gmra.mrb[44].mxu0 %vm816_vm1, %v7910_v27 }
  0x73   : > { %7208 = vmatprep.mubr.msk.bf16.mxu0 %vm816_vm1, %v7911_v28 }
  0x7a   : > { %7209 = vmatmul.mubr.msk.bf16.gmra.mrb[48].mxu0 %vm816_vm1, %v7912_v29  ;;  %v8295_v29 = vld [vmem:[%s10860_s3] ss:$0 sm:$0xff] }
  0x7b   : > { %7212 = vmatprep.mubr.msk.bf16.mxu0 %vm816_vm1, %v7913_v30 }
  0x82   : > { %7213 = vmatmul.mubr.msk.bf16.gmra.mrb[52].mxu0 %vm816_vm1, %v7914_v31 }
  0x83   : > { %7216 = vmatprep.mubr.msk.bf16.mxu0 %vm816_vm1, %v7915_v32 }
  0x8a   : > { %7217 = vmatmul.mubr.msk.bf16.gmra.mrb[56].mxu0 %vm816_vm1, %v7916_v33 }
  0x8b   : > { %7220 = vmatprep.mubr.msk.bf16.mxu0 %vm816_vm1, %v7917_v34 }
  0x92   : > { %7221 = vmatmul.mubr.msk.bf16.gmra.mrb[60].mxu0 %vm816_vm1, %v7918_v35 }
  0x93   : > { %7224 = vmatprep.mubr.msk.bf16.mxu0 %vm816_vm1, %v7919_v36 }
  0x9a   : > { %7225 = vmatmul.mubr.msk.bf16.gmra.mrb[64].mxu0 %vm816_vm1, %v7920_v37 }
  0x9b   : > { %7228 = vmatprep.mubr.msk.bf16.mxu0 %vm816_vm1, %v7921_v38 }
  0xa2   : > { %7229 = vmatmul.mubr.msk.bf16.gmra.mrb[68].mxu0 %vm816_vm1, %v7922_v39 }
  0xa3   : > { %7232 = vmatprep.mubr.msk.bf16.mxu0 %vm816_vm1, %v7923_v40 }
  0xaa   : > { %7233 = vmatmul.mubr.msk.bf16.gmra.mrb[72].mxu0 %vm816_vm1, %v7924_v41  ;;  %v8308_v41 = vld [vmem:[%s10861_s4] ss:$0 sm:$0xff] }
  0xab   : > { %7236 = vmatprep.mubr.msk.bf16.mxu0 %vm816_vm1, %v7925_v42 }
  0xb2   : > { %7237 = vmatmul.mubr.msk.bf16.gmra.mrb[76].mxu0 %vm816_vm1, %v7926_v43 }
  0xb3   : > { %7240 = vmatprep.mubr.msk.bf16.mxu0 %vm816_vm1, %v7927_v44 }
  0xba   : > { %7241 = vmatmul.mubr.msk.bf16.gmra.mrb[80].mxu0 %vm816_vm1, %v7928_v45 }
  0xbb   : > { %7244 = vmatprep.mubr.msk.bf16.mxu0 %vm816_vm1, %v7929_v46 }
  0xc2   : > { %7245 = vmatmul.mubr.msk.bf16.gmra.mrb[84].mxu0 %vm816_vm1, %v7930_v47 }
  0xc3   : > { %7248 = vmatprep.mubr.msk.bf16.mxu0 %vm816_vm1, %v7931_v48 }
  0xca   : > { %7249 = vmatmul.mubr.msk.bf16.gmra.mrb[88].mxu0 %vm816_vm1, %v7932_v49 }
  0xcb   : > { %7252 = vmatprep.mubr.msk.bf16.mxu0 %vm816_vm1, %v7933_v50 }
  0xd2   : > { %7253 = vmatmul.mubr.msk.bf16.gmra.mrb[92].mxu0 %vm816_vm1, %v7934_v51 }
  0xd3   : > { %7256 = vmatprep.mubr.msk.bf16.mxu0 %vm816_vm1, %v7935_v52 }
  0xda   : > { %7257 = vmatmul.mubr.msk.bf16.gmra.mrb[96].mxu0 %vm816_vm1, %v7936_v53 }
  0xdb   : > { %7260 = vmatprep.mubr.msk.bf16.mxu0 %vm816_vm1, %v7937_v54 }
  0xe2   : > { %7261 = vmatmul.mubr.msk.bf16.gmra.mrb[100].mxu0 %vm816_vm1, %v7938_v55 }
  0xe3   : > { %7264 = vmatprep.mubr.msk.bf16.mxu0 %vm816_vm1, %v7939_v56 }
  0xea   : > { %7265 = vmatmul.mubr.msk.bf16.gmra.mrb[104].mxu0 %vm816_vm1, %v7940_v57 }
  0xeb   : > { %7268 = vmatprep.mubr.msk.bf16.mxu0 %vm816_vm1, %v7941_v58 }
  0xed   : > { %v7162_v59 = vpop.f32.mrb[0].mxu0 }
  0xee   : > { %v1047_v60 = vpop.f32.mrb[1].mxu0  ;;  %v1056_v20 = vadd.f32 %v7162_v59, %v8281_v18 }
  0xef   : > { %v7163_v62 = vpop.f32.mrb[2].mxu0  ;;  %v1048_v22 = vadd.f32 %v8281_v18, %v1047_v60 }
  0xf0   : > { %v1050_v0 = vpop.f32.mrb[3].mxu0  ;;  %v1059_v23 = vadd.f32 %v7163_v62, %v8281_v18  ;;  %v1560_v26 = vmax.f32 %v1056_v20, 0.0 }
  0xf1   : > { %v1051_v27 = vadd.f32 %v8281_v18, %v1050_v0  ;;  %v1558_v35 = vmax.f32 %v1048_v22, 0.0 }
  0xf2   : > { %7269 = vmatmul.mubr.msk.bf16.gmra.mrb[108].mxu0 %vm816_vm1, %v7942_v61  ;;  %v1561_v36 = vmax.f32 %v1059_v23, 0.0  ;;  %v1694_v38 = vmul.f32 %v8295_v29, %v1560_v26 }
  0xf3   : > { %7272 = vmatprep.mubr.msk.bf16.mxu0 %vm816_vm1, %v7943_v63  ;;  %v1559_v39 = vmax.f32 %v1051_v27, 0.0  ;;  %v1692_v49 = vmul.f32 %v8295_v29, %v1558_v35 }
  0xf4   : > { %v1695_v50 = vmul.f32 %v8295_v29, %v1561_v36  ;;  %v8316_v54 = vadd.f32 %v8308_v41, %v1694_v38 }
  0xf5   : > { %v7166_v1 = vpop.f32.mrb[4].mxu0  ;;  %v1693_v55 = vmul.f32 %v8295_v29, %v1559_v39 }
  0xf6   : > { %v1063_v2 = vpop.f32.mrb[5].mxu0  ;;  %v1072_v30 = vadd.f32 %v7166_v1, %v8281_v18 }
  0xf7   : > { %v7167_v4 = vpop.f32.mrb[6].mxu0  ;;  %v1064_v31 = vadd.f32 %v8281_v18, %v1063_v2 }
  0xf8   : > { %v1066_v6 = vpop.f32.mrb[7].mxu0  ;;  %v1075_v32 = vadd.f32 %v7167_v4, %v8281_v18  ;;  %v1564_v42 = vmax.f32 %v1072_v30, 0.0  ;;  %v8327_v4 = vadd.f32 %v8308_v41, %v1692_v49 }
  0xf9   : > { %v1067_v34 = vadd.f32 %v8281_v18, %v1066_v6  ;;  %v1562_v43 = vmax.f32 %v1064_v31, 0.0 }
  0xfa   : > { %7273 = vmatmul.mubr.msk.bf16.gmra.mrb[112].mxu0 %vm816_vm1, %v7944_v3  ;;  %v1565_v44 = vmax.f32 %v1075_v32, 0.0  ;;  %v1698_v59 = vmul.f32 %v8295_v29, %v1564_v42 }
  0xfb   : > { %7276 = vmatprep.mubr.msk.bf16.mxu0 %vm816_vm1, %v7945_v5  ;;  %v1563_v45 = vmax.f32 %v1067_v34, 0.0  ;;  %v1696_v60 = vmul.f32 %v8295_v29, %v1562_v43  ;;  %v8330_v5 = vadd.f32 %v8308_v41, %v1695_v50 }
  0xfc   : > { %v1699_v61 = vmul.f32 %v8295_v29, %v1565_v44 }
  0xfd   : > { %v7170_v7 = vpop.f32.mrb[8].mxu0  ;;  %v1697_v0 = vmul.f32 %v8295_v29, %v1563_v45 }
  0xfe   : > { %v1079_v8 = vpop.f32.mrb[9].mxu0  ;;  %v1088_v37 = vadd.f32 %v7170_v7, %v8281_v18 }
  0xff   : > { %v7171_v10 = vpop.f32.mrb[10].mxu0  ;;  %v1080_v40 = vadd.f32 %v8281_v18, %v1079_v8  ;;  %v8334_v8 = vadd.f32 %v8308_v41, %v1693_v55 }
 0x100   : > { %v1082_v12 = vpop.f32.mrb[11].mxu0  ;;  %v1091_v46 = vadd.f32 %v7171_v10, %v8281_v18  ;;  %v1568_v51 = vmax.f32 %v1088_v37, 0.0 }
 0x101   : > { %v1083_v47 = vadd.f32 %v8281_v18, %v1082_v12  ;;  %v1566_v56 = vmax.f32 %v1080_v40, 0.0  ;;  %v8339_v12 = vadd.f32 %v8308_v41, %v1698_v59 }
 0x102   : > { %7277 = vmatmul.mubr.msk.bf16.gmra.mrb[116].mxu0 %vm816_vm1, %v7946_v9  ;;  %v1569_v1 = vmax.f32 %v1091_v46, 0.0  ;;  %v1702_v6 = vmul.f32 %v8295_v29, %v1568_v51 }
 0x103   : > { %7280 = vmatprep.mubr.msk.bf16.mxu0 %vm816_vm1, %v7947_v11  ;;  %v1567_v2 = vmax.f32 %v1083_v47, 0.0  ;;  %v1700_v9 = vmul.f32 %v8295_v29, %v1566_v56 }
 0x105   : > { %v7174_v13 = vpop.f32.mrb[12].mxu0  ;;  %v8360_v30 = vadd.f32 %v8308_v41, %v1700_v9 }
 0x106   : > { %v1095_v14 = vpop.f32.mrb[13].mxu0  ;;  %v1104_v52 = vadd.f32 %v7174_v13, %v8281_v18  ;;  %v8342_v13 = vadd.f32 %v8308_v41, %v1696_v60 }
 0x107   : > { %v7175_v16 = vpop.f32.mrb[14].mxu0  ;;  %v1096_v57 = vadd.f32 %v8281_v18, %v1095_v14  ;;  %v8345_v14 = vadd.f32 %v8308_v41, %v1699_v61  ;;  %10911 = vst [vmem:[#allocation5_spill] sm:$0xff] %v8360_v30 }
 0x108   : > { %v1098_v19 = vpop.f32.mrb[15].mxu0  ;;  %v1107_v62 = vadd.f32 %v7175_v16, %v8281_v18  ;;  %v1572_v7 = vmax.f32 %v1104_v52, 0.0  ;;  %v8348_v16 = vadd.f32 %v8308_v41, %v1697_v0 }
 0x109   : > { %v1099_v3 = vadd.f32 %v8281_v18, %v1098_v19  ;;  %v1570_v10 = vmax.f32 %v1096_v57, 0.0  ;;  %v1701_v19 = vmul.f32 %v8295_v29, %v1567_v2 }
 0x10a   : > { %7281 = vmatmul.mubr.msk.bf16.gmra.mrb[120].mxu0 %vm816_vm1, %v7948_v15  ;;  %v1573_v15 = vmax.f32 %v1107_v62, 0.0  ;;  %v1706_v23 = vmul.f32 %v8295_v29, %v1572_v7 }
 0x10b   : > { %7284 = vmatprep.mubr.msk.bf16.mxu0 %vm816_vm1, %v7949_v17  ;;  %v1703_v17 = vmul.f32 %v8295_v29, %v1569_v1  ;;  %v1571_v20 = vmax.f32 %v1099_v3, 0.0  ;;  %v1704_v31 = vmul.f32 %v8295_v29, %v1570_v10  ;;  %v8372_v40 = vadd.f32 %v8308_v41, %v1701_v19 }
 0x10c   : > { %v1707_v36 = vmul.f32 %v8295_v29, %v1573_v15  ;;  %v8377_v43 = vadd.f32 %v8308_v41, %v1706_v23 }
 0x10d   : > { %v7178_v21 = vpop.f32.mrb[16].mxu0  ;;  %10912 = vst [vmem:[#allocation6_spill] sm:$0xff] %v8372_v40  ;;  %v1705_v42 = vmul.f32 %v8295_v29, %v1571_v20  ;;  %v8381_v47 = vadd.f32 %v8308_v41, %v1704_v31 }
 0x10e   : > { %v8288_v24 = vpop.f32.mrb[17].mxu0  ;;  %v1120_v11 = vadd.f32 %v7178_v21, %v8281_v18  ;;  %v8353_v21 = vadd.f32 %v8308_v41, %v1702_v6  ;;  %10913 = vst [vmem:[#allocation7_spill] sm:$0xff] %v8377_v43  ;;  %v8386_v51 = vadd.f32 %v8308_v41, %v1707_v36 }
 0x10f   : > { %v7179_v28 = vpop.f32.mrb[18].mxu0  ;;  %v8389_v56 = vadd.f32 %v8308_v41, %v1705_v42  ;;  %v1954_v42 = vlaneseq }
 0x110   : > { %v1114_v33 = vpop.f32.mrb[19].mxu0  ;;  %10910 = vst [vmem:[#allocation4_spill] sm:$0xff] %v8353_v21  ;;  %v1123_v26 = vadd.f32 %v7179_v28, %v8281_v18  ;;  %v1576_v32 = vmax.f32 %v1120_v11, 0.0  ;;  %v8369_v28 = vadd.f32 %v8308_v41, %v1703_v17 }
 0x111   : > { %v1115_v34 = vadd.f32 %v8281_v18, %v1114_v33  ;;  %10914 = vst [vmem:[#allocation8_spill] sm:$0xff] %v8389_v56 }
 0x112   : > { %7285 = vmatmul.mubr.msk.bf16.gmra.mrb[124].mxu0 %vm816_vm1, %v7950_v25  ;;  %v1112_v25 = vadd.f32 %v8281_v18, %v8288_v24  ;;  %v1577_v45 = vmax.f32 %v1123_v26, 0.0 }
 0x113   : > { %v1575_v49 = vmax.f32 %v1115_v34, 0.0 }
 0x114   : > { %v1574_v44 = vmax.f32 %v1112_v25, 0.0  ;;  %v1711_v62 = vmul.f32 %v8295_v29, %v1577_v45 }
 0x115   : > { %v7182_v48 = vpop.f32.mrb[20].mxu0  ;;  %v1709_v3 = vmul.f32 %v8295_v29, %v1575_v49 }
 0x116   : > { %v1127_v53 = vpop.f32.mrb[21].mxu0  ;;  %v1136_v37 = vadd.f32 %v7182_v48, %v8281_v18  ;;  %v1710_v48 = vmul.f32 %v8295_v29, %v1576_v32  ;;  %v1708_v61 = vmul.f32 %v8295_v29, %v1574_v44 }
 0x117   : > { %v7183_v58 = vpop.f32.mrb[22].mxu0  ;;  %v1128_v38 = vadd.f32 %v8281_v18, %v1127_v53  ;;  %v8415_v34 = vadd.f32 %v8308_v41, %v1709_v3 }
 0x118   : > { %v1130_v63 = vpop.f32.mrb[23].mxu0  ;;  %v1139_v24 = vadd.f32 %v7183_v58, %v8281_v18  ;;  %v1580_v52 = vmax.f32 %v1136_v37, 0.0  ;;  %v8397_v2 = vadd.f32 %v8308_v41, %v1710_v48  ;;  %v8408_v26 = vadd.f32 %v8308_v41, %v1708_v61 }
 0x119   : > { %v1131_v33 = vadd.f32 %v8281_v18, %v1130_v63  ;;  %v1578_v53 = vmax.f32 %v1128_v38, 0.0 }
 0x11a   : > { %v1581_v55 = vmax.f32 %v1139_v24, 0.0  ;;  %v1714_v10 = vmul.f32 %v8295_v29, %v1580_v52 }
 0x11b   : > { %v1579_v57 = vmax.f32 %v1131_v33, 0.0  ;;  %v1712_v11 = vmul.f32 %v8295_v29, %v1578_v53 }
 0x11c   : > { %v1715_v15 = vmul.f32 %v8295_v29, %v1581_v55  ;;  %v8419_v38 = vadd.f32 %v8308_v41, %v1714_v10  ;;  %v8437_v55 = vshrl.u32 %v1954_v42, 7 }
 0x11d   : > { %v7186_v22 = vpop.f32.mrb[24].mxu0  ;;  %v1713_v20 = vmul.f32 %v8295_v29, %v1579_v57  ;;  %v8422_v24 = vadd.f32 %v8308_v41, %v1712_v11 }
 0x11e   : > { %v1143_v27 = vpop.f32.mrb[25].mxu0  ;;  %v1152_v46 = vadd.f32 %v7186_v22, %v8281_v18  ;;  %v8425_v33 = vadd.f32 %v8308_v41, %v1715_v15  ;;  %v1957_v3 = vadd.s32 16, %v8437_v55 }
 0x11f   : > { %v7187_v35 = vpop.f32.mrb[26].mxu0  ;;  %v1144_v50 = vadd.f32 %v8281_v18, %v1143_v27  ;;  %v8411_v27 = vadd.f32 %v8308_v41, %v1711_v62  ;;  %10915 = vst [vmem:[#allocation9_spill] sm:$0xff] %v8422_v24  ;;  %v8428_v44 = vadd.f32 %v8308_v41, %v1713_v20 }
 0x120   : > { %v1146_v39 = vpop.f32.mrb[27].mxu0  ;;  %v1155_v58 = vadd.f32 %v7187_v35, %v8281_v18  ;;  %v1584_v63 = vmax.f32 %v1152_v46, 0.0  ;;  %10916 = vst [vmem:[#allocation10_spill] sm:$0xff] %v8425_v33 }
 0x121   : > { %v1147_v59 = vadd.f32 %v8281_v18, %v1146_v39  ;;  %v1582_v6 = vmax.f32 %v1144_v50, 0.0  ;;  %10917 = vst [vmem:[#allocation11_spill] sm:$0xff] %v8428_v44 }
 0x122   : > { %v1585_v22 = vmax.f32 %v1155_v58, 0.0  ;;  %v1718_v31 = vmul.f32 %v8295_v29, %v1584_v63 }
 0x123   : > { %v1583_v23 = vmax.f32 %v1147_v59, 0.0  ;;  %v1716_v35 = vmul.f32 %v8295_v29, %v1582_v6 }
 0x124   : > { %v1719_v45 = vmul.f32 %v8295_v29, %v1585_v22  ;;  %v8433_v49 = vadd.f32 %v8308_v41, %v1718_v31 }
 0x125   : > { %v7190_v60 = vpop.f32.mrb[28].mxu0  ;;  %v1717_v46 = vmul.f32 %v8295_v29, %v1583_v23  ;;  %v8440_v57 = vadd.f32 %v8308_v41, %v1716_v35 }
 0x126   : > { %v1168_v0 = vadd.f32 %v7190_v60, %v8281_v18  ;;  %v1159_v1 = vpop.f32.mrb[29].mxu0  ;;  %v8449_v6 = vadd.f32 %v8308_v41, %v1719_v45  ;;  %v2021_v45 = vand.u32 15, %v1957_v3 }
 0x127   : > { %v1160_v7 = vadd.f32 %v8281_v18, %v1159_v1  ;;  %v7191_v9 = vpop.f32.mrb[30].mxu0 }
 0x128   : > { %v1171_v17 = vadd.f32 %v7191_v9, %v8281_v18  ;;  %v1162_v19 = vpop.f32.mrb[31].mxu0  ;;  %v1588_v32 = vmax.f32 %v1168_v0, 0.0  ;;  %10918 = vst [vmem:[#allocation12_spill] sm:$0xff] %v8449_v6  ;;  %vm8506_vm4 = vcmp.ge.s32.totalorder %v2021_v45, 1 }
 0x129   : > { %v1163_v25 = vadd.f32 %v8281_v18, %v1162_v19  ;;  %v1586_v36 = vmax.f32 %v1160_v7, 0.0  ;;  %v8452_v7 = vadd.f32 %v8308_v41, %v1717_v46  ;;  %v1989_v19 = vshra.s32 %v1957_v3, 4 }
 0x12a   : > { %v1589_v37 = vmax.f32 %v1171_v17, 0.0  ;;  %v1722_v50 = vmul.f32 %v8295_v29, %v1588_v32  ;;  %v1987_v46 = vshra.s32 %v8437_v55, 4 }
 0x12b   : > { %v1587_v39 = vmax.f32 %v1163_v25, 0.0  ;;  %v1720_v58 = vmul.f32 %v8295_v29, %v1586_v36  ;;  %v1958_v36 = vadd.s32 24, %v8437_v55  ;;  %vm8485_vm2 = vcmp.ge.s32.totalorder %v1989_v19, 1 }
 0x12c   : > { %v1723_v59 = vmul.f32 %v8295_v29, %v1589_v37  ;;  %v8456_v11 = vadd.f32 %v8308_v41, %v1722_v50  ;;  %vm8495_vm3 = vcmp.le.s32.totalorder %v1989_v19, 14  ;;  %vm8511_vm5 = vcmp.ge.s32.totalorder %v1987_v46, 1 }
 0x12d   : > { %v7194_v48 = vpop.f32.mrb[32].mxu0  ;;  %v1721_v62 = vmul.f32 %v8295_v29, %v1587_v39  ;;  %v8460_v20 = vadd.f32 %v8308_v41, %v1720_v58  ;;  %vm8515_vm6 = vcmp.le.s32.totalorder %v1987_v46, 14  ;;  %vm2117_vm8 = vmand %vm8485_vm2, %vm8495_vm3 }
 0x12e   : > { %v1184_v52 = vadd.f32 %v7194_v48, %v8281_v18  ;;  %v1175_v53 = vpop.f32.mrb[33].mxu0  ;;  %v8463_v22 = vadd.f32 %v8308_v41, %v1723_v59  ;;  %vm2115_vm11 = vmand %vm8511_vm5, %vm8515_vm6 }
 0x12f   : > { %v1176_v60 = vadd.f32 %v8281_v18, %v1175_v53  ;;  %v7195_v61 = vpop.f32.mrb[34].mxu0  ;;  %v8467_v31 = vadd.f32 %v8308_v41, %v1721_v62  ;;  %vm8579_vm14 = vmand %vm2117_vm8, %vm8506_vm4 }
 0x130   : > { %v1592_v63 = vmax.f32 %v1184_v52, 0.0  ;;  %v1187_v0 = vadd.f32 %v7195_v61, %v8281_v18  ;;  %v1178_v1 = vpop.f32.mrb[35].mxu0 }
 0x131   : > { %v1590_v9 = vmax.f32 %v1176_v60, 0.0  ;;  %v1179_v10 = vadd.f32 %v8281_v18, %v1178_v1 }
 0x132   : > { %v1726_v15 = vmul.f32 %v8295_v29, %v1592_v63  ;;  %v1593_v17 = vmax.f32 %v1187_v0, 0.0 }
 0x133   : > { %v1724_v23 = vmul.f32 %v8295_v29, %v1590_v9  ;;  %v1591_v25 = vmax.f32 %v1179_v10, 0.0  ;;  %v2019_v10 = vand.u32 15, %v8437_v55 }
 0x134   : > { %v8470_v32 = vadd.f32 %v8308_v41, %v1726_v15  ;;  %v1727_v35 = vmul.f32 %v8295_v29, %v1593_v17 }
 0x135   : > { %v8475_v37 = vadd.f32 %v8308_v41, %v1724_v23  ;;  %v1725_v39 = vmul.f32 %v8295_v29, %v1591_v25  ;;  %v7198_v42 = vpop.f32.mrb[36].mxu0  ;;  %vm8524_vm7 = vcmp.ge.s32.totalorder %v2019_v10, 1 }
 0x136   : > { %v8482_v50 = vadd.f32 %v8308_v41, %v1727_v35  ;;  %v1200_v52 = vadd.f32 %v7198_v42, %v8281_v18  ;;  %v1191_v53 = vpop.f32.mrb[37].mxu0  ;;  %vm8593_vm15 = vmand %vm2115_vm11, %vm8524_vm7 }
 0x137   : > { %v8492_v60 = vadd.f32 %v8308_v41, %v1725_v39  ;;  %v1192_v61 = vadd.f32 %v8281_v18, %v1191_v53  ;;  %v7199_v62 = vpop.f32.mrb[38].mxu0 }
 0x138   : > { %v1596_v1 = vmax.f32 %v1200_v52, 0.0  ;;  %v1203_v3 = vadd.f32 %v7199_v62, %v8281_v18  ;;  %v1194_v9 = vpop.f32.mrb[39].mxu0  ;;  %v2022_v62 = vand.u32 15, %v1958_v36 }
 0x139   : > { %v1594_v17 = vmax.f32 %v1192_v61, 0.0  ;;  %v1195_v23 = vadd.f32 %v8281_v18, %v1194_v9  ;;  %v1990_v61 = vshra.s32 %v1958_v36, 4 }
 0x13a   : > { %v1730_v25 = vmul.f32 %v8295_v29, %v1596_v1  ;;  %v1597_v35 = vmax.f32 %v1203_v3, 0.0  ;;  %v1956_v3 = vadd.s32 8, %v8437_v55  ;;  %vm8555_vm12 = vcmp.le.s32.totalorder %v2022_v62, 14 }
 0x13b   : > { %v1728_v52 = vmul.f32 %v8295_v29, %v1594_v17  ;;  %v1595_v53 = vmax.f32 %v1195_v23, 0.0  ;;  %vm8537_vm9 = vcmp.ge.s32.totalorder %v1990_v61, 1  ;;  %vm8541_vm10 = vcmp.le.s32.totalorder %v1990_v61, 14 }
 0x13c   : > { %v8521_v45 = vadd.f32 %v8308_v41, %v1730_v25  ;;  %v1731_v9 = vmul.f32 %v8295_v29, %v1597_v35  ;;  %vm2118_vm13 = vmand %vm8537_vm9, %vm8541_vm10  ;;  %v2020_v63 = vand.u32 15, %v1956_v3 }
 0x13d   : > { %v8530_v46 = vadd.f32 %v8308_v41, %v1728_v52  ;;  %v1729_v15 = vmul.f32 %v8295_v29, %v1595_v53  ;;  %v7202_v17 = vpop.f32.mrb[40].mxu0  ;;  %vm8600_vm0 = vmand %vm2118_vm13, %vm8555_vm12 }
 0x13e   : > { %10929 = vst [vmem:[#allocation13_spill] sm:$0xff] %v8521_v45  ;;  %v8548_v25 = vadd.f32 %v8308_v41, %v1731_v9  ;;  %v1216_v35 = vadd.f32 %v7202_v17, %v8281_v18  ;;  %v1207_v52 = vpop.f32.mrb[41].mxu0  ;;  %v1988_v17 = vshra.s32 %v1956_v3, 4  ;;  %vm8617_vm4 = vcmp.le.s32.totalorder %v2020_v63, 14 }
 0x13f   : > { %v8562_v23 = vadd.f32 %v8308_v41, %v1729_v15  ;;  %v1208_v9 = vadd.f32 %v8281_v18, %v1207_v52  ;;  %v7203_v0 = vpop.f32.mrb[42].mxu0  ;;  %v1959_v15 = vadd.s32 32, %v8437_v55  ;;  %v1962_v52 = vadd.s32 56, %v8437_v55 }
 0x140   : > { %v1600_v59 = vmax.f32 %v1216_v35, 0.0  ;;  %v1219_v48 = vadd.f32 %v7203_v0, %v8281_v18  ;;  %v1210_v45 = vpop.f32.mrb[43].mxu0  ;;  %vm8604_vm1 = vcmp.ge.s32.totalorder %v1988_v17, 1  ;;  %vm8608_vm2 = vcmp.le.s32.totalorder %v1988_v17, 14 }
 0x141   : > { %v1598_v10 = vmax.f32 %v1208_v9, 0.0  ;;  %v1211_v35 = vadd.f32 %v8281_v18, %v1210_v45  ;;  %vm2116_vm3 = vmand %vm8604_vm1, %vm8608_vm2  ;;  %v10868_v9 = vmov 0.0   ;;  %v2023_v21 = vand.u32 15, %v1959_v15 }
 0x142   : > { %v1734_v0 = vmul.f32 %v8295_v29, %v1600_v59  ;;  %v1601_v19 = vmax.f32 %v1219_v48, 0.0  ;;  %v1961_v59 = vadd.s32 48, %v8437_v55  ;;  %v8629_v17 = vsel %vm8579_vm14, 1.0, %v10868_v9  ;;  %vm2244_vm5 = vmand %vm2116_vm3, %vm8617_vm4 }
 0x143   : > { %v1732_v42 = vmul.f32 %v8295_v29, %v1598_v10  ;;  %v1599_v1 = vmax.f32 %v1211_v35, 0.0  ;;  %10951 = vst [vmem:[#allocation15_spill] sm:$0xff] %v8629_v17  ;;  %v8634_v10 = vsel %vm8593_vm15, 1.0, %v10868_v9  ;;  %vm8714_vm11 = vcmp.ge.s32.totalorder %v2023_v21, 1 }
 0x144   : > { %v8623_v3 = vadd.f32 %v8308_v41, %v1734_v0  ;;  %v1735_v53 = vmul.f32 %v8295_v29, %v1601_v19  ;;  %10952 = vst [vmem:[#allocation16_spill] sm:$0xff] %v8634_v10  ;;  %v8643_v19 = vsel %vm8600_vm0, 1.0, %v10868_v9  ;;  %v1993_v61 = vshra.s32 %v1961_v59, 4 }
 0x145   : > { %v8637_v35 = vadd.f32 %v8308_v41, %v1732_v42  ;;  %v1733_v63 = vmul.f32 %v8295_v29, %v1599_v1  ;;  %v7206_v0 = vpop.f32.mrb[44].mxu0  ;;  %10954 = vst [vmem:[#allocation18_spill] sm:$0xff] %v8643_v19  ;;  %v2025_v19 = vand.u32 15, %v1961_v59 }
 0x146   : > { %10950 = vst [vmem:[#allocation14_spill] sm:$0xff] %v8623_v3  ;;  %v8649_v58 = vadd.f32 %v8308_v41, %v1735_v53  ;;  %v1232_v62 = vadd.f32 %v7206_v0, %v8281_v18  ;;  %v1223_v42 = vpop.f32.mrb[45].mxu0  ;;  %v1991_v3 = vshra.s32 %v1959_v15, 4  ;;  %vm8677_vm6 = vcmp.ge.s32.totalorder %v1993_v61, 1 }
 0x147   : > { %10953 = vst [vmem:[#allocation17_spill] sm:$0xff] %v8637_v35  ;;  %v8663_v36 = vadd.f32 %v8308_v41, %v1733_v63  ;;  %v1224_v53 = vadd.f32 %v8281_v18, %v1223_v42  ;;  %v7207_v0 = vpop.f32.mrb[46].mxu0  ;;  %v10957_v63 = vmov 0.0   ;;  %vm8681_vm7 = vcmp.le.s32.totalorder %v1993_v61, 14 }
 0x148   : > { %10955 = vst [vmem:[#allocation19_spill] sm:$0xff] %v8649_v58  ;;  %v1604_v45 = vmax.f32 %v1232_v62, 0.0  ;;  %v1235_v39 = vadd.f32 %v7207_v0, %v8281_v18  ;;  %v1226_v9 = vpop.f32.mrb[47].mxu0  ;;  %v8673_v35 = vsel %vm2244_vm5, 1.0, %v10957_v63  ;;  %vm8692_vm8 = vcmp.ge.s32.totalorder %v2025_v19, 1  ;;  %vm2121_vm14 = vmand %vm8677_vm6, %vm8681_vm7 }
 0x149   : > { %10956 = vst [vmem:[#allocation20_spill] sm:$0xff] %v8663_v36  ;;  %v1602_v17 = vmax.f32 %v1224_v53, 0.0  ;;  %v1227_v1 = vadd.f32 %v8281_v18, %v1226_v9  ;;  %10958 = vst [vmem:[#allocation21_spill] sm:$0xff] %v8673_v35  ;;  %v7951_v9 = vld [vmem:[%s10862_s5 + $0x10] sm:$0xff]   ;;  %vm8700_vm9 = vcmp.ge.s32.totalorder %v1991_v3, 1  ;;  %vm8704_vm10 = vcmp.le.s32.totalorder %v1991_v3, 14 }
 0x14a   : > { %v1738_v42 = vmul.f32 %v8295_v29, %v1604_v45  ;;  %v1605_v30 = vmax.f32 %v1235_v39, 0.0  ;;  %7288 = vmatprep.subr.bf16.mxu0 %v7951_v9  ;;  %vm2119_vm0 = vmand %vm8700_vm9, %vm8704_vm10 }
 0x14b   : > { %v1736_v62 = vmul.f32 %v8295_v29, %v1602_v17  ;;  %v1603_v48 = vmax.f32 %v1227_v1, 0.0  ;;  %v1994_v1 = vshra.s32 %v1962_v52, 4  ;;  %7289 = vmatpush3.bf16.msra.mxu0 %v7951_v9  ;;  %vm8772_vm1 = vmand %vm2121_vm14, %vm8692_vm8 }
 0x14c   : > { %v8689_v53 = vadd.f32 %v8308_v41, %v1738_v42  ;;  %v1739_v15 = vmul.f32 %v8295_v29, %v1605_v30  ;;  %vm8803_vm4 = vmand %vm2119_vm0, %vm8714_vm11 }
 0x14d   : > { %v8697_v45 = vadd.f32 %v8308_v41, %v1736_v62  ;;  %v1737_v61 = vmul.f32 %v8295_v29, %v1603_v48  ;;  %v7210_v39 = vpop.f32.mrb[48].mxu0  ;;  %vm8727_vm12 = vcmp.ge.s32.totalorder %v1994_v1, 1  ;;  %vm8734_vm13 = vcmp.le.s32.totalorder %v1994_v1, 14 }
 0x14e   : > { %10963 = vst [vmem:[#allocation22_spill] sm:$0xff] %v8689_v53  ;;  %v8711_v19 = vadd.f32 %v8308_v41, %v1739_v15  ;;  %v1248_v62 = vadd.f32 %v7210_v39, %v8281_v18  ;;  %v1239_v35 = vpop.f32.mrb[49].mxu0  ;;  %v2026_v53 = vand.u32 15, %v1962_v52  ;;  %v1965_v15 = vadd.s32 80, %v8437_v55  ;;  %vm2122_vm2 = vmand %vm8727_vm12, %vm8734_vm13 }
 0x14f   : > { %v8721_v36 = vadd.f32 %v8308_v41, %v1737_v61  ;;  %v1240_v40 = vadd.f32 %v8281_v18, %v1239_v35  ;;  %v7211_v30 = vpop.f32.mrb[50].mxu0  ;;  %v8751_v1 = vadd.s32 64, %v8437_v55  ;;  %v8842_v35 = vsel %vm8803_vm4, 1.0, %v10957_v63 }
 0x150   : > { %10970 = vst [vmem:[#allocation23_spill] sm:$0xff] %v8711_v19  ;;  %v1608_v39 = vmax.f32 %v1248_v62, 0.0  ;;  %v1251_v21 = vadd.f32 %v7211_v30, %v8281_v18  ;;  %v1242_v43 = vpop.f32.mrb[51].mxu0  ;;  %v1960_v30 = vadd.s32 40, %v8437_v55  ;;  %vm8746_vm15 = vcmp.le.s32.totalorder %v2026_v53, 14  ;;  %10992 = vst [vmem:[#allocation27_spill] sm:$0xff] %v8842_v35 }
 0x151   : > { %10973 = vst [vmem:[#allocation24_spill] sm:$0xff] %v8721_v36  ;;  %v1606_v61 = vmax.f32 %v1240_v40, 0.0  ;;  %v1243_v3 = vadd.f32 %v8281_v18, %v1242_v43  ;;  %v2029_v19 = vand.u32 15, %v1965_v15  ;;  %vm2250_vm8 = vmand %vm2122_vm2, %vm8746_vm15 }
 0x152   : > { %v1742_v52 = vmul.f32 %v8295_v29, %v1608_v39  ;;  %v1609_v62 = vmax.f32 %v1251_v21, 0.0  ;;  %v1992_v36 = vshra.s32 %v1960_v30, 4 }
 0x153   : > { %v1740_v40 = vmul.f32 %v8295_v29, %v1606_v61  ;;  %v1607_v9 = vmax.f32 %v1243_v3, 0.0  ;;  %v2024_v61 = vand.u32 15, %v1960_v30  ;;  %vm2157_vm13 = vcmp.ge.s32.totalorder %v2029_v19, 1 }
 0x154   : > { %v8754_v39 = vadd.f32 %v8308_v41, %v1742_v52  ;;  %v1743_v21 = vmul.f32 %v8295_v29, %v1609_v62  ;;  %v1997_v62 = vshra.s32 %v1965_v15, 4  ;;  %vm8786_vm3 = vcmp.ge.s32.totalorder %v1992_v36, 1 }
 0x155   : > { %v8762_v53 = vadd.f32 %v8308_v41, %v1740_v40  ;;  %v1741_v3 = vmul.f32 %v8295_v29, %v1607_v9  ;;  %v7214_v56 = vpop.f32.mrb[52].mxu0  ;;  %vm8807_vm5 = vcmp.le.s32.totalorder %v1992_v36, 14  ;;  %vm2216_vm7 = vcmp.le.s32.totalorder %v2024_v61, 14 }
 0x156   : > { %10980 = vst [vmem:[#allocation25_spill] sm:$0xff] %v8754_v39  ;;  %v8779_v40 = vadd.f32 %v8308_v41, %v1743_v21  ;;  %v1264_v9 = vadd.f32 %v7214_v56, %v8281_v18  ;;  %v1255_v17 = vpop.f32.mrb[53].mxu0  ;;  %vm2120_vm6 = vmand %vm8786_vm3, %vm8807_vm5  ;;  %vm8828_vm9 = vcmp.ge.s32.totalorder %v1997_v62, 1  ;;  %vm2093_vm11 = vcmp.le.s32.totalorder %v1997_v62, 14 }
 0x157   : > { %v8793_v15 = vadd.f32 %v8308_v41, %v1741_v3  ;;  %v1256_v21 = vadd.f32 %v8281_v18, %v1255_v17  ;;  %v7215_v30 = vpop.f32.mrb[54].mxu0  ;;  %vm2248_vm10 = vmand %vm2120_vm6, %vm2216_vm7 }
 0x158   : > { %v1612_v17 = vmax.f32 %v1264_v9, 0.0  ;;  %v1267_v59 = vadd.f32 %v7215_v30, %v8281_v18  ;;  %v1258_v48 = vpop.f32.mrb[55].mxu0  ;;  %v8836_v9 = vsel %vm8772_vm1, 1.0, %v10957_v63  ;;  %vm2125_vm12 = vmand %vm8828_vm9, %vm2093_vm11 }
 0x159   : > { %v1610_v36 = vmax.f32 %v1256_v21, 0.0  ;;  %v1259_v42 = vadd.f32 %v8281_v18, %v1258_v48  ;;  %10991 = vst [vmem:[#allocation26_spill] sm:$0xff] %v8836_v9  ;;  %vm8853_vm14 = vmand %vm2125_vm12, %vm2157_vm13  ;;  %v1966_v21 = vadd.s32 88, %v8437_v55  ;;  %v8863_v48 = vsel %vm2248_vm10, 1.0, %v10957_v63 }
 0x15a   : > { %v1746_v61 = vmul.f32 %v8295_v29, %v1612_v17  ;;  %v1613_v30 = vmax.f32 %v1267_v59, 0.0  ;;  %v8851_v59 = vsel %vm2250_vm8, 1.0, %v10957_v63  ;;  %10997 = vst [vmem:[#allocation30_spill] sm:$0xff] %v8863_v48 }
 0x15b   : > { %v1744_v58 = vmul.f32 %v8295_v29, %v1610_v36  ;;  %v1611_v43 = vmax.f32 %v1259_v42, 0.0  ;;  %10993 = vst [vmem:[#allocation28_spill] sm:$0xff] %v8851_v59  ;;  %v1995_v36 = vshra.s32 %v8751_v1, 4  ;;  %v1998_v9 = vshra.s32 %v1966_v21, 4 }
 0x15c   : > { %v8847_v0 = vadd.f32 %v8308_v41, %v1746_v61  ;;  %v1747_v52 = vmul.f32 %v8295_v29, %v1613_v30 }
 0x15d   : > { %v8859_v56 = vadd.f32 %v8308_v41, %v1744_v58  ;;  %v1745_v17 = vmul.f32 %v8295_v29, %v1611_v43  ;;  %v7218_v19 = vpop.f32.mrb[56].mxu0  ;;  %v2027_v58 = vand.u32 15, %v8751_v1  ;;  %v7954_v43 = vld [vmem:[%s10862_s5 + $0x18] sm:$0xff]   ;;  %vm8893_vm15 = vcmp.ge.s32.totalorder %v1995_v36, 1 }
 0x15e   : > { %v8869_v39 = vadd.f32 %v8308_v41, %v1747_v52  ;;  %v1280_v61 = vadd.f32 %v7218_v19, %v8281_v18  ;;  %v1271_v30 = vpop.f32.mrb[57].mxu0  ;;  %v8885_v52 = vsel %vm8853_vm14, 1.0, %v10957_v63  ;;  %7290 = vmatprep.subr.bf16.mxu0 %v7954_v43  ;;  %vm8898_vm0 = vcmp.le.s32.totalorder %v1995_v36, 14 }
 0x15f   : > { %10996 = vst [vmem:[#allocation29_spill] sm:$0xff] %v8859_v56  ;;  %v8879_v3 = vadd.f32 %v8308_v41, %v1745_v17  ;;  %v1272_v42 = vadd.f32 %v8281_v18, %v1271_v30  ;;  %v7219_v48 = vpop.f32.mrb[58].mxu0  ;;  %11000 = vst [vmem:[#allocation33_spill] sm:$0xff] %v8885_v52  ;;  %7291 = vmatpush3.bf16.msra.mxu0 %v7954_v43  ;;  %vm8903_vm1 = vcmp.ge.s32.totalorder %v2027_v58, 1  ;;  %vm8912_vm2 = vcmp.ge.s32.totalorder %v1998_v9, 1 }
 0x160   : > { %10998 = vst [vmem:[#allocation31_spill] sm:$0xff] %v8869_v39  ;;  %v1616_v19 = vmax.f32 %v1280_v61, 0.0  ;;  %v1283_v59 = vadd.f32 %v7219_v48, %v8281_v18  ;;  %v1274_v35 = vpop.f32.mrb[59].mxu0  ;;  %v2030_v48 = vand.u32 15, %v1966_v21  ;;  %vm8916_vm3 = vcmp.le.s32.totalorder %v1998_v9, 14  ;;  %vm2123_vm5 = vmand %vm8893_vm15, %vm8898_vm0 }
 0x161   : > { %10999 = vst [vmem:[#allocation32_spill] sm:$0xff] %v8879_v3  ;;  %v1614_v10 = vmax.f32 %v1272_v42, 0.0  ;;  %v1275_v30 = vadd.f32 %v8281_v18, %v1274_v35  ;;  %v1964_v35 = vadd.s32 72, %v8437_v55  ;;  %vm8963_vm8 = vmand %vm2123_vm5, %vm8903_vm1 }
 0x162   : > { %v1750_v62 = vmul.f32 %v8295_v29, %v1616_v19  ;;  %v1617_v1 = vmax.f32 %v1283_v59, 0.0  ;;  %vm8924_vm4 = vcmp.le.s32.totalorder %v2030_v48, 14  ;;  %vm2126_vm10 = vmand %vm8912_vm2, %vm8916_vm3 }
 0x163   : > { %v1748_v52 = vmul.f32 %v8295_v29, %v1614_v10  ;;  %v1615_v39 = vmax.f32 %v1275_v30, 0.0  ;;  %v1996_v30 = vshra.s32 %v1964_v35, 4  ;;  %v2028_v24 = vand.u32 15, %v1964_v35  ;;  %vm9028_vm0 = vmand %vm2126_vm10, %vm8924_vm4 }
 0x164   : > { %v8909_v17 = vadd.f32 %v8308_v41, %v1750_v62  ;;  %v1751_v43 = vmul.f32 %v8295_v29, %v1617_v1 }
 0x165   : > { %v8921_v10 = vadd.f32 %v8308_v41, %v1748_v52  ;;  %v1749_v36 = vmul.f32 %v8295_v29, %v1615_v39  ;;  %v7222_v58 = vpop.f32.mrb[60].mxu0  ;;  %v1969_v52 = vadd.s32 112, %v8437_v55  ;;  %vm8948_vm6 = vcmp.ge.s32.totalorder %v1996_v30, 1 }
 0x166   : > { %11007 = vst [vmem:[#allocation34_spill] sm:$0xff] %v8909_v17  ;;  %v8931_v62 = vadd.f32 %v8308_v41, %v1751_v43  ;;  %v1296_v9 = vadd.f32 %v7222_v58, %v8281_v18  ;;  %v1287_v3 = vpop.f32.mrb[61].mxu0  ;;  %vm8955_vm7 = vcmp.le.s32.totalorder %v1996_v30, 14  ;;  %vm8967_vm9 = vcmp.le.s32.totalorder %v2028_v24, 14 }
 0x167   : > { %11012 = vst [vmem:[#allocation35_spill] sm:$0xff] %v8921_v10  ;;  %v8938_v48 = vadd.f32 %v8308_v41, %v1749_v36  ;;  %v1288_v44 = vadd.f32 %v8281_v18, %v1287_v3  ;;  %v7223_v33 = vpop.f32.mrb[62].mxu0  ;;  %v2001_v1 = vshra.s32 %v1969_v52, 4  ;;  %v2033_v56 = vand.u32 15, %v1969_v52  ;;  %vm2124_vm13 = vmand %vm8948_vm6, %vm8955_vm7 }
 0x168   : > { %11015 = vst [vmem:[#allocation36_spill] sm:$0xff] %v8931_v62  ;;  %v1620_v43 = vmax.f32 %v1296_v9, 0.0  ;;  %v1299_v17 = vadd.f32 %v7223_v33, %v8281_v18  ;;  %v1290_v58 = vpop.f32.mrb[63].mxu0  ;;  %v1967_v30 = vadd.s32 96, %v8437_v55  ;;  %vm9042_vm1 = vmand %vm2124_vm13, %vm8967_vm9 }
 0x169   : > { %11016 = vst [vmem:[#allocation37_spill] sm:$0xff] %v8938_v48  ;;  %v1618_v35 = vmax.f32 %v1288_v44, 0.0  ;;  %v1291_v36 = vadd.f32 %v8281_v18, %v1290_v58  ;;  %vm8980_vm11 = vcmp.ge.s32.totalorder %v2001_v1, 1  ;;  %vm8984_vm12 = vcmp.le.s32.totalorder %v2001_v1, 14 }
 0x16a   : > { %v1754_v33 = vmul.f32 %v8295_v29, %v1620_v43  ;;  %v1621_v61 = vmax.f32 %v1299_v17, 0.0  ;;  %vm8996_vm14 = vcmp.ge.s32.totalorder %v2033_v56, 1  ;;  %vm2129_vm15 = vmand %vm8980_vm11, %vm8984_vm12  ;;  %v2031_v3 = vand.u32 15, %v1967_v30 }
 0x16b   : > { %v1752_v62 = vmul.f32 %v8295_v29, %v1618_v35  ;;  %v1619_v6 = vmax.f32 %v1291_v36, 0.0  ;;  %vm2193_vm3 = vmand %vm2129_vm15, %vm8996_vm14  ;;  %v1970_v36 = vadd.s32 120, %v8437_v55 }
 0x16c   : > { %v8973_v43 = vadd.f32 %v8308_v41, %v1754_v33  ;;  %v1755_v17 = vmul.f32 %v8295_v29, %v1621_v61  ;;  %v1999_v33 = vshra.s32 %v1967_v30, 4  ;;  %vm2159_vm6 = vcmp.ge.s32.totalorder %v2031_v3, 1 }
 0x16d   : > { %v8989_v52 = vadd.f32 %v8308_v41, %v1752_v62  ;;  %v1753_v58 = vmul.f32 %v8295_v29, %v1619_v6  ;;  %v7226_v35 = vpop.f32.mrb[64].mxu0  ;;  %v2002_v59 = vshra.s32 %v1970_v36, 4  ;;  %v2034_v56 = vand.u32 15, %v1970_v36  ;;  %v9126_v36 = vld [vmem:[%s10859_s2] ss:$0 sm:$0xff] }
 0x16e   : > { %11025 = vst [vmem:[#allocation38_spill] sm:$0xff] %v8973_v43  ;;  %v9003_v61 = vadd.f32 %v8308_v41, %v1755_v17  ;;  %v1312_v62 = vadd.f32 %v7226_v35, %v8281_v18  ;;  %v1303_v6 = vpop.f32.mrb[65].mxu0  ;;  %v9019_v17 = vsel %vm8963_vm8, 1.0, %v10957_v63  ;;  %vm9046_vm2 = vcmp.ge.s32.totalorder %v1999_v33, 1 }
 0x16f   : > { %v9013_v48 = vadd.f32 %v8308_v41, %v1753_v58  ;;  %v1304_v1 = vadd.f32 %v8281_v18, %v1303_v6  ;;  %v7227_v43 = vpop.f32.mrb[66].mxu0  ;;  %11033 = vst [vmem:[#allocation40_spill] sm:$0xff] %v9019_v17  ;;  %vm9060_vm4 = vcmp.le.s32.totalorder %v1999_v33, 14  ;;  %v9074_v33 = vsel %vm9028_vm0, 1.0, %v10957_v63 }
 0x170   : > { %v1624_v35 = vmax.f32 %v1312_v62, 0.0  ;;  %v1315_v6 = vadd.f32 %v7227_v43, %v8281_v18  ;;  %v1306_v10 = vpop.f32.mrb[67].mxu0  ;;  %vm2127_vm5 = vmand %vm9046_vm2, %vm9060_vm4  ;;  %11042 = vst [vmem:[#allocation41_spill] sm:$0xff] %v9074_v33  ;;  %vm9141_vm8 = vcmp.ge.s32.totalorder %v2002_v59, 1  ;;  %vm9145_vm9 = vcmp.le.s32.totalorder %v2002_v59, 14 }
 0x171   : > { %11032 = vst [vmem:[#allocation39_spill] sm:$0xff] %v9013_v48  ;;  %v1622_v43 = vmax.f32 %v1304_v1, 0.0  ;;  %v1307_v62 = vadd.f32 %v8281_v18, %v1306_v10  ;;  %v1968_v1 = vadd.s32 104, %v8437_v55  ;;  %v9085_v10 = vsel %vm9042_vm1, 1.0, %v10957_v63  ;;  %vm9097_vm7 = vmand %vm2127_vm5, %vm2159_vm6 }
 0x172   : > { %v1758_v9 = vmul.f32 %v8295_v29, %v1624_v35  ;;  %v1625_v44 = vmax.f32 %v1315_v6, 0.0  ;;  %v7959_v35 = vld [vmem:[%s10862_s5 + $0x20] sm:$0xff]   ;;  %11043 = vst [vmem:[#allocation42_spill] sm:$0xff] %v9085_v10  ;;  %vm9155_vm10 = vcmp.le.s32.totalorder %v2034_v56, 14  ;;  %v7962_v56 = vld [vmem:[%s10862_s5 + $0x28] sm:$0xff]   ;;  %vm2130_vm14 = vmand %vm9141_vm8, %vm9145_vm9 }
 0x173   : > { %v1756_v42 = vmul.f32 %v8295_v29, %v1622_v43  ;;  %v1623_v24 = vmax.f32 %v1307_v62, 0.0  ;;  %v9088_v43 = vsel %vm2193_vm3, 1.0, %v10957_v63  ;;  %7612 = vmatprep.subr.bf16.mxu1 %v7959_v35  ;;  %vm9242_vm2 = vmand %vm2130_vm14, %vm9155_vm10 }
 0x174   : > { %v1892_v6 = vadd.f32 %v8308_v41, %v1758_v9  ;;  %v1759_v3 = vmul.f32 %v8295_v29, %v1625_v44  ;;  %11044 = vst [vmem:[#allocation43_spill] sm:$0xff] %v9088_v43  ;;  %v9102_v44 = vadd.s32 144, %v8437_v55  ;;  %7614 = vmatpush3.bf16.msra.mxu1 %v7959_v35  ;;  %v11048_v43 = vmax.f32 %v8327_v4, %v8475_v37 }
 0x175   : > { %v1890_v30 = vadd.f32 %v8308_v41, %v1756_v42  ;;  %v1757_v62 = vmul.f32 %v8295_v29, %v1623_v24  ;;  %v7230_v19 = vpop.f32.mrb[68].mxu0  ;;  %v11047_v42 = vmax.f32 %v8316_v54, %v8470_v32  ;;  %v2000_v54 = vshra.s32 %v1968_v1, 4  ;;  %7613 = vmatprep.subr.bf16.mxu1 %v7962_v56 }
 0x176   : > { %v1893_v24 = vadd.f32 %v8308_v41, %v1759_v3  ;;  %v1328_v21 = vadd.f32 %v7230_v19, %v8281_v18  ;;  %v1319_v39 = vpop.f32.mrb[69].mxu0  ;;  %v11049_v32 = vmax.f32 %v8330_v5, %v8482_v50  ;;  %v11050_v35 = vmax.f32 %v8334_v8, %v8492_v60  ;;  %v9152_v8 = vld [vmem:[%s10860_s3] ss:$0 sm:$0xff] }
 0x177   : > { %v9107_v58 = vmax.f32 %v11047_v42, %v1892_v6  ;;  %v9114_v10 = vmax.f32 %v11048_v43, %v1890_v30  ;;  %v1891_v33 = vadd.f32 %v8308_v41, %v1757_v62  ;;  %v1320_v17 = vadd.f32 %v8281_v18, %v1319_v39  ;;  %v7231_v48 = vpop.f32.mrb[70].mxu0 }
 0x178   : > { %v9121_v6 = vmax.f32 %v11049_v32, %v1893_v24  ;;  %v1628_v19 = vmax.f32 %v1328_v21, 0.0  ;;  %v1331_v4 = vadd.f32 %v9126_v36, %v7231_v48  ;;  %v1322_v37 = vpop.f32.mrb[71].mxu0  ;;  %v9132_v18 = vsel %vm9097_vm7, 1.0, %v10957_v63  ;;  %7615 = vmatpush3.bf16.msra.mxu1 %v7962_v56 }
 0x179   : > { %v9137_v5 = vmax.f32 %v11050_v35, %v1891_v33  ;;  %v1626_v50 = vmax.f32 %v1320_v17, 0.0  ;;  %v1323_v3 = vadd.f32 %v9126_v36, %v1322_v37  ;;  %v2032_v43 = vand.u32 15, %v1968_v1 }
 0x17a   : > { %v1762_v30 = vmul.f32 %v8295_v29, %v1628_v19  ;;  %v1629_v62 = vmax.f32 %v1331_v4, 0.0  ;;  %vm9159_vm11 = vcmp.ge.s32.totalorder %v2000_v54, 1  ;;  %vm9165_vm12 = vcmp.le.s32.totalorder %v2000_v54, 14  ;;  %v11063_v4 = vld [vmem:[#allocation13_spill] sm:$0xff]  ;;  %v7963_v29 = vld [vmem:[%s10862_s5 + $0x30] sm:$0xff]  }
 0x17b   : > { %v1760_v60 = vmul.f32 %v9152_v8, %v1626_v50  ;;  %v1627_v17 = vmax.f32 %v1323_v3, 0.0  ;;  %v2005_v24 = vshra.s32 %v9102_v44, 4  ;;  %vm9175_vm13 = vcmp.le.s32.totalorder %v2032_v43, 14  ;;  %v9188_v50 = vld [vmem:[%s10861_s4] ss:$0 sm:$0xff]  ;;  %vm2128_vm15 = vmand %vm9159_vm11, %vm9165_vm12  ;;  %7396 = vmatprep.subr.bf16.mxu1 %v7963_v29 }
 0x17c   : > { %v1896_v1 = vadd.f32 %v8308_v41, %v1762_v30  ;;  %v1763_v59 = vmul.f32 %v9152_v8, %v1629_v62  ;;  %v2037_v54 = vand.u32 15, %v9102_v44  ;;  %v11064_v37 = vmax.f32 %v8339_v12, %v11063_v4  ;;  %vm9249_vm3 = vmand %vm2128_vm15, %vm9175_vm13 }
 0x17d   : > { %v1894_v21 = vadd.f32 %v8308_v41, %v1760_v60  ;;  %v1761_v39 = vmul.f32 %v9152_v8, %v1627_v17  ;;  %v7234_v32 = vpop.f32.mrb[72].mxu0  ;;  %v1971_v30 = vadd.s32 128, %v8437_v55  ;;  %v11065_v44 = vmax.f32 %v8342_v13, %v8530_v46 }
 0x17e   : > { %v9183_v35 = vmax.f32 %v11064_v37, %v1896_v1  ;;  %v1897_v41 = vadd.f32 %v9188_v50, %v1763_v59  ;;  %v1344_v3 = vadd.f32 %v9126_v36, %v7234_v32  ;;  %v1335_v43 = vpop.f32.mrb[73].mxu0  ;;  %v9205_v1 = vadd.s32 152, %v8437_v55  ;;  %v11112_v32 = vld [vmem:[#allocation24_spill] sm:$0xff] }
 0x17f   : > { %v9196_v62 = vmax.f32 %v11065_v44, %v1894_v21  ;;  %v1895_v12 = vadd.f32 %v9188_v50, %v1761_v39  ;;  %v1336_v60 = vadd.f32 %v9126_v36, %v1335_v43  ;;  %v7235_v17 = vpop.f32.mrb[74].mxu0  ;;  %v11066_v59 = vmax.f32 %v8345_v14, %v8548_v25 }
 0x180   : > { %v1632_v46 = vmax.f32 %v1344_v3, 0.0  ;;  %v1347_v21 = vadd.f32 %v9126_v36, %v7235_v17  ;;  %v1338_v39 = vpop.f32.mrb[75].mxu0  ;;  %vm9217_vm0 = vcmp.ge.s32.totalorder %v2005_v24, 1  ;;  %v11069_v56 = vmax.f32 %v8348_v16, %v8562_v23  ;;  %v11087_v16 = vld [vmem:[#allocation5_spill] sm:$0xff] }
 0x181   : > { %v9210_v13 = vmax.f32 %v11066_v59, %v1897_v41  ;;  %v1630_v14 = vmax.f32 %v1336_v60, 0.0  ;;  %v1339_v25 = vadd.f32 %v9126_v36, %v1338_v39  ;;  %vm9227_vm1 = vcmp.le.s32.totalorder %v2005_v24, 14  ;;  %v11085_v39 = vld [vmem:[#allocation14_spill] sm:$0xff] }
 0x182   : > { %v9224_v4 = vmax.f32 %v11069_v56, %v1895_v12  ;;  %v1766_v42 = vmul.f32 %v9152_v8, %v1632_v46  ;;  %v1633_v41 = vmax.f32 %v1347_v21, 0.0  ;;  %v2003_v23 = vshra.s32 %v1971_v30, 4  ;;  %vm2133_vm5 = vmand %vm9217_vm0, %vm9227_vm1  ;;  %v11084_v21 = vld [vmem:[#allocation4_spill] sm:$0xff] }
 0x183   : > { %v2035_v24 = vand.u32 15, %v1971_v30  ;;  %v1764_v3 = vmul.f32 %v9152_v8, %v1630_v14  ;;  %v1631_v43 = vmax.f32 %v1339_v25, 0.0  ;;  %vm9253_vm4 = vcmp.ge.s32.totalorder %v2037_v54, 1 }
 0x184   : > { %v2006_v9 = vshra.s32 %v9205_v1, 4  ;;  %v1900_v33 = vadd.f32 %v9188_v50, %v1766_v42  ;;  %v1767_v30 = vmul.f32 %v9152_v8, %v1633_v41  ;;  %vm9264_vm6 = vcmp.ge.s32.totalorder %v2003_v23, 1  ;;  %vm2197_vm10 = vmand %vm2133_vm5, %vm9253_vm4 }
 0x185   : > { %vm9268_vm7 = vcmp.le.s32.totalorder %v2003_v23, 14  ;;  %v1898_v12 = vadd.f32 %v9188_v50, %v1764_v3  ;;  %v1765_v60 = vmul.f32 %v9152_v8, %v1631_v43  ;;  %v7238_v17 = vpop.f32.mrb[76].mxu0  ;;  %v9277_v59 = vsel %vm9242_vm2, 1.0, %v10957_v63  ;;  %v11088_v23 = vld [vmem:[#allocation17_spill] sm:$0xff] }
 0x186   : > { %vm2131_vm8 = vmand %vm9264_vm6, %vm9268_vm7  ;;  %vm9283_vm9 = vcmp.ge.s32.totalorder %v2035_v24, 1  ;;  %v11086_v56 = vmax.f32 %v11084_v21, %v11085_v39  ;;  %v1901_v25 = vadd.f32 %v9188_v50, %v1767_v30  ;;  %v1360_v29 = vadd.f32 %v9126_v36, %v7238_v17  ;;  %v1351_v42 = vpop.f32.mrb[77].mxu0  ;;  %v11090_v30 = vld [vmem:[#allocation19_spill] sm:$0xff] }
 0x187   : > { %v9297_v41 = vsel %vm9249_vm3, 1.0, %v10957_v63  ;;  %v11089_v24 = vmax.f32 %v11087_v16, %v11088_v23  ;;  %v1899_v43 = vadd.f32 %v9188_v50, %v1765_v60  ;;  %v7239_v21 = vpop.f32.mrb[78].mxu0  ;;  %v2038_v44 = vand.u32 15, %v9205_v1  ;;  %vm2195_vm11 = vmand %vm2131_vm8, %vm9283_vm9  ;;  %v11094_v1 = vld [vmem:[#allocation6_spill] sm:$0xff] }
 0x188   : > { %v9290_v14 = vmax.f32 %v11086_v56, %v1900_v33  ;;  %v1352_v33 = vadd.f32 %v9126_v36, %v1351_v42  ;;  %v11091_v17 = vmax.f32 %v8369_v28, %v11090_v30  ;;  %v1636_v39 = vmax.f32 %v1360_v29, 0.0  ;;  %v1354_v56 = vpop.f32.mrb[79].mxu0  ;;  %v11095_v28 = vld [vmem:[#allocation20_spill] sm:$0xff] }
 0x189   : > { %v9302_v3 = vmax.f32 %v11089_v24, %v1898_v12  ;;  %v1363_v60 = vadd.f32 %v9126_v36, %v7239_v21  ;;  %vm9327_vm12 = vcmp.ge.s32.totalorder %v2006_v9, 1  ;;  %v11096_v37 = vmax.f32 %v11094_v1, %v11095_v28  ;;  %v11103_v28 = vld [vmem:[#allocation7_spill] sm:$0xff] }
 0x18a   : > { %v9317_v12 = vmax.f32 %v11091_v17, %v1901_v25  ;;  %v1634_v25 = vmax.f32 %v1352_v33, 0.0  ;;  %v1355_v29 = vadd.f32 %v9126_v36, %v1354_v56  ;;  %vm9337_vm13 = vcmp.le.s32.totalorder %v2006_v9, 14 }
 0x18b   : > { %v9334_v48 = vmax.f32 %v11096_v37, %v1899_v43  ;;  %v1770_v19 = vmul.f32 %v9152_v8, %v1636_v39  ;;  %v1637_v54 = vmax.f32 %v1363_v60, 0.0  ;;  %v9343_v42 = vsel %vm2197_vm10, 1.0, %v10957_v63  ;;  %vm2134_vm15 = vmand %vm9327_vm12, %vm9337_vm13  ;;  %v11104_v37 = vld [vmem:[#allocation22_spill] sm:$0xff] }
 0x18c   : > { %11099 = vst [vmem:[#allocation13_spill] sm:$0xff] %v9343_v42  ;;  %v1972_v16 = vadd.s32 136, %v8437_v55  ;;  %v1768_v23 = vmul.f32 %v9152_v8, %v1634_v25  ;;  %v1635_v24 = vmax.f32 %v1355_v29, 0.0  ;;  %v9348_v43 = vsel %vm2195_vm11, 1.0, %v10957_v63 }
 0x18d   : > { %11100 = vst [vmem:[#allocation4_spill] sm:$0xff] %v9348_v43  ;;  %vm9350_vm14 = vcmp.le.s32.totalorder %v2038_v44, 14  ;;  %v1904_v9 = vadd.f32 %v9188_v50, %v1770_v19  ;;  %v1771_v21 = vmul.f32 %v9152_v8, %v1637_v54  ;;  %v7242_v56 = vpop.f32.mrb[80].mxu0  ;;  %v1977_v44 = vadd.s32 176, %v8437_v55 }
 0x18e   : > { %v2004_v30 = vshra.s32 %v1972_v16, 4  ;;  %v2036_v17 = vand.u32 15, %v1972_v16  ;;  %v1902_v39 = vadd.f32 %v9188_v50, %v1768_v23  ;;  %v1769_v60 = vmul.f32 %v9152_v8, %v1635_v24  ;;  %v1367_v43 = vpop.f32.mrb[81].mxu0  ;;  %vm2262_vm1 = vmand %vm2134_vm15, %vm9350_vm14 }
 0x18f   : > { %v1975_v1 = vadd.s32 160, %v8437_v55  ;;  %v11105_v25 = vmax.f32 %v11103_v28, %v11104_v37  ;;  %v1905_v19 = vadd.f32 %v9188_v50, %v1771_v21  ;;  %v1376_v54 = vadd.f32 %v9126_v36, %v7242_v56  ;;  %v11109_v21 = vld [vmem:[#allocation23_spill] sm:$0xff] }
 0x190   : > { %vm9371_vm0 = vcmp.ge.s32.totalorder %v2004_v30, 1  ;;  %v11108_v23 = vmax.f32 %v8381_v47, %v8697_v45  ;;  %v1903_v42 = vadd.f32 %v9188_v50, %v1769_v60  ;;  %v1368_v28 = vadd.f32 %v9126_v36, %v1367_v43  ;;  %v11111_v43 = vld [vmem:[#allocation8_spill] sm:$0xff] }
 0x191   : > { %v9367_v29 = vmax.f32 %v11105_v25, %v1904_v9  ;;  %v7243_v9 = vpop.f32.mrb[82].mxu0  ;;  %vm2100_vm2 = vcmp.le.s32.totalorder %v2004_v30, 14  ;;  %v11110_v56 = vmax.f32 %v8386_v51, %v11109_v21  ;;  %v1640_v45 = vmax.f32 %v1376_v54, 0.0 }
 0x192   : > { %v9378_v24 = vmax.f32 %v11108_v23, %v1902_v39  ;;  %v1379_v39 = vadd.f32 %v9126_v36, %v7243_v9  ;;  %v1370_v60 = vpop.f32.mrb[83].mxu0  ;;  %vm2132_vm3 = vmand %vm9371_vm0, %vm2100_vm2  ;;  %vm2228_vm4 = vcmp.le.s32.totalorder %v2036_v17, 14  ;;  %v11113_v33 = vmax.f32 %v11111_v43, %v11112_v32 }
 0x193   : > { %v9392_v47 = vmax.f32 %v11110_v56, %v1905_v19  ;;  %v1638_v37 = vmax.f32 %v1368_v28, 0.0  ;;  %v1371_v30 = vadd.f32 %v9126_v36, %v1370_v60  ;;  %vm2260_vm5 = vmand %vm2132_vm3, %vm2228_vm4  ;;  %v2009_v51 = vshra.s32 %v1977_v44, 4 }
 0x194   : > { %v9400_v46 = vmax.f32 %v11113_v33, %v1903_v42  ;;  %v1774_v25 = vmul.f32 %v9152_v8, %v1640_v45  ;;  %v1641_v19 = vmax.f32 %v1379_v39, 0.0  ;;  %v9405_v54 = vsel %vm2262_vm1, 1.0, %v10957_v63  ;;  %v11122_v33 = vld [vmem:[#allocation25_spill] sm:$0xff] }
 0x195   : > { %11114 = vst [vmem:[#allocation14_spill] sm:$0xff] %v9405_v54  ;;  %v2041_v23 = vand.u32 15, %v1977_v44  ;;  %v1772_v16 = vmul.f32 %v9152_v8, %v1638_v37  ;;  %v1639_v17 = vmax.f32 %v1371_v30, 0.0  ;;  %vm9408_vm6 = vcmp.ge.s32.totalorder %v2009_v51, 1  ;;  %v7246_v60 = vpop.f32.mrb[84].mxu0 }
 0x196   : > { %vm9412_vm7 = vcmp.le.s32.totalorder %v2009_v51, 14  ;;  %v1908_v28 = vadd.f32 %v9188_v50, %v1774_v25  ;;  %v1775_v21 = vmul.f32 %v9152_v8, %v1641_v19  ;;  %v9419_v56 = vsel %vm2260_vm5, 1.0, %v10957_v63  ;;  %v1383_v19 = vpop.f32.mrb[85].mxu0 }
 0x197   : > { %11119 = vst [vmem:[#allocation5_spill] sm:$0xff] %v9419_v56  ;;  %v2007_v45 = vshra.s32 %v1975_v1, 4  ;;  %v1906_v44 = vadd.f32 %v9188_v50, %v1772_v16  ;;  %v1773_v39 = vmul.f32 %v9152_v8, %v1639_v17  ;;  %vm2137_vm8 = vmand %vm9408_vm6, %vm9412_vm7  ;;  %vm9427_vm9 = vcmp.ge.s32.totalorder %v2041_v23, 1  ;;  %v7247_v54 = vpop.f32.mrb[86].mxu0 }
 0x198   : > { %v2039_v32 = vand.u32 15, %v1975_v1  ;;  %v11123_v37 = vmax.f32 %v8397_v2, %v11122_v33  ;;  %v1909_v51 = vadd.f32 %v9188_v50, %v1775_v21  ;;  %v1392_v25 = vadd.f32 %v9126_v36, %v7246_v60  ;;  %vm2201_vm11 = vmand %vm2137_vm8, %vm9427_vm9 }
 0x199   : > { %v1978_v16 = vadd.s32 184, %v8437_v55  ;;  %v11124_v17 = vmax.f32 %v8408_v26, %v8762_v53  ;;  %v1907_v56 = vadd.f32 %v9188_v50, %v1773_v39  ;;  %v1384_v1 = vadd.f32 %v9126_v36, %v1383_v19  ;;  %v1386_v26 = vpop.f32.mrb[87].mxu0 }
 0x19a   : > { %v9434_v30 = vmax.f32 %v11123_v37, %v1908_v28  ;;  %vm9446_vm10 = vcmp.ge.s32.totalorder %v2007_v45, 1  ;;  %v11127_v28 = vmax.f32 %v8411_v27, %v8779_v40  ;;  %v1644_v60 = vmax.f32 %v1392_v25, 0.0 }
 0x19b   : > { %v9442_v23 = vmax.f32 %v11124_v17, %v1906_v44  ;;  %v1395_v33 = vadd.f32 %v9126_v36, %v7247_v54  ;;  %vm2103_vm12 = vcmp.le.s32.totalorder %v2007_v45, 14  ;;  %v11128_v53 = vmax.f32 %v8415_v34, %v8793_v15 }
 0x19c   : > { %v9453_v21 = vmax.f32 %v11127_v28, %v1909_v51  ;;  %v1642_v27 = vmax.f32 %v1384_v1, 0.0  ;;  %v1387_v40 = vadd.f32 %v9126_v36, %v1386_v26  ;;  %vm2135_vm13 = vmand %vm9446_vm10, %vm2103_vm12  ;;  %vm2167_vm14 = vcmp.ge.s32.totalorder %v2039_v32, 1 }
 0x19d   : > { %v9466_v44 = vmax.f32 %v11128_v53, %v1907_v56  ;;  %v1778_v54 = vmul.f32 %v9152_v8, %v1644_v60  ;;  %v1645_v9 = vmax.f32 %v1395_v33, 0.0  ;;  %v2010_v39 = vshra.s32 %v1978_v16, 4  ;;  %vm9476_vm15 = vmand %vm2135_vm13, %vm2167_vm14  ;;  %v7250_v17 = vpop.f32.mrb[88].mxu0 }
 0x19e   : > { %v2042_v42 = vand.u32 15, %v1978_v16  ;;  %v1776_v43 = vmul.f32 %v9152_v8, %v1642_v27  ;;  %v1643_v45 = vmax.f32 %v1387_v40, 0.0  ;;  %v9474_v37 = vsel %vm2201_vm11, 1.0, %v10957_v63  ;;  %v1399_v26 = vpop.f32.mrb[89].mxu0  ;;  %v11138_v27 = vld [vmem:[#allocation9_spill] sm:$0xff] }
 0x19f   : > { %11129 = vst [vmem:[#allocation17_spill] sm:$0xff] %v9474_v37  ;;  %v1976_v15 = vadd.s32 168, %v8437_v55  ;;  %v1912_v56 = vadd.f32 %v9188_v50, %v1778_v54  ;;  %v1779_v32 = vmul.f32 %v9152_v8, %v1645_v9  ;;  %vm9483_vm0 = vcmp.ge.s32.totalorder %v2010_v39, 1  ;;  %v11139_v40 = vld [vmem:[#allocation29_spill] sm:$0xff] }
 0x1a0   : > { %vm9487_vm1 = vcmp.le.s32.totalorder %v2010_v39, 14  ;;  %v1910_v19 = vadd.f32 %v9188_v50, %v1776_v43  ;;  %v1777_v16 = vmul.f32 %v9152_v8, %v1643_v45  ;;  %vm2234_vm3 = vcmp.le.s32.totalorder %v2042_v42, 14  ;;  %v11141_v43 = vld [vmem:[#allocation10_spill] sm:$0xff]  ;;  %v11142_v45 = vld [vmem:[#allocation31_spill] sm:$0xff] }
 0x1a1   : > { %vm2138_vm2 = vmand %vm9483_vm0, %vm9487_vm1  ;;  %v2008_v1 = vshra.s32 %v1976_v15, 4  ;;  %v11136_v2 = vmax.f32 %v8419_v38, %v8847_v0  ;;  %v1913_v60 = vadd.f32 %v9188_v50, %v1779_v32  ;;  %v1408_v33 = vadd.f32 %v9126_v36, %v7250_v17  ;;  %v7251_v0 = vpop.f32.mrb[90].mxu0 }
 0x1a2   : > { %v9507_v53 = vsel %vm9476_vm15, 1.0, %v10957_v63  ;;  %v11140_v54 = vmax.f32 %v11138_v27, %v11139_v40  ;;  %v1911_v39 = vadd.f32 %v9188_v50, %v1777_v16  ;;  %v1400_v38 = vadd.f32 %v9126_v36, %v1399_v26  ;;  %vm2266_vm4 = vmand %vm2138_vm2, %vm2234_vm3  ;;  %v1402_v25 = vpop.f32.mrb[91].mxu0  ;;  %v11147_v16 = vld [vmem:[#allocation11_spill] sm:$0xff] }
 0x1a3   : > { %v9500_v28 = vmax.f32 %v11136_v2, %v1912_v56  ;;  %11137 = vst [vmem:[#allocation19_spill] sm:$0xff] %v9507_v53  ;;  %v2040_v42 = vand.u32 15, %v1976_v15  ;;  %v11143_v56 = vmax.f32 %v11141_v43, %v11142_v45  ;;  %v1648_v34 = vmax.f32 %v1408_v33, 0.0  ;;  %v11148_v15 = vld [vmem:[#allocation32_spill] sm:$0xff] }
 0x1a4   : > { %v9512_v9 = vmax.f32 %v11140_v54, %v1910_v19  ;;  %v1411_v51 = vadd.f32 %v9126_v36, %v7251_v0  ;;  %vm9522_vm5 = vcmp.ge.s32.totalorder %v2008_v1, 1  ;;  %v9529_v19 = vld [vmem:[%s10862_s5] sm:$0xff]   ;;  %v11149_v2 = vmax.f32 %v11147_v16, %v11148_v15 }
 0x1a5   : > { %v9519_v32 = vmax.f32 %v11143_v56, %v1913_v60  ;;  %v1646_v60 = vmax.f32 %v1400_v38, 0.0  ;;  %v1403_v33 = vadd.f32 %v9126_v36, %v1402_v25  ;;  %vm9537_vm6 = vcmp.le.s32.totalorder %v2008_v1, 14  ;;  %7324 = vmatprep.subr.bf16.mxu0 %v9529_v19  ;;  %v7254_v15 = vpop.f32.mrb[92].mxu0 }
 0x1a6   : > { %v9534_v26 = vmax.f32 %v11149_v2, %v1911_v39  ;;  %v1782_v40 = vmul.f32 %v9152_v8, %v1648_v34  ;;  %v1649_v54 = vmax.f32 %v1411_v51, 0.0  ;;  %v9543_v0 = vsel %vm2266_vm4, 1.0, %v10957_v63  ;;  %vm2136_vm8 = vmand %vm9522_vm5, %vm9537_vm6 }
 0x1a7   : > { %11144 = vst [vmem:[#allocation6_spill] sm:$0xff] %v9519_v32  ;;  %11153 = vst [vmem:[#allocation7_spill] sm:$0xff] %v9543_v0  ;;  %v1981_v43 = vadd.s32 208, %v8437_v55  ;;  %v1780_v39 = vmul.f32 %v9152_v8, %v1646_v60  ;;  %v1647_v45 = vmax.f32 %v1403_v33, 0.0  ;;  %vm9548_vm7 = vcmp.le.s32.totalorder %v2040_v42, 14  ;;  %v11156_v33 = vld [vmem:[#allocation34_spill] sm:$0xff] }
 0x1a8   : > { %11150 = vst [vmem:[#allocation20_spill] sm:$0xff] %v9534_v26  ;;  %v1979_v1 = vadd.s32 192, %v8437_v55  ;;  %v1916_v56 = vadd.f32 %v9188_v50, %v1782_v40  ;;  %v1783_v34 = vmul.f32 %v9152_v8, %v1649_v54  ;;  %v9560_v25 = vadd.s32 216, %v8437_v55  ;;  %v1415_v32 = vpop.f32.mrb[93].mxu0  ;;  %vm2264_vm10 = vmand %vm2136_vm8, %vm9548_vm7 }
 0x1a9   : > { %v2013_v51 = vshra.s32 %v1981_v43, 4  ;;  %v1914_v42 = vadd.f32 %v9188_v50, %v1780_v39  ;;  %v1781_v16 = vmul.f32 %v9152_v8, %v1647_v45  ;;  %v2045_v2 = vand.u32 15, %v1981_v43  ;;  %v11160_v39 = vld [vmem:[#allocation35_spill] sm:$0xff] }
 0x1aa   : > { %v2011_v60 = vshra.s32 %v1979_v1, 4  ;;  %v11157_v40 = vmax.f32 %v8433_v49, %v11156_v33  ;;  %v1917_v26 = vadd.f32 %v9188_v50, %v1783_v34  ;;  %v1424_v0 = vadd.f32 %v9126_v36, %v7254_v15  ;;  %v11162_v34 = vld [vmem:[#allocation12_spill] sm:$0xff] }
 0x1ab   : > { %vm9571_vm9 = vcmp.ge.s32.totalorder %v2013_v51, 1  ;;  %v11161_v45 = vmax.f32 %v8440_v57, %v11160_v39  ;;  %v1915_v43 = vadd.f32 %v9188_v50, %v1781_v16  ;;  %v1416_v49 = vadd.f32 %v9126_v36, %v1415_v32  ;;  %v11163_v15 = vld [vmem:[#allocation36_spill] sm:$0xff]  ;;  %v11165_v32 = vld [vmem:[#allocation37_spill] sm:$0xff] }
 0x1ac   : > { %v9567_v54 = vmax.f32 %v11157_v40, %v1916_v56  ;;  %v7255_v56 = vpop.f32.mrb[94].mxu0  ;;  %vm2109_vm11 = vcmp.le.s32.totalorder %v2013_v51, 14  ;;  %v11164_v33 = vmax.f32 %v11162_v34, %v11163_v15  ;;  %vm2173_vm13 = vcmp.ge.s32.totalorder %v2045_v2, 1 }
 0x1ad   : > { %v9578_v37 = vmax.f32 %v11161_v45, %v1914_v42  ;;  %v1652_v42 = vmax.f32 %v1424_v0, 0.0  ;;  %v1427_v16 = vadd.f32 %v9126_v36, %v7255_v56  ;;  %v1418_v40 = vpop.f32.mrb[95].mxu0  ;;  %vm2141_vm12 = vmand %vm9571_vm9, %vm2109_vm11  ;;  %v11166_v17 = vmax.f32 %v8452_v7, %v11165_v32 }
 0x1ae   : > { %v9592_v57 = vmax.f32 %v11164_v33, %v1917_v26  ;;  %v1650_v38 = vmax.f32 %v1416_v49, 0.0  ;;  %v1419_v51 = vadd.f32 %v9126_v36, %v1418_v40  ;;  %vm2205_vm14 = vmand %vm2141_vm12, %vm2173_vm13  ;;  %v2043_v39 = vand.u32 15, %v1979_v1  ;;  %v7258_v15 = vpop.f32.mrb[96].mxu0 }
 0x1af   : > { %v9600_v27 = vmax.f32 %v11166_v17, %v1915_v43  ;;  %v1786_v26 = vmul.f32 %v9152_v8, %v1652_v42  ;;  %v1653_v0 = vmax.f32 %v1427_v16, 0.0  ;;  %v9605_v45 = vsel %vm2264_vm10, 1.0, %v10957_v63  ;;  %v11167_v42 = vld [vmem:[#allocation38_spill] sm:$0xff] }
 0x1b0   : > { %vm2075_vm15 = vcmp.ge.s32.totalorder %v2011_v60, 1  ;;  %v1784_v53 = vmul.f32 %v9152_v8, %v1650_v38  ;;  %v1651_v2 = vmax.f32 %v1419_v51, 0.0  ;;  %vm2107_vm0 = vcmp.le.s32.totalorder %v2011_v60, 14  ;;  %v1431_v38 = vpop.f32.mrb[97].mxu0 }
 0x1b1   : > { %vm2171_vm1 = vcmp.ge.s32.totalorder %v2043_v39, 1  ;;  %v1920_v7 = vadd.f32 %v9188_v50, %v1786_v26  ;;  %v1787_v43 = vmul.f32 %v9152_v8, %v1653_v0  ;;  %v9611_v49 = vsel %vm2205_vm14, 1.0, %v10957_v63  ;;  %vm2139_vm2 = vmand %vm2075_vm15, %vm2107_vm0 }
 0x1b2   : > { %v2014_v1 = vshra.s32 %v9560_v25, 4  ;;  %v1918_v56 = vadd.f32 %v9188_v50, %v1784_v53  ;;  %v1785_v34 = vmul.f32 %v9152_v8, %v1651_v2  ;;  %vm2203_vm3 = vmand %vm2139_vm2, %vm2171_vm1  ;;  %v2046_v33 = vand.u32 15, %v9560_v25 }
 0x1b3   : > { %v1980_v60 = vadd.s32 200, %v8437_v55  ;;  %v11168_v16 = vmax.f32 %v8456_v11, %v11167_v42  ;;  %v1921_v32 = vadd.f32 %v9188_v50, %v1787_v43  ;;  %v1440_v17 = vadd.f32 %v9126_v36, %v7258_v15  ;;  %v7259_v11 = vpop.f32.mrb[98].mxu0 }
 0x1b4   : > { %v9626_v51 = vsel %vm2203_vm3, 1.0, %v10957_v63  ;;  %v11169_v39 = vmax.f32 %v8460_v20, %v8989_v52  ;;  %v1919_v25 = vadd.f32 %v9188_v50, %v1785_v34  ;;  %v1432_v0 = vadd.f32 %v9126_v36, %v1431_v38  ;;  %v1434_v20 = vpop.f32.mrb[99].mxu0  ;;  %v11175_v52 = vld [vmem:[#allocation39_spill] sm:$0xff] }
 0x1b5   : > { %v9621_v40 = vmax.f32 %v11168_v16, %v1920_v7  ;;  %vm9635_vm4 = vcmp.ge.s32.totalorder %v2014_v1, 1  ;;  %v11173_v2 = vmax.f32 %v8463_v22, %v9003_v61  ;;  %v1656_v43 = vmax.f32 %v1440_v17, 0.0  ;;  %v7262_v53 = vpop.f32.mrb[100].mxu0 }
 0x1b6   : > { %v9631_v26 = vmax.f32 %v11169_v39, %v1918_v56  ;;  %v1443_v15 = vadd.f32 %v9126_v36, %v7259_v11  ;;  %vm2110_vm5 = vcmp.le.s32.totalorder %v2014_v1, 14  ;;  %v11176_v56 = vmax.f32 %v8467_v31, %v11175_v52 }
 0x1b7   : > { %v9642_v7 = vmax.f32 %v11173_v2, %v1921_v32  ;;  %vm2595_vm6 = vcmask 257024   ;;  %v1654_v42 = vmax.f32 %v1432_v0, 0.0  ;;  %v1435_v16 = vadd.f32 %v9126_v36, %v1434_v20  ;;  %vm2142_vm7 = vmand %vm9635_vm4, %vm2110_vm5  ;;  %v1447_v20 = vpop.f32.mrb[101].mxu0 }
 0x1b8   : > { %11170 = vst [vmem:[#allocation22_spill] sm:$0xff] %v9631_v26  ;;  %v9648_v34 = vmax.f32 %v11176_v56, %v1919_v25  ;;  %vm2238_vm8 = vcmp.le.s32.totalorder %v2046_v33, 14  ;;  %v1790_v22 = vmul.f32 %v9152_v8, %v1656_v43  ;;  %v1657_v61 = vmax.f32 %v1443_v15, 0.0 }
 0x1b9   : > { %11174 = vst [vmem:[#allocation23_spill] sm:$0xff] %v9642_v7  ;;  %vm2270_vm9 = vmand %vm2142_vm7, %vm2238_vm8  ;;  %v2012_v32 = vshra.s32 %v1980_v60, 4  ;;  %v2044_v17 = vand.u32 15, %v1980_v60  ;;  %v1788_v1 = vmul.f32 %v9152_v8, %v1654_v42  ;;  %v1655_v38 = vmax.f32 %v1435_v16, 0.0 }
 0x1ba   : > { %11177 = vst [vmem:[#allocation8_spill] sm:$0xff] %v9648_v34  ;;  %v9656_v31 = vsel %vm2270_vm9, 1.0, %v10957_v63  ;;  %v1985_v39 = vadd.s32 240, %v8437_v55  ;;  %v1924_v25 = vadd.f32 %v9188_v50, %v1790_v22  ;;  %v1791_v0 = vmul.f32 %v9152_v8, %v1657_v61  ;;  %v7263_v22 = vpop.f32.mrb[102].mxu0 }
 0x1bb   : > { %vm2076_vm10 = vcmp.ge.s32.totalorder %v2012_v32, 1  ;;  %vm2108_vm11 = vcmp.le.s32.totalorder %v2012_v32, 14  ;;  %v1922_v33 = vadd.f32 %v9188_v50, %v1788_v1  ;;  %v1789_v11 = vmul.f32 %v9152_v8, %v1655_v38  ;;  %v11178_v32 = vld [vmem:[#allocation15_spill] sm:$0xff] }
 0x1bc   : > { %vm2140_vm12 = vmand %vm2076_vm10, %vm2108_vm11  ;;  %vm2236_vm13 = vcmp.le.s32.totalorder %v2044_v17, 14  ;;  %v2017_v60 = vshra.s32 %v1985_v39, 4  ;;  %v2405_v2 = vmax.f32 %v9107_v58, %v1924_v25  ;;  %v1925_v43 = vadd.f32 %v9188_v50, %v1791_v0  ;;  %v1450_v25 = vpop.f32.mrb[103].mxu0  ;;  %v11179_v0 = vld [vmem:[#allocation16_spill] sm:$0xff] }
 0x1bd   : > { %v1456_v15 = vadd.f32 %v9126_v36, %v7262_v53  ;;  %vm2268_vm14 = vmand %vm2140_vm12, %vm2236_vm13  ;;  %v2049_v52 = vand.u32 15, %v1985_v39  ;;  %v2403_v56 = vmax.f32 %v9114_v10, %v1922_v33  ;;  %v1923_v42 = vadd.f32 %v9188_v50, %v1789_v11 }
 0x1be   : > { %v1448_v16 = vadd.f32 %v9126_v36, %v1447_v20  ;;  %v9670_v61 = vsel %vm2268_vm14, 1.0, %v10957_v63  ;;  %v2437_v17 = vmul.f32 %v11178_v32, %v2405_v2  ;;  %v2406_v58 = vmax.f32 %v9121_v6, %v1925_v43  ;;  %v11180_v20 = vld [vmem:[#allocation18_spill] sm:$0xff]  ;;  %v11181_v32 = vld [vmem:[#allocation21_spill] sm:$0xff] }
 0x1bf   : > { %v1660_v1 = vmax.f32 %v1456_v15, 0.0  ;;  %v1459_v38 = vadd.f32 %v9126_v36, %v7263_v22  ;;  %v2435_v39 = vmul.f32 %v11179_v0, %v2403_v56  ;;  %v2404_v10 = vmax.f32 %v9137_v5, %v1923_v42 }
 0x1c0   : > { %v1658_v33 = vmax.f32 %v1448_v16, 0.0  ;;  %v1451_v11 = vadd.f32 %v9126_v36, %v1450_v25  ;;  %v6889_v53 = vpack.c.bf16 %v2437_v17, %v2437_v17  ;;  %v2438_v34 = vmul.f32 %v11180_v20, %v2406_v58 }
 0x1c1   : > { %v1794_v7 = vmul.f32 %v9152_v8, %v1660_v1  ;;  %v1661_v26 = vmax.f32 %v1459_v38, 0.0  ;;  %v6887_v2 = vpack.c.bf16 %v2435_v39, %v2435_v39  ;;  %v2436_v6 = vmul.f32 %v11181_v32, %v2404_v10  ;;  %v7266_v1 = vpop.f32.mrb[104].mxu0 }
 0x1c2   : > { %v1792_v43 = vmul.f32 %v9152_v8, %v1658_v33  ;;  %v1659_v15 = vmax.f32 %v1451_v11, 0.0  ;;  %2598 = vst.msk [vmem:[#allocation2 + $0x8] sm:$0xf] %vm2595_vm6, %v6889_v53  ;;  %v6890_v56 = vpack.c.bf16 %v2438_v34, %v2438_v34  ;;  %vm9685_vm15 = vcmp.ge.s32.totalorder %v2017_v60, 1  ;;  %v1463_v25 = vpop.f32.mrb[105].mxu0  ;;  %v11188_v11 = vld [vmem:[#allocation26_spill] sm:$0xff] }
 0x1c3   : > { %v1928_v5 = vadd.f32 %v9188_v50, %v1794_v7  ;;  %v1795_v42 = vmul.f32 %v9152_v8, %v1661_v26  ;;  %2596 = vst.msk [vmem:[#allocation2] sm:$0xf] %vm2595_vm6, %v6887_v2  ;;  %v6888_v22 = vpack.c.bf16 %v2436_v6, %v2436_v6  ;;  %vm9692_vm0 = vcmp.le.s32.totalorder %v2017_v60, 14  ;;  %v7267_v10 = vpop.f32.mrb[106].mxu0  ;;  %v11189_v6 = vld [vmem:[#allocation27_spill] sm:$0xff] }
 0x1c4   : > { %v1926_v17 = vadd.f32 %v9188_v50, %v1792_v43  ;;  %v1793_v58 = vmul.f32 %v9152_v8, %v1659_v15  ;;  %2599 = vst.msk [vmem:[#allocation2 + $0xc] sm:$0xf] %vm2595_vm6, %v6890_v56  ;;  %v1472_v34 = vadd.f32 %v9126_v36, %v7266_v1  ;;  %vm2145_vm1 = vmand %vm9685_vm15, %vm9692_vm0  ;;  %vm9704_vm2 = vcmp.ge.s32.totalorder %v2049_v52, 1  ;;  %v1466_v32 = vpop.f32.mrb[107].mxu0  ;;  %v11191_v1 = vld [vmem:[#allocation30_spill] sm:$0xff] }
 0x1c5   : > { %v2409_v26 = vmax.f32 %v9183_v35, %v1928_v5  ;;  %v1929_v7 = vadd.f32 %v9188_v50, %v1795_v42  ;;  %2597 = vst.msk [vmem:[#allocation2 + $0x4] sm:$0xf] %vm2595_vm6, %v6888_v22  ;;  %v1464_v39 = vadd.f32 %v9126_v36, %v1463_v25  ;;  %v9713_v33 = vadd.s32 224, %v8437_v55  ;;  %vm2209_vm3 = vmand %vm2145_vm1, %vm9704_vm2  ;;  %v11190_v5 = vld [vmem:[#allocation28_spill] sm:$0xff] }
 0x1c6   : > { %v2407_v60 = vmax.f32 %v9196_v62, %v1926_v17  ;;  %v1927_v35 = vadd.f32 %v9188_v50, %v1793_v58  ;;  %v1664_v52 = vmax.f32 %v1472_v34, 0.0  ;;  %v1475_v2 = vadd.f32 %v9126_v36, %v7267_v10 }
 0x1c7   : > { %v2441_v53 = vmul.f32 %v11188_v11, %v2409_v26  ;;  %v2410_v20 = vmax.f32 %v9210_v13, %v1929_v7  ;;  %v1662_v15 = vmax.f32 %v1464_v39, 0.0  ;;  %v1467_v56 = vadd.f32 %v9126_v36, %v1466_v32  ;;  %v7270_v39 = vpop.f32.mrb[108].mxu0 }
 0x1c8   : > { %v2439_v43 = vmul.f32 %v11189_v6, %v2407_v60  ;;  %v2408_v62 = vmax.f32 %v9224_v4, %v1927_v35  ;;  %v1798_v22 = vmul.f32 %v9152_v8, %v1664_v52  ;;  %v1665_v17 = vmax.f32 %v1475_v2, 0.0  ;;  %v1479_v2 = vpop.f32.mrb[109].mxu0 }
 0x1c9   : > { %v6893_v13 = vpack.c.bf16 %v2441_v53, %v2441_v53  ;;  %v2442_v42 = vmul.f32 %v11190_v5, %v2410_v20  ;;  %v1796_v26 = vmul.f32 %v9152_v8, %v1662_v15  ;;  %v1663_v7 = vmax.f32 %v1467_v56, 0.0  ;;  %v7271_v56 = vpop.f32.mrb[110].mxu0 }
 0x1ca   : > { %v6891_v58 = vpack.c.bf16 %v2439_v43, %v2439_v43  ;;  %v2440_v4 = vmul.f32 %v11191_v1, %v2408_v62  ;;  %v1932_v16 = vadd.f32 %v9188_v50, %v1798_v22  ;;  %v1799_v38 = vmul.f32 %v9152_v8, %v1665_v17  ;;  %v2633_v10 = vld [vmem:[#allocation2] sm:$0xf]  ;;  %v11193_v1 = vld [vmem:[#allocation40_spill] sm:$0xff] }
 0x1cb   : > { %2602 = vst.msk [vmem:[#allocation2 + $0x18] sm:$0xf] %vm2595_vm6, %v6893_v13  ;;  %v6894_v34 = vpack.c.bf16 %v2442_v42, %v2442_v42  ;;  %v9736_v25 = vsel %vm2209_vm3, 1.0, %v10957_v63  ;;  %v1930_v60 = vadd.f32 %v9188_v50, %v1796_v26  ;;  %v1797_v35 = vmul.f32 %v9152_v8, %v1663_v7 }
 0x1cc   : > { %2600 = vst.msk [vmem:[#allocation2 + $0x10] sm:$0xf] %vm2595_vm6, %v6891_v58  ;;  %v6892_v0 = vpack.c.bf16 %v2440_v4, %v2440_v4  ;;  %v2015_v11 = vshra.s32 %v9713_v33, 4  ;;  %v2413_v53 = vmax.f32 %v9290_v14, %v1932_v16  ;;  %v1933_v20 = vadd.f32 %v9188_v50, %v1799_v38  ;;  %v2634_v32 = vld [vmem:[#allocation2 + $0x4] sm:$0xf]  ;;  %v11192_v14 = vld [vmem:[#allocation33_spill] sm:$0xff] }
 0x1cd   : > { %2603 = vst.msk [vmem:[#allocation2 + $0x1c] sm:$0xf] %vm2595_vm6, %v6894_v34  ;;  %v1488_v52 = vadd.f32 %v9126_v36, %v7270_v39  ;;  %v2047_v6 = vand.u32 15, %v9713_v33  ;;  %v2411_v43 = vmax.f32 %v9302_v3, %v1930_v60  ;;  %v1931_v62 = vadd.f32 %v9188_v50, %v1797_v35  ;;  %v1482_v58 = vpop.f32.mrb[111].mxu0  ;;  %v11194_v16 = vld [vmem:[#allocation41_spill] sm:$0xff]  ;;  %v9761_v35 = vld [vmem:[#allocation2 + $0x8] sm:$0xff]  }
 0x1ce   : > { %2601 = vst.msk [vmem:[#allocation2 + $0x14] sm:$0xf] %vm2595_vm6, %v6892_v0  ;;  %v1480_v15 = vadd.f32 %v9126_v36, %v1479_v2  ;;  %v9751_v13 = vcombine.low %v2633_v10, %v2634_v32  ;;  %v2445_v5 = vmul.f32 %v11192_v14, %v2413_v53  ;;  %v2414_v42 = vmax.f32 %v9317_v12, %v1933_v20  ;;  %v11195_v39 = vld [vmem:[#allocation42_spill] sm:$0xff] }
 0x1cf   : > { %v1668_v22 = vmax.f32 %v1488_v52, 0.0  ;;  %v1491_v17 = vadd.f32 %v9126_v36, %v7271_v56  ;;  %v2443_v4 = vmul.f32 %v11193_v1, %v2411_v43  ;;  %v2412_v26 = vmax.f32 %v9334_v48, %v1931_v62  ;;  %v7274_v56 = vpop.f32.mrb[112].mxu0 }
 0x1d0   : > { %v1666_v3 = vmax.f32 %v1480_v15, 0.0  ;;  %v1483_v7 = vadd.f32 %v9126_v36, %v1482_v58  ;;  %v6897_v34 = vpack.c.bf16 %v2445_v5, %v2445_v5  ;;  %v2446_v38 = vmul.f32 %v11194_v16, %v2414_v42 }
 0x1d1   : > { %v1802_v0 = vmul.f32 %v9152_v8, %v1668_v22  ;;  %v1669_v60 = vmax.f32 %v1491_v17, 0.0  ;;  %v6895_v12 = vpack.c.bf16 %v2443_v4, %v2443_v4  ;;  %v2444_v10 = vmul.f32 %v11195_v39, %v2412_v26  ;;  %v1495_v17 = vpop.f32.mrb[113].mxu0 }
 0x1d2   : > { %v1800_v53 = vmul.f32 %v9152_v8, %v1666_v3  ;;  %v1667_v20 = vmax.f32 %v1483_v7, 0.0  ;;  %2606 = vst.msk [vmem:[#allocation2 + $0x28] sm:$0xf] %vm2595_vm6, %v6897_v34  ;;  %v6898_v48 = vpack.c.bf16 %v2446_v38, %v2446_v38  ;;  %vm2758_vm4 = vsmask.f32 7424  ;;  %v7275_v3 = vpop.f32.mrb[114].mxu0 }
 0x1d3   : > { %v1936_v52 = vadd.f32 %v9188_v50, %v1802_v0  ;;  %v1803_v2 = vmul.f32 %v9152_v8, %v1669_v60  ;;  %v2760_v32 = vshrl.u32 %v9751_v13, 16  ;;  %2604 = vst.msk [vmem:[#allocation2 + $0x20] sm:$0xf] %vm2595_vm6, %v6895_v12  ;;  %v6896_v43 = vpack.c.bf16 %v2444_v10, %v2444_v10  ;;  %v11196_v34 = vld [vmem:[#allocation43_spill] sm:$0xff]  ;;  %v1498_v60 = vpop.f32.mrb[115].mxu0 }
 0x1d4   : > { %v1934_v62 = vadd.f32 %v9188_v50, %v1800_v53  ;;  %v1801_v15 = vmul.f32 %v9152_v8, %v1667_v20  ;;  %v2762_v14 = vshll.u32 %v9751_v13, 16  ;;  %vm2903_vm5 = vcmask 261120   ;;  %2607 = vst.msk [vmem:[#allocation2 + $0x2c] sm:$0xf] %vm2595_vm6, %v6898_v48 }
 0x1d5   : > { %v2417_v5 = vmax.f32 %v9367_v29, %v1936_v52  ;;  %v1937_v42 = vadd.f32 %v9188_v50, %v1803_v2  ;;  %v1504_v22 = vadd.f32 %v9126_v36, %v7274_v56  ;;  %v2767_v58 = vshll.u32 %v9761_v35, 16  ;;  %2605 = vst.msk [vmem:[#allocation2 + $0x24] sm:$0xf] %vm2595_vm6, %v6896_v43 }
 0x1d6   : > { %v2415_v1 = vmax.f32 %v9378_v24, %v1934_v62  ;;  %v1935_v4 = vadd.f32 %v9188_v50, %v1801_v15  ;;  %v1496_v26 = vadd.f32 %v9126_v36, %v1495_v17  ;;  %v2764_v7 = vrot.slane %v2762_v14, 1 }
 0x1d7   : > { %v2449_v16 = vmul.f32 %v11196_v34, %v2417_v5  ;;  %v2418_v29 = vmax.f32 %v9392_v47, %v1937_v42  ;;  %v1672_v38 = vmax.f32 %v1504_v22, 0.0  ;;  %v1507_v0 = vadd.f32 %v9126_v36, %v7275_v3  ;;  %v9798_v22 = vld [vmem:[#allocation2 + $0x10] sm:$0xff]  }
 0x1d8   : > { %v2447_v12 = vmul.f32 %v9132_v18, %v2415_v1  ;;  %v2416_v39 = vmax.f32 %v9400_v46, %v1935_v4  ;;  %v1670_v10 = vmax.f32 %v1496_v26, 0.0  ;;  %v1499_v24 = vadd.f32 %v9126_v36, %v1498_v60 }
 0x1d9   : > { %v6901_v53 = vpack.c.bf16 %v2449_v16, %v2449_v16  ;;  %v2450_v20 = vmul.f32 %v9277_v59, %v2418_v29  ;;  %v1806_v48 = vmul.f32 %v9152_v8, %v1672_v38  ;;  %v1673_v52 = vmax.f32 %v1507_v0, 0.0 }
 0x1da   : > { %v6899_v2 = vpack.c.bf16 %v2447_v12, %v2447_v12  ;;  %v2448_v47 = vmul.f32 %v9297_v41, %v2416_v39  ;;  %v1804_v43 = vmul.f32 %v9152_v8, %v1670_v10  ;;  %v1671_v62 = vmax.f32 %v1499_v24, 0.0  ;;  %v7278_v41 = vpop.f32.mrb[116].mxu0  ;;  %v9821_v10 = vld [vmem:[#allocation2 + $0x18] sm:$0xff]  }
 0x1db   : > { %2610 = vst.msk [vmem:[#allocation2 + $0x38] sm:$0xf] %vm2595_vm6, %v6901_v53  ;;  %v6902_v18 = vpack.c.bf16 %v2450_v20, %v2450_v20  ;;  %v1940_v46 = vadd.f32 %v9188_v50, %v1806_v48  ;;  %v1807_v15 = vmul.f32 %v9152_v8, %v1673_v52  ;;  %v2765_v56 = vor.u32 %v2764_v7, %v2760_v32  ;;  %v1511_v26 = vpop.f32.mrb[117].mxu0  ;;  %v9812_v7 = vld [vmem:[%s10859_s2] ss:$0 sm:$0xff]  ;;  %v11199_v53 = vld [vmem:[#allocation14_spill] sm:$0xff] }
 0x1dc   : > { %2608 = vst.msk [vmem:[#allocation2 + $0x30] sm:$0xf] %vm2595_vm6, %v6899_v2  ;;  %v6900_v59 = vpack.c.bf16 %v2448_v47, %v2448_v47  ;;  %v1938_v14 = vadd.f32 %v9188_v50, %v1804_v43  ;;  %v1805_v5 = vmul.f32 %v9152_v8, %v1671_v62  ;;  %v2769_v42 = vrot.slane %v2767_v58, 1  ;;  %v7279_v34 = vpop.f32.mrb[118].mxu0  ;;  %v11200_v47 = vld [vmem:[#allocation5_spill] sm:$0xff] }
 0x1dd   : > { %2611 = vst.msk [vmem:[#allocation2 + $0x3c] sm:$0xf] %vm2595_vm6, %v6902_v18  ;;  %v2421_v17 = vmax.f32 %v9434_v30, %v1940_v46  ;;  %v1941_v1 = vadd.f32 %v9188_v50, %v1807_v15  ;;  %v2771_v4 = vshrl.u32 %v9761_v35, 16  ;;  %v1520_v32 = vadd.f32 %v9126_v36, %v7278_v41  ;;  %v11197_v35 = vld [vmem:[#allocation13_spill] sm:$0xff]  ;;  %v1514_v38 = vpop.f32.mrb[119].mxu0 }
 0x1de   : > { %2609 = vst.msk [vmem:[#allocation2 + $0x34] sm:$0xf] %vm2595_vm6, %v6900_v59  ;;  %v2419_v3 = vmax.f32 %v9442_v23, %v1938_v14  ;;  %v1939_v8 = vadd.f32 %v9188_v50, %v1805_v5  ;;  %v2770_v58 = vsel %vm2758_vm4, %v2765_v56, %v2769_v42  ;;  %v1512_v30 = vadd.f32 %v9812_v7, %v1511_v26  ;;  %v11198_v50 = vld [vmem:[#allocation4_spill] sm:$0xff]  ;;  %v9837_v46 = vld [vmem:[%s10861_s4] ss:$0 sm:$0xff]  ;;  %v7976_v14 = vld [vmem:[%s10862_s5 + $0x8] sm:$0xff]  }
 0x1df   : > { %v2453_v16 = vmul.f32 %v11197_v35, %v2421_v17  ;;  %v2422_v36 = vmax.f32 %v9453_v21, %v1941_v1  ;;  %v2773_v29 = vor.u32 %v2771_v4, %v2769_v42  ;;  %7292 = vmatprep.mubr.msk.bf16.mxu0 %vm2903_vm5, %v2770_v58  ;;  %v1676_v23 = vmax.f32 %v1520_v32, 0.0  ;;  %v9827_v21 = vld [vmem:[%s10860_s3] ss:$0 sm:$0xff]  ;;  %v7282_v1 = vpop.f32.mrb[120].mxu0 }
 0x1e0   : > { %v2451_v0 = vmul.f32 %v11198_v50, %v2419_v3  ;;  %v2420_v60 = vmax.f32 %v9466_v44, %v1939_v8  ;;  %v1674_v12 = vmax.f32 %v1512_v30, 0.0  ;;  %v2775_v39 = vshll.u32 %v9798_v22, 16  ;;  %v1527_v8 = vpop.f32.mrb[121].mxu0 }
 0x1e1   : > { %v6905_v24 = vpack.c.bf16 %v2453_v16, %v2453_v16  ;;  %v2454_v20 = vmul.f32 %v11199_v53, %v2422_v36  ;;  %v1810_v48 = vmul.f32 %v9827_v21, %v1676_v23  ;;  %v1523_v52 = vadd.f32 %v9812_v7, %v7279_v34  ;;  %v9857_v16 = vld [vmem:[#allocation2 + $0x20] sm:$0xff]   ;;  %v9865_v53 = vld [vmem:[#allocation2 + $0x28] sm:$0xff]  }
 0x1e2   : > { %v6903_v2 = vpack.c.bf16 %v2451_v0, %v2451_v0  ;;  %v2452_v44 = vmul.f32 %v11200_v47, %v2420_v60  ;;  %v1808_v43 = vmul.f32 %v9827_v21, %v1674_v12  ;;  %v2777_v62 = vrot.slane %v2775_v39, 1  ;;  %v11201_v36 = vld [vmem:[#allocation17_spill] sm:$0xff] }
 0x1e3   : > { %2614 = vst.msk [vmem:[#allocation2 + $0x48] sm:$0xf] %vm2595_vm6, %v6905_v24  ;;  %v6906_v18 = vpack.c.bf16 %v2454_v20, %v2454_v20  ;;  %v1944_v15 = vadd.f32 %v9837_v46, %v1810_v48  ;;  %v1677_v56 = vmax.f32 %v1523_v52, 0.0  ;;  %v1515_v59 = vadd.f32 %v9812_v7, %v1514_v38  ;;  %v11203_v48 = vld [vmem:[#allocation6_spill] sm:$0xff] }
 0x1e4   : > { %2612 = vst.msk [vmem:[#allocation2 + $0x40] sm:$0xf] %vm2595_vm6, %v6903_v2  ;;  %v6904_v5 = vpack.c.bf16 %v2452_v44, %v2452_v44  ;;  %v1942_v42 = vadd.f32 %v9837_v46, %v1808_v43  ;;  %v2778_v41 = vsel %vm2758_vm4, %v2773_v29, %v2777_v62  ;;  %v2779_v17 = vshrl.u32 %v9798_v22, 16 }
 0x1e5   : > { %2615 = vst.msk [vmem:[#allocation2 + $0x4c] sm:$0xf] %vm2595_vm6, %v6906_v18  ;;  %v2425_v4 = vmax.f32 %v9500_v28, %v1944_v15  ;;  %7293 = vmatmul.mubr.msk.bf16.vlgmr.msra.gmra.mrb[128].mxu0 %vm2903_vm5, %v2778_v41  ;;  %v1811_v32 = vmul.f32 %v9827_v21, %v1677_v56  ;;  %v1675_v26 = vmax.f32 %v1515_v59, 0.0  ;;  %v2783_v3 = vshll.u32 %v9821_v10, 16  ;;  %v7283_v28 = vpop.f32.mrb[122].mxu0  ;;  %v11204_v18 = vld [vmem:[#allocation7_spill] sm:$0xff] }
 0x1e6   : > { %2613 = vst.msk [vmem:[#allocation2 + $0x44] sm:$0xf] %vm2595_vm6, %v6904_v5  ;;  %v2423_v58 = vmax.f32 %v9512_v9, %v1942_v42  ;;  %v2781_v30 = vor.u32 %v2779_v17, %v2777_v62  ;;  %v1536_v34 = vadd.f32 %v9812_v7, %v7282_v1  ;;  %v1528_v35 = vadd.f32 %v9812_v7, %v1527_v8  ;;  %v1530_v0 = vpop.f32.mrb[123].mxu0  ;;  %v11202_v9 = vld [vmem:[#allocation19_spill] sm:$0xff]  ;;  %v11205_v56 = vld [vmem:[#allocation20_spill] sm:$0xff] }
 0x1e7   : > { %7325 = vmatpush3.bf16.msra.mxu0 %v9529_v19  ;;  %v2457_v29 = vmul.f32 %v11201_v36, %v2425_v4  ;;  %v1945_v23 = vadd.f32 %v9837_v46, %v1811_v32  ;;  %v1809_v38 = vmul.f32 %v9827_v21, %v1675_v26  ;;  %v2785_v50 = vrot.slane %v2783_v3, 1  ;;  %v9883_v32 = vld [vmem:[#allocation2 + $0x38] sm:$0xff]   ;;  %v7286_v26 = vpop.f32.mrb[124].mxu0  ;;  %v9888_v3 = vld [vmem:[%s10862_s5 + $0x20] sm:$0xff]  }
 0x1e8   : > { %7326 = vmatprep.subr.bf16.mxu0 %v7976_v14  ;;  %v2455_v60 = vmul.f32 %v11202_v9, %v2423_v58  ;;  %v1680_v12 = vmax.f32 %v1536_v34, 0.0  ;;  %v1678_v39 = vmax.f32 %v1528_v35, 0.0  ;;  %v2787_v24 = vshrl.u32 %v9821_v10, 16  ;;  %v9892_v34 = vld [vmem:[#allocation2 + $0x30] sm:$0xff]   ;;  %v1543_v35 = vpop.f32.mrb[125].mxu0 }
 0x1e9   : > { %v6909_v20 = vpack.c.bf16 %v2457_v29, %v2457_v29  ;;  %v2426_v19 = vmax.f32 %v11203_v48, %v1945_v23  ;;  %v1943_v52 = vadd.f32 %v9837_v46, %v1809_v38  ;;  %v2786_v2 = vsel %vm2758_vm4, %v2781_v30, %v2785_v50  ;;  %v7287_v38 = vpop.f32.mrb[126].mxu0 }
 0x1ea   : > { %v6907_v47 = vpack.c.bf16 %v2455_v60, %v2455_v60  ;;  %7296 = vmatprep.mubr.msk.bf16.mxu0 %vm2903_vm5, %v2786_v2  ;;  %v1814_v44 = vmul.f32 %v9827_v21, %v1680_v12  ;;  %v1812_v43 = vmul.f32 %v9827_v21, %v1678_v39  ;;  %v2789_v62 = vor.u32 %v2787_v24, %v2785_v50  ;;  %v1546_v60 = vpop.f32.mrb[127].mxu0 }
 0x1eb   : > { %vm3327_vm7 = vcmask 1046528   ;;  %2618 = vst.msk [vmem:[#allocation2 + $0x58] sm:$0xf] %vm2595_vm6, %v6909_v20  ;;  %v2458_v15 = vmul.f32 %v11204_v18, %v2426_v19  ;;  %v2424_v59 = vmax.f32 %v11205_v56, %v1943_v52  ;;  %v2791_v5 = vshll.u32 %v9857_v16, 16  ;;  %7327 = vmatpush3.bf16.msra.mxu0 %v7976_v14 }
 0x1ec   : > { %v1539_v42 = vadd.f32 %v9812_v7, %v7283_v28  ;;  %2616 = vst.msk [vmem:[#allocation2 + $0x50] sm:$0xf] %vm2595_vm6, %v6907_v47  ;;  %v1948_v41 = vadd.f32 %v9837_v46, %v1814_v44  ;;  %v1946_v17 = vadd.f32 %v9837_v46, %v1812_v43  ;;  %v1531_v1 = vadd.f32 %v9812_v7, %v1530_v0 }
 0x1ed   : > { %v2795_v4 = vshrl.u32 %v9857_v16, 16  ;;  %7360 = vmatprep.subr.bf16.mxu0 %v9888_v3  ;;  %v6910_v14 = vpack.c.bf16 %v2458_v15, %v2458_v15  ;;  %v2456_v8 = vmul.f32 %v9605_v45, %v2424_v59  ;;  %v2793_v58 = vrot.slane %v2791_v5, 1 }
 0x1ee   : > { %v1681_v30 = vmax.f32 %v1539_v42, 0.0  ;;  %v2429_v28 = vmax.f32 %v9567_v54, %v1948_v41  ;;  %v2427_v36 = vmax.f32 %v9578_v37, %v1946_v17  ;;  %v1679_v29 = vmax.f32 %v1531_v1, 0.0 }
 0x1ef   : > { %v2799_v23 = vshll.u32 %v9865_v53, 16  ;;  %2619 = vst.msk [vmem:[#allocation2 + $0x5c] sm:$0xf] %vm2595_vm6, %v6910_v14  ;;  %v6908_v50 = vpack.c.bf16 %v2456_v8, %v2456_v8  ;;  %v2794_v0 = vsel %vm2758_vm4, %v2789_v62, %v2793_v58  ;;  %v2797_v9 = vor.u32 %v2795_v4, %v2793_v58 }
 0x1f0   : > { %v1815_v45 = vmul.f32 %v9827_v21, %v1681_v30  ;;  %v2461_v12 = vmul.f32 %v9611_v49, %v2429_v28  ;;  %v2459_v39 = vmul.f32 %v9626_v51, %v2427_v36  ;;  %7297 = vmatmul.mubr.msk.bf16.gmra.mrb[132].mxu0 %vm2903_vm5, %v2794_v0  ;;  %v1813_v37 = vmul.f32 %v9827_v21, %v1679_v29 }
 0x1f1   : > { %v2801_v54 = vrot.slane %v2799_v23, 1  ;;  %2617 = vst.msk [vmem:[#allocation2 + $0x54] sm:$0xf] %vm2595_vm6, %v6908_v50  ;;  %v10896_v20 = vrot.slane %v9892_v34, 1  ;;  %v3341_v48 = vrot.slane %v9883_v32, 1  ;;  %v1552_v19 = vadd.f32 %v9812_v7, %v7286_v26  ;;  %v11206_v23 = vld [vmem:[#allocation22_spill] sm:$0xff] }
 0x1f2   : > { %v1949_v24 = vadd.f32 %v9837_v46, %v1815_v45  ;;  %v6913_v52 = vpack.c.bf16 %v2461_v12, %v2461_v12  ;;  %v6911_v2 = vpack.c.bf16 %v2459_v39, %v2459_v39  ;;  %v1947_v49 = vadd.f32 %v9837_v46, %v1813_v37  ;;  %v11207_v39 = vld [vmem:[#allocation23_spill] sm:$0xff] }
 0x1f3   : > { %v2802_v51 = vsel %vm2758_vm4, %v2797_v9, %v2801_v54  ;;  %v3342_v44 = vsel %vm3327_vm7, %v10896_v20, %v3341_v48  ;;  %v1684_v43 = vmax.f32 %v1552_v19, 0.0  ;;  %v1544_v62 = vadd.f32 %v9812_v7, %v1543_v35  ;;  %v9953_v9 = vld [vmem:[#allocation2 + $0x40] sm:$0xff]  }
 0x1f4   : > { %v2430_v47 = vmax.f32 %v9592_v57, %v1949_v24  ;;  %7300 = vmatprep.mubr.msk.bf16.mxu0 %vm2903_vm5, %v2802_v51  ;;  %2622 = vst.msk [vmem:[#allocation2 + $0x68] sm:$0xf] %vm2595_vm6, %v6913_v52  ;;  %2620 = vst.msk [vmem:[#allocation2 + $0x60] sm:$0xf] %vm2595_vm6, %v6911_v2  ;;  %v2428_v18 = vmax.f32 %v9600_v27, %v1947_v49  ;;  %7376 = vmatprep.mubr.msk.bf16.mxu1 %vm2903_vm5, %v3342_v44  ;;  %vm2079_vm8 = vcmp.ge.s32.totalorder %v2015_v11, 1 }
 0x1f5   : > { %vm2111_vm9 = vcmp.le.s32.totalorder %v2015_v11, 14  ;;  %vm2175_vm10 = vcmp.ge.s32.totalorder %v2047_v6, 1  ;;  %v1818_v15 = vmul.f32 %v9827_v21, %v1684_v43  ;;  %v1682_v56 = vmax.f32 %v1544_v62, 0.0 }
 0x1f6   : > { %v2462_v57 = vmul.f32 %v9656_v31, %v2430_v47  ;;  %vm2143_vm11 = vmand %vm2079_vm8, %vm2111_vm9  ;;  %v2803_v59 = vshrl.u32 %v9865_v53, 16  ;;  %v2460_v27 = vmul.f32 %v9670_v61, %v2428_v18  ;;  %v2807_v5 = vshll.u32 %v9892_v34, 16 }
 0x1f7   : > { %vm2207_vm12 = vmand %vm2143_vm11, %vm2175_vm10  ;;  %v1555_v42 = vadd.f32 %v9812_v7, %v7287_v38  ;;  %v1986_v11 = vadd.s32 248, %v8437_v55  ;;  %v1952_v33 = vadd.f32 %v9837_v46, %v1818_v15  ;;  %v1816_v31 = vmul.f32 %v9827_v21, %v1682_v56 }
 0x1f8   : > { %v6914_v41 = vpack.c.bf16 %v2462_v57, %v2462_v57  ;;  %v6560_v6 = vsel %vm2207_vm12, 1.0, %v10957_v63  ;;  %v6912_v17 = vpack.c.bf16 %v2460_v27, %v2460_v27  ;;  %v2805_v1 = vor.u32 %v2803_v59, %v2801_v54  ;;  %v9963_v47 = vld [vmem:[#allocation2 + $0x50] sm:$0xff]   ;;  %v9972_v59 = vld [vmem:[#allocation2 + $0x58] sm:$0xff]  }
 0x1f9   : > { %v2809_v4 = vrot.slane %v2807_v5, 1  ;;  %v1685_v26 = vmax.f32 %v1555_v42, 0.0  ;;  %v2433_v61 = vmax.f32 %v9621_v40, %v1952_v33  ;;  %v1950_v14 = vadd.f32 %v9837_v46, %v1816_v31  ;;  %v9950_v40 = vld [vmem:[#allocation2 + $0x48] sm:$0xff]   ;;  %v11208_v57 = vld [vmem:[#allocation8_spill] sm:$0xff] }
 0x1fa   : > { %2623 = vst.msk [vmem:[#allocation2 + $0x6c] sm:$0xf] %vm2595_vm6, %v6914_v41  ;;  %v2018_v8 = vshra.s32 %v1986_v11, 4  ;;  %v2050_v58 = vand.u32 15, %v1986_v11  ;;  %2621 = vst.msk [vmem:[#allocation2 + $0x64] sm:$0xf] %vm2595_vm6, %v6912_v17  ;;  %v1547_v28 = vadd.f32 %v9812_v7, %v1546_v60 }
 0x1fb   : > { %v2810_v30 = vsel %vm2758_vm4, %v2805_v1, %v2809_v4  ;;  %v1819_v35 = vmul.f32 %v9827_v21, %v1685_v26  ;;  %v1984_v36 = vadd.s32 232, %v8437_v55  ;;  %v2465_v29 = vmul.f32 %v9736_v25, %v2433_v61  ;;  %v7970_v27 = vld [vmem:[%s10862_s5 + $0x38] sm:$0xff]   ;;  %v9995_v26 = vld [vmem:[%s10862_s5 + $0x40] sm:$0xff]  }
 0x1fc   : > { %v2431_v38 = vmax.f32 %v11206_v23, %v1950_v14  ;;  %7301 = vmatmul.mubr.msk.bf16.gmra.mrb[136].mxu0 %vm2903_vm5, %v2810_v30  ;;  %vm2082_vm13 = vcmp.ge.s32.totalorder %v2018_v8, 1  ;;  %vm2114_vm14 = vcmp.le.s32.totalorder %v2018_v8, 14  ;;  %vm2242_vm0 = vcmp.le.s32.totalorder %v2050_v58, 14 }
 0x1fd   : > { %v1953_v50 = vadd.f32 %v9837_v46, %v1819_v35  ;;  %vm2146_vm15 = vmand %vm2082_vm13, %vm2114_vm14  ;;  %v1683_v0 = vmax.f32 %v1547_v28, 0.0  ;;  %v2016_v45 = vshra.s32 %v1984_v36, 4  ;;  %v6917_v7 = vpack.c.bf16 %v2465_v29, %v2465_v29 }
 0x1fe   : > { %v2463_v55 = vmul.f32 %v6560_v6, %v2431_v38  ;;  %vm2274_vm1 = vmand %vm2146_vm15, %vm2242_vm0  ;;  %v2048_v25 = vand.u32 15, %v1984_v36  ;;  %v2811_v60 = vshrl.u32 %v9892_v34, 16  ;;  %v2815_v49 = vshll.u32 %v9883_v32, 16  ;;  %v8061_v6 = vld [vmem:[%s10862_s5 + $0x30] sm:$0xff]  }
 0x1ff   : > { %v6563_v12 = vsel %vm2274_vm1, 1.0, %v10957_v63  ;;  %v2434_v37 = vmax.f32 %v11207_v39, %v1953_v50  ;;  %v1817_v54 = vmul.f32 %v9827_v21, %v1683_v0  ;;  %vm2080_vm2 = vcmp.ge.s32.totalorder %v2016_v45, 1  ;;  %2626 = vst.msk [vmem:[#allocation2 + $0x78] sm:$0xf] %vm2595_vm6, %v6917_v7 }
 0x200   : > { %v6915_v24 = vpack.c.bf16 %v2463_v55, %v2463_v55  ;;  %vm2112_vm3 = vcmp.le.s32.totalorder %v2016_v45, 14  ;;  %vm2240_vm8 = vcmp.le.s32.totalorder %v2048_v25, 14  ;;  %v2813_v19 = vor.u32 %v2811_v60, %v2809_v4 }
 0x201   : > { %v2466_v52 = vmul.f32 %v6563_v12, %v2434_v37  ;;  %v1951_v2 = vadd.f32 %v9837_v46, %v1817_v54  ;;  %vm2144_vm9 = vmand %vm2080_vm2, %vm2112_vm3  ;;  %v3343_v51 = vrot.slane %v9953_v9, 1  ;;  %v3345_v21 = vrot.slane %v9950_v40, 1  ;;  %v9990_v4 = vld [vmem:[#allocation2 + $0x60] sm:$0xff]   ;;  %v10011_v7 = vld [vmem:[#allocation2 + $0x68] sm:$0xff]  }
 0x202   : > { %2624 = vst.msk [vmem:[#allocation2 + $0x70] sm:$0xf] %vm2595_vm6, %v6915_v24  ;;  %vm2272_vm10 = vmand %vm2144_vm9, %vm2240_vm8  ;;  %v2819_v44 = vshrl.u32 %v9883_v32, 16  ;;  %v2823_v43 = vshll.u32 %v9953_v9, 16  ;;  %v2827_v62 = vshrl.u32 %v9953_v9, 16  ;;  %v2817_v56 = vrot.slane %v2815_v49, 1 }
 0x203   : > { %v6918_v18 = vpack.c.bf16 %v2466_v52, %v2466_v52  ;;  %v6561_v46 = vsel %vm2272_vm10, 1.0, %v10957_v63  ;;  %v2432_v15 = vmax.f32 %v11208_v57, %v1951_v2  ;;  %v3344_v5 = vsel %vm3327_vm7, %v3341_v48, %v3343_v51 }
 0x204   : > { %v3346_v42 = vsel %vm3327_vm7, %v3343_v51, %v3345_v21  ;;  %v2825_v11 = vrot.slane %v2823_v43, 1  ;;  %v2831_v41 = vshll.u32 %v9950_v40, 16  ;;  %v2818_v33 = vsel %vm2758_vm4, %v2813_v19, %v2817_v56  ;;  %7377 = vmatmul.mubr.msk.bf16.vlgmr.msra.gmra.mrb[0].mxu1 %vm2903_vm5, %v3344_v5 }
 0x205   : > { %2627 = vst.msk [vmem:[#allocation2 + $0x7c] sm:$0xf] %vm2595_vm6, %v6918_v18  ;;  %v2464_v63 = vmul.f32 %v6561_v46, %v2432_v15  ;;  %v2821_v31 = vor.u32 %v2819_v44, %v2817_v56  ;;  %7304 = vmatprep.mubr.msk.bf16.mxu0 %vm2903_vm5, %v2818_v33  ;;  %7397 = vmatpush3.bf16.msra.mxu1 %v8061_v6  ;;  %v3347_v1 = vrot.slane %v9963_v47, 1  ;;  %v3349_v8 = vrot.slane %v9972_v59, 1 }
 0x206   : > { %v2829_v48 = vor.u32 %v2827_v62, %v2825_v11  ;;  %v2833_v17 = vrot.slane %v2831_v41, 1  ;;  %7380 = vmatprep.mubr.msk.bf16.mxu1 %vm2903_vm5, %v3346_v42  ;;  %v2839_v58 = vshll.u32 %v9963_v47, 16  ;;  %7398 = vmatprep.subr.bf16.mxu1 %v7970_v27  ;;  %v2835_v35 = vshrl.u32 %v9950_v40, 16 }
 0x207   : > { %v6916_v61 = vpack.c.bf16 %v2464_v63, %v2464_v63  ;;  %v2826_v14 = vsel %vm2758_vm4, %v2821_v31, %v2825_v11  ;;  %v2843_v36 = vshrl.u32 %v9963_v47, 16  ;;  %v2847_v29 = vshll.u32 %v9972_v59, 16 }
 0x208   : > { %7305 = vmatmul.mubr.msk.bf16.gmra.mrb[140].mxu0 %vm2903_vm5, %v2826_v14  ;;  %v2834_v30 = vsel %vm2758_vm4, %v2829_v48, %v2833_v17  ;;  %v2841_v28 = vrot.slane %v2839_v58, 1  ;;  %v3348_v23 = vsel %vm3327_vm7, %v3345_v21, %v3347_v1  ;;  %v2855_v38 = vshll.u32 %v9990_v4, 16  ;;  %v7974_v58 = vld [vmem:[#allocation2 + $0x8] sm:$0xff]  }
 0x209   : > { %2625 = vst.msk [vmem:[#allocation2 + $0x74] sm:$0xf] %vm2595_vm6, %v6916_v61  ;;  %7308 = vmatprep.mubr.msk.bf16.mxu0 %vm2903_vm5, %v2834_v30  ;;  %7399 = vmatpush3.bf16.msra.mxu1 %v7970_v27  ;;  %v3350_v50 = vsel %vm3327_vm7, %v3347_v1, %v3349_v8  ;;  %v2837_v0 = vor.u32 %v2835_v35, %v2833_v17  ;;  %v2849_v55 = vrot.slane %v2847_v29, 1  ;;  %v3351_v12 = vrot.slane %v9990_v4, 1  ;;  %v4490_v29 = vld [vmem:[#allocation2 + $0x8] sm:$0xe] }
 0x20a   : > { %v2845_v45 = vor.u32 %v2843_v36, %v2841_v28  ;;  %7432 = vmatprep.subr.bf16.mxu1 %v9995_v26  ;;  %v2857_v39 = vrot.slane %v2855_v38, 1  ;;  %v8078_v37 = vmov 0   ;;  %v3353_v54 = vrot.slane %v10011_v7, 1  ;;  %v10058_v36 = vld [vmem:[#allocation2 + $0xc] sm:$0xf]  ;;  %v10063_v38 = vld [vmem:[#allocation2 + $0x18] sm:$0xff]  }
 0x20b   : > { %v2842_v25 = vsel %vm2758_vm4, %v2837_v0, %v2841_v28  ;;  %2628 = vst.msk [vmem:[#allocation2 + $0x80] sm:$0xf] %vm2595_vm6, %v8078_v37  ;;  %2629 = vst.msk [vmem:[#allocation2 + $0x84] sm:$0xf] %vm2595_vm6, %v8078_v37  ;;  %v2859_v24 = vshrl.u32 %v9990_v4, 16  ;;  %v2863_v19 = vshll.u32 %v10011_v7, 16  ;;  %v3352_v49 = vsel %vm3327_vm7, %v3349_v8, %v3351_v12 }
 0x20c   : > { %7381 = vmatmul.mubr.msk.bf16.gmra.mrb[4].mxu1 %vm2903_vm5, %v3348_v23  ;;  %v2850_v60 = vsel %vm2758_vm4, %v2845_v45, %v2849_v55  ;;  %2630 = vst.msk [vmem:[#allocation2 + $0x88] sm:$0xf] %vm2595_vm6, %v8078_v37  ;;  %2631 = vst.msk [vmem:[#allocation2 + $0x8c] sm:$0xf] %vm2595_vm6, %v8078_v37  ;;  %v2851_v2 = vshrl.u32 %v9972_v59, 16  ;;  %v3354_v44 = vsel %vm3327_vm7, %v3351_v12, %v3353_v54  ;;  %v10035_v62 = vld [vmem:[#allocation2 + $0x78] sm:$0xff]  }
 0x20d   : > { %7384 = vmatprep.mubr.msk.bf16.mxu1 %vm2903_vm5, %v3350_v50  ;;  %2632 = vst.msk [vmem:[#allocation2 + $0x90] sm:$0xf] %vm2595_vm6, %v8078_v37  ;;  %v2861_v51 = vor.u32 %v2859_v24, %v2857_v39  ;;  %v2865_v18 = vrot.slane %v2863_v19, 1  ;;  %v3357_v27 = vrot.slane %v10035_v62, 1  ;;  %v2879_v42 = vshll.u32 %v10035_v62, 16  ;;  %v10061_v23 = vld [vmem:[#allocation2 + $0x10] sm:$0xff]  }
 0x20e   : > { %v2853_v43 = vor.u32 %v2851_v2, %v2849_v55  ;;  %v2867_v11 = vshrl.u32 %v10011_v7, 16  ;;  %v2883_v8 = vshrl.u32 %v10035_v62, 16  ;;  %v10066_v50 = vld [vmem:[#allocation2 + $0x20] sm:$0xff]   ;;  %v10068_v0 = vld [vmem:[#allocation2 + $0x28] sm:$0xff]   ;;  %v10071_v55 = vld [vmem:[#allocation2 + $0x30] sm:$0xff]   ;;  %vm6102_vm6 = vcmask 523264  }
 0x20f   : > { %v2866_v57 = vsel %vm2758_vm4, %v2861_v51, %v2865_v18  ;;  %v2881_v6 = vrot.slane %v2879_v42, 1  ;;  %v10077_v12 = vld [vmem:[#allocation2 + $0x40] sm:$0xff]   ;;  %v7986_v37 = vld [vmem:[%s10862_s5 + $0x48] sm:$0xff]   ;;  %v10086_v24 = vld [vmem:[#allocation2 + $0x50] sm:$0xff]   ;;  %vm6178_vm11 = vcmask 519171   ;;  %vm6184_vm15 = vcmask 518144  }
 0x210   : > { %7309 = vmatmul.mubr.msk.bf16.gmra.mrb[144].mxu0 %vm2903_vm5, %v2842_v25  ;;  %v10028_v52 = vld [vmem:[#allocation2 + $0x70] sm:$0xff]   ;;  %v2858_v46 = vsel %vm2758_vm4, %v2853_v43, %v2857_v39  ;;  %v2869_v31 = vor.u32 %v2867_v11, %v2865_v18  ;;  %v10073_v25 = vld [vmem:[#allocation2 + $0x38] sm:$0xff]   ;;  %v10092_v51 = vld [vmem:[#allocation2 + $0x68] sm:$0xff]   ;;  %v4500_v43 = vrot.slane %v10061_v23, 1  ;;  %v4502_v18 = vrot.slane %v10063_v38, 1 }
 0x211   : > { %7312 = vmatprep.mubr.msk.bf16.mxu0 %vm2903_vm5, %v2850_v60  ;;  %v2871_v21 = vshll.u32 %v10028_v52, 16  ;;  %v3355_v15 = vrot.slane %v10028_v52, 1  ;;  %v2875_v5 = vshrl.u32 %v10028_v52, 16  ;;  %v2885_v30 = vor.u32 %v2883_v8, %v2881_v6  ;;  %v7978_v39 = vld [vmem:[#allocation2 + $0x10] sm:$0xff]   ;;  %v7979_v19 = vld [vmem:[#allocation2 + $0x18] sm:$0xff]  }
 0x212   : > { %v7973_v48 = vld [vmem:[#allocation2 + $0x80] ss:$0 sps:$4 sm:$0x11]   ;;  %v6757_v60 = vcombine.low %v4490_v29, %v10058_v36  ;;  %v10088_v2 = vld [vmem:[#allocation2 + $0x58] sm:$0xff]   ;;  %v4510_v42 = vrot.slane %v10073_v25, 1  ;;  %v4522_v8 = vrot.slane %v10092_v51, 1 }
 0x213   : > { %v2873_v56 = vrot.slane %v2871_v21, 1  ;;  %v3356_v41 = vsel %vm3327_vm7, %v3353_v54, %v3355_v15  ;;  %v3358_v33 = vsel %vm3327_vm7, %v3355_v15, %v3357_v27  ;;  %v2887_v61 = vshll.u32 %v7973_v48, 16  ;;  %v10084_v54 = vld [vmem:[#allocation2 + $0x48] sm:$0xff]   ;;  %v10094_v21 = vld [vmem:[#allocation2 + $0x70] sm:$0xff]   ;;  %v10118_v11 = vld [vmem:[#allocation2 + $0x80] sm:$0xff]  }
 0x214   : > { %7385 = vmatmul.mubr.msk.bf16.gmra.mrb[8].mxu1 %vm2903_vm5, %v3352_v49  ;;  %v3359_v14 = vrot.slane %v7973_v48, 1  ;;  %v10090_v49 = vld [vmem:[#allocation2 + $0x60] sm:$0xff]   ;;  %v10106_v15 = vld [vmem:[%s10862_s5 + $0x50] sm:$0xff]   ;;  %v4516_v48 = vrot.slane %v10086_v24, 1  ;;  %v8063_v29 = vld [vmem:[%s10862_s5 + $0x28] sm:$0xff]   ;;  %vm6239_vm1 = vcmask 519170  }
 0x215   : > { %7388 = vmatprep.mubr.msk.bf16.mxu1 %vm2903_vm5, %v3354_v44  ;;  %v2877_v63 = vor.u32 %v2875_v5, %v2873_v56  ;;  %v2874_v17 = vsel %vm2758_vm4, %v2869_v31, %v2873_v56  ;;  %v2889_v35 = vrot.slane %v2887_v61, 1  ;;  %v10096_v44 = vld [vmem:[#allocation2 + $0x78] sm:$0xff]   ;;  %v4508_v5 = vrot.slane %v10071_v55, 1 }
 0x216   : > { %v3360_v28 = vsel %vm3327_vm7, %v3357_v27, %v3359_v14  ;;  %v10112_v27 = vsel %vm3327_vm7, %v4500_v43, %v4502_v18  ;;  %v4518_v61 = vrot.slane %v10088_v2, 1  ;;  %v4520_v14 = vrot.slane %v10090_v49, 1 }
 0x217   : > { %v2882_v1 = vsel %vm2758_vm4, %v2877_v63, %v2881_v6  ;;  %v2890_v45 = vsel %vm2758_vm4, %v2885_v30, %v2889_v35  ;;  %v10131_v6 = vsel %vm3327_vm7, %v4508_v5, %v4510_v42  ;;  %v4524_v35 = vrot.slane %v10094_v21, 1 }
 0x218   : > { %7313 = vmatmul.mubr.msk.bf16.gmra.mrb[148].mxu0 %vm2903_vm5, %v2858_v46  ;;  %v4504_v46 = vrot.slane %v10066_v50, 1  ;;  %vm6179_vm12 = vsmask.f32 7950  ;;  %vm6208_vm13 = vsmask.f32 2304  ;;  %vm6245_vm3 = vcmask 517120  }
 0x219   : > { %7316 = vmatprep.mubr.msk.bf16.mxu0 %vm2903_vm5, %v2866_v57  ;;  %v4506_v57 = vrot.slane %v10068_v0, 1  ;;  %vm10748_vm14 = vmand %vm6178_vm11, %vm6179_vm12  ;;  %vm6240_vm2 = vsmask.f32 7946  ;;  %vm6269_vm9 = vsmask.f32 1280 }
 0x21a   : > { %vm10783_vm0 = vmand %vm6184_vm15, %vm6208_vm13 }
 0x21b   : > { %v10124_v63 = vsel %vm3327_vm7, %v4504_v46, %v4506_v57  ;;  %v10128_v31 = vsel %vm3327_vm7, %v4506_v57, %v4508_v5  ;;  %v10193_v57 = vld [vmem:[#allocation2 + $0x14] sm:$0xf]  ;;  %v10195_v5 = vld [vmem:[#allocation2 + $0x18] sm:$0xff]   ;;  %vm10819_vm8 = vmand %vm6239_vm1, %vm6240_vm2 }
 0x21c   : > { %7389 = vmatmul.mubr.msk.bf16.gmra.mrb[12].mxu1 %vm2903_vm5, %v3356_v41  ;;  %v10121_v41 = vsel %vm3327_vm7, %v4502_v18, %v4504_v46  ;;  %v7982_v18 = vld [vmem:[#allocation2 + $0x30] sm:$0xff]   ;;  %v7983_v46 = vld [vmem:[#allocation2 + $0x38] sm:$0xff]   ;;  %11209 = vst [vmem:[#allocation24_spill] sm:$0xff] %v10193_v57  ;;  %11210 = vst [vmem:[#allocation25_spill] sm:$0xff] %v10195_v5 }
 0x21d   : > { %7392 = vmatprep.mubr.msk.bf16.mxu1 %vm2903_vm5, %v3358_v33  ;;  %v4512_v33 = vrot.slane %v10077_v12, 1  ;;  %vm6270_vm10 = vmand %vm6245_vm3, %vm6269_vm9 }
 0x220   : > { %7317 = vmatmul.mubr.msk.bf16.gmra.mrb[152].mxu0 %vm2903_vm5, %v2874_v17  ;;  %v10135_v17 = vld [vmem:[#allocation2 + $0x8] sm:$0xff]  }
 0x221   : > { %7320 = vmatprep.mubr.msk.bf16.mxu0 %vm2903_vm5, %v2882_v1  ;;  %v10140_v1 = vsel %vm3327_vm7, %v4510_v42, %v4512_v33  ;;  %v7984_v42 = vld [vmem:[#allocation2 + $0x40] sm:$0xff]  }
 0x224   : > { %7393 = vmatmul.mubr.msk.bf16.gmra.mrb[16].mxu1 %vm2903_vm5, %v3360_v28  ;;  %v4526_v28 = vrot.slane %v10096_v44, 1 }
 0x225   : > { %7400 = vmatprep.mubr.msk.bf16.mxu1 %vm2903_vm5, %v7974_v58 }
 0x228   : > { %7321 = vmatmul.mubr.msk.bf16.gmra.mrb[156].mxu0 %vm2903_vm5, %v2890_v45  ;;  %v10166_v45 = vsel %vm3327_vm7, %v4520_v14, %v4522_v8 }
 0x229   : > { %7328 = vmatprep.mubr.msk.bf16.mxu0 %vm2903_vm5, %v9751_v13  ;;  %v4499_v13 = vrot.slane %v6757_v60, 1  ;;  %v10897_v60 = vrot.slane %v10118_v11, 1 }
 0x22b   : > { %v10109_v56 = vsel %vm3327_vm7, %v4499_v13, %v4500_v43  ;;  %v7981_v13 = vld [vmem:[#allocation2 + $0x28] sm:$0xff]   ;;  %v10179_v43 = vsel %vm3327_vm7, %v4526_v28, %v10897_v60 }
 0x22c   : > { %7401 = vmatmul.mubr.msk.bf16.vlgmr.msra.gmra.mrb[20].mxu1 %vm2903_vm5, %v7978_v39  ;;  %v7980_v39 = vld [vmem:[#allocation2 + $0x20] sm:$0xff]  }
 0x22d   : > { %7433 = vmatpush3.bf16.msra.mxu1 %v9995_v26  ;;  %7404 = vmatprep.mubr.msk.bf16.mxu1 %vm2903_vm5, %v7979_v19  ;;  %v4514_v26 = vrot.slane %v10084_v54, 1  ;;  %v10174_v19 = vsel %vm3327_vm7, %v4524_v35, %v4526_v28  ;;  %v5671_v28 = vrot.slane %v10195_v5, 1 }
 0x22e   : > { %7434 = vmatprep.subr.bf16.mxu1 %v7986_v37 }
 0x22f   : > { %v10149_v58 = vsel %vm3327_vm7, %v4512_v33, %v4514_v26  ;;  %v10152_v30 = vsel %vm3327_vm7, %v4514_v26, %v4516_v48  ;;  %v10201_v33 = vld [vmem:[#allocation2 + $0x30] sm:$0xff]   ;;  %v10203_v26 = vld [vmem:[#allocation2 + $0x38] sm:$0xff]  }
 0x230   : > { %7329 = vmatmul.mubr.msk.bf16.vlgmr.msra.gmra.mrb[128].mxu0 %vm2903_vm5, %v10135_v17  ;;  %11213 = vst [vmem:[#allocation10_spill] sm:$0xff] %v10203_v26 }
 0x231   : > { %7332 = vmatprep.mubr.msk.bf16.mxu0 %vm2903_vm5, %v9798_v22  ;;  %7361 = vmatpush3.bf16.msra.mxu0 %v9888_v3  ;;  %v10160_v22 = vsel %vm3327_vm7, %v4516_v48, %v4518_v61  ;;  %v10163_v3 = vsel %vm3327_vm7, %v4518_v61, %v4520_v14  ;;  %v10205_v48 = vld [vmem:[#allocation2 + $0x40] sm:$0xff]   ;;  %v5661_v61 = vld [vmem:[#allocation2 + $0x10] sm:$0xe]  ;;  %v10207_v14 = vld [vmem:[#allocation2 + $0x48] sm:$0xff]  }
 0x232   : > { %7435 = vmatpush3.bf16.msra.mxu1 %v7986_v37  ;;  %7362 = vmatprep.subr.bf16.mxu0 %v8063_v29  ;;  %v10171_v37 = vsel %vm3327_vm7, %v4522_v8, %v4524_v35  ;;  %11214 = vst [vmem:[#allocation31_spill] sm:$0xff] %v10205_v48  ;;  %v6857_v8 = vcombine.low %v5661_v61, %v10193_v57  ;;  %v10211_v35 = vld [vmem:[#allocation2 + $0x50] sm:$0xff]   ;;  %v5681_v5 = vrot.slane %v10205_v48, 1  ;;  %v5683_v57 = vrot.slane %v10207_v14, 1 }
 0x233   : > { %7468 = vmatprep.subr.bf16.mxu1 %v10106_v15  ;;  %v10223_v61 = vld [vmem:[#allocation2 + $0x70] sm:$0xff]  }
 0x234   : > { %7405 = vmatmul.mubr.msk.bf16.gmra.mrb[24].mxu1 %vm2903_vm5, %v7980_v39  ;;  %v10216_v39 = vld [vmem:[#allocation2 + $0x58] sm:$0xff]  }
 0x235   : > { %7363 = vmatpush3.bf16.msra.mxu0 %v8063_v29  ;;  %7408 = vmatprep.mubr.msk.bf16.mxu1 %vm2903_vm5, %v7981_v13  ;;  %v10218_v13 = vld [vmem:[#allocation2 + $0x60] sm:$0xff]  }
 0x238   : > { %7333 = vmatmul.mubr.msk.bf16.gmra.mrb[132].mxu0 %vm2903_vm5, %v9821_v10  ;;  %v10197_v10 = vld [vmem:[#allocation2 + $0x20] sm:$0xff]  }
 0x239   : > { %7336 = vmatprep.mubr.msk.bf16.mxu0 %vm2903_vm5, %v9857_v16  ;;  %11211 = vst [vmem:[#allocation9_spill] sm:$0xff] %v10197_v10  ;;  %v10199_v16 = vld [vmem:[#allocation2 + $0x28] sm:$0xff]   ;;  %v5673_v29 = vrot.slane %v10197_v10, 1  ;;  %v5677_v10 = vrot.slane %v10201_v33, 1 }
 0x23a   : > { %11212 = vst [vmem:[#allocation29_spill] sm:$0xff] %v10199_v16  ;;  %v5675_v20 = vrot.slane %v10199_v16, 1 }
 0x23b   : > { %v10228_v60 = vsel %vm3327_vm7, %v5671_v28, %v5673_v29 }
 0x23c   : > { %7409 = vmatmul.mubr.msk.bf16.gmra.mrb[28].mxu1 %vm2903_vm5, %v7982_v18  ;;  %v10220_v18 = vld [vmem:[#allocation2 + $0x68] sm:$0xff]   ;;  %11215 = vst [vmem:[#allocation11_spill] sm:$0xff] %v10228_v60  ;;  %v10239_v16 = vsel %vm3327_vm7, %v5673_v29, %v5675_v20  ;;  %v10245_v60 = vsel %vm3327_vm7, %v5675_v20, %v5677_v10  ;;  %v5687_v29 = vrot.slane %v10216_v39, 1 }
 0x23d   : > { %7412 = vmatprep.mubr.msk.bf16.mxu1 %vm2903_vm5, %v7983_v46  ;;  %v5670_v46 = vrot.slane %v6857_v8, 1  ;;  %11216 = vst [vmem:[#allocation32_spill] sm:$0xff] %v10239_v16  ;;  %11217 = vst [vmem:[#allocation34_spill] sm:$0xff] %v10245_v60  ;;  %v7987_v16 = vld [vmem:[#allocation2 + $0x50] sm:$0xff]  }
 0x23f   : > { %v10236_v8 = vsel %vm3327_vm7, %v5670_v46, %v5671_v28  ;;  %v10255_v28 = vsel %vm3327_vm7, %v5681_v5, %v5683_v57  ;;  %v5689_v46 = vrot.slane %v10218_v13, 1 }
 0x240   : > { %7337 = vmatmul.mubr.msk.bf16.gmra.mrb[136].mxu0 %vm2903_vm5, %v9865_v53  ;;  %v7985_v53 = vld [vmem:[#allocation2 + $0x48] sm:$0xff]   ;;  %11220 = vst [vmem:[#allocation36_spill] sm:$0xff] %v10255_v28 }
 0x241   : > { %7340 = vmatprep.mubr.msk.bf16.mxu0 %vm2903_vm5, %v9892_v34 }
 0x244   : > { %7413 = vmatmul.mubr.msk.bf16.gmra.mrb[0].mxu1 %vm2903_vm5, %v7984_v42  ;;  %v10225_v42 = vld [vmem:[#allocation2 + $0x78] sm:$0xff]  }
 0x245   : > { %7416 = vmatprep.mubr.msk.bf16.mxu1 %vm2903_vm5, %v7985_v53  ;;  %v5679_v53 = vrot.slane %v10203_v26, 1 }
 0x247   : > { %v10248_v26 = vsel %vm3327_vm7, %v5677_v10, %v5679_v53  ;;  %v10251_v48 = vsel %vm3327_vm7, %v5679_v53, %v5681_v5  ;;  %v5693_v10 = vrot.slane %v10223_v61, 1  ;;  %v10909_v53 = vrot.slane %v10225_v42, 1 }
 0x248   : > { %7341 = vmatmul.mubr.msk.bf16.gmra.mrb[140].mxu0 %vm2903_vm5, %v9883_v32  ;;  %11218 = vst [vmem:[#allocation35_spill] sm:$0xff] %v10248_v26  ;;  %11219 = vst [vmem:[#allocation12_spill] sm:$0xff] %v10251_v48  ;;  %v5685_v32 = vrot.slane %v10211_v35, 1  ;;  %v7988_v48 = vld [vmem:[#allocation2 + $0x58] sm:$0xff]   ;;  %v10269_v5 = vsel %vm3327_vm7, %v5687_v29, %v5689_v46 }
 0x249   : > { %7344 = vmatprep.mubr.msk.bf16.mxu0 %vm2903_vm5, %v9953_v9  ;;  %v5691_v9 = vrot.slane %v10220_v18, 1 }
 0x24a   : > { %v10261_v20 = vsel %vm3327_vm7, %v5683_v57, %v5685_v32  ;;  %v10266_v26 = vsel %vm3327_vm7, %v5685_v32, %v5687_v29  ;;  %v10281_v57 = vsel %vm3327_vm7, %v5693_v10, %v10909_v53  ;;  %v7989_v32 = vld [vmem:[#allocation2 + $0x60] sm:$0xff]   ;;  %v7990_v29 = vld [vmem:[#allocation2 + $0x68] sm:$0xff]  }
 0x24b   : > { %v10272_v28 = vsel %vm3327_vm7, %v5689_v46, %v5691_v9  ;;  %v10276_v60 = vsel %vm3327_vm7, %v5691_v9, %v5693_v10  ;;  %11223 = vst [vmem:[#allocation39_spill] sm:$0xff] %v10281_v57  ;;  %v7992_v9 = vld [vmem:[#allocation2 + $0x78] sm:$0xff]   ;;  %v10295_v10 = vld [vmem:[#allocation2 + $0x88] ss:$0 sps:$4 sm:$0x11]  }
 0x24c   : > { %11221 = vst [vmem:[#allocation37_spill] sm:$0xff] %v10272_v28  ;;  %7417 = vmatmul.mubr.msk.bf16.gmra.mrb[4].mxu1 %vm2903_vm5, %v7987_v16  ;;  %11222 = vst [vmem:[#allocation38_spill] sm:$0xff] %v10276_v60  ;;  %v3984_v16 = vld [vmem:[#allocation2 + $0x8] sm:$0xf] }
 0x24d   : > { %7420 = vmatprep.mubr.msk.bf16.mxu1 %vm2903_vm5, %v7988_v48  ;;  %v6718_v46 = vcombine.low %v3984_v16, %v10058_v36  ;;  %v7991_v48 = vld [vmem:[#allocation2 + $0x70] sm:$0xff]   ;;  %v11224_v16 = vrot.slane %v10118_v11, 1 }
 0x24f   : > { %v4106_v57 = vshrl.u32 %v6718_v46, 16 }
 0x250   : > { %7345 = vmatmul.mubr.msk.bf16.gmra.mrb[144].mxu0 %vm2903_vm5, %v9950_v40  ;;  %v4108_v40 = vshll.u32 %v6718_v46, 16  ;;  %v4125_v46 = vshrl.u32 %v10063_v38, 16 }
 0x251   : > { %7348 = vmatprep.mubr.msk.bf16.mxu0 %vm2903_vm5, %v9963_v47  ;;  %v4113_v47 = vshll.u32 %v10061_v23, 16 }
 0x252   : > { %v4110_v36 = vrot.slane %v4108_v40, 1  ;;  %v4121_v40 = vshll.u32 %v10063_v38, 16  ;;  %v4145_v38 = vshll.u32 %v10071_v55, 16 }
 0x254   : > { %7421 = vmatmul.mubr.msk.bf16.gmra.mrb[8].mxu1 %vm2903_vm5, %v7989_v32  ;;  %v4530_v32 = vrot.slane %v10295_v10, 1  ;;  %v4111_v60 = vor.u32 %v4110_v36, %v4106_v57  ;;  %v8065_v36 = vld [vmem:[#allocation2 + $0x10] sm:$0xff]  }
 0x255   : > { %7424 = vmatprep.mubr.msk.bf16.mxu1 %vm2903_vm5, %v7990_v29  ;;  %v3318_v29 = vld [vmem:[#allocation2] sm:$0xe] }
 0x256   : > { %v10306_v53 = vsel %vm3327_vm7, %v11224_v16, %v4530_v32  ;;  %v3329_v32 = vrot.slane %v10135_v17, 1  ;;  %v8005_v17 = vld [vmem:[%s10862_s5 + $0x58] sm:$0xff]  }
 0x258   : > { %7349 = vmatmul.mubr.msk.bf16.gmra.mrb[148].mxu0 %vm2903_vm5, %v9972_v59  ;;  %v8064_v59 = vld [vmem:[#allocation2 + $0x4] sm:$0xf] }
 0x259   : > { %7352 = vmatprep.mubr.msk.bf16.mxu0 %vm2903_vm5, %v9990_v4  ;;  %v6657_v4 = vcombine.low %v3318_v29, %v8064_v59  ;;  %v4129_v29 = vshll.u32 %v10066_v50, 16  ;;  %v4117_v59 = vshrl.u32 %v10061_v23, 16  ;;  %v4137_v23 = vshll.u32 %v10068_v0, 16 }
 0x25b   : > { %v3328_v28 = vrot.slane %v6657_v4, 1  ;;  %v3331_v4 = vrot.slane %v8065_v36, 1 }
 0x25c   : > { %7425 = vmatmul.mubr.msk.bf16.gmra.mrb[12].mxu1 %vm2903_vm5, %v7991_v48  ;;  %v7993_v48 = vld [vmem:[#allocation2 + $0x80] sm:$0xff]  }
 0x25d   : > { %7428 = vmatprep.mubr.msk.bf16.mxu1 %vm2903_vm5, %v7992_v9  ;;  %v4115_v9 = vrot.slane %v4113_v47, 1  ;;  %v3330_v57 = vsel %vm3327_vm7, %v3328_v28, %v3329_v32 }
 0x25f   : > { %v4119_v16 = vor.u32 %v4117_v59, %v4115_v9  ;;  %v10337_v59 = vld [vmem:[%s10862_s5 + $0x60] sm:$0xff]  }
 0x260   : > { %7353 = vmatmul.mubr.msk.bf16.gmra.mrb[152].mxu0 %vm2903_vm5, %v10011_v7  ;;  %v4116_v7 = vsel %vm2758_vm4, %v4111_v60, %v4115_v9  ;;  %v4131_v60 = vrot.slane %v4129_v29, 1  ;;  %v8066_v9 = vld [vmem:[#allocation2 + $0x18] sm:$0xff]   ;;  %v4139_v29 = vrot.slane %v4137_v23, 1  ;;  %v8068_v23 = vld [vmem:[#allocation2 + $0x28] sm:$0xff]  }
 0x261   : > { %7356 = vmatprep.mubr.msk.bf16.mxu0 %vm2903_vm5, %v10028_v52  ;;  %v4123_v52 = vrot.slane %v4121_v40, 1  ;;  %v4133_v40 = vshrl.u32 %v10066_v50, 16 }
 0x263   : > { %v4127_v47 = vor.u32 %v4125_v46, %v4123_v52 }
 0x264   : > { %7429 = vmatmul.mubr.msk.bf16.gmra.mrb[16].mxu1 %vm2903_vm5, %v7993_v48  ;;  %v4124_v48 = vsel %vm2758_vm4, %v4119_v16, %v4123_v52  ;;  %v4135_v16 = vor.u32 %v4133_v40, %v4131_v60  ;;  %v4157_v40 = vshrl.u32 %v10073_v25, 16 }
 0x265   : > { %7436 = vmatprep.mubr.msk.bf16.mxu1 %vm2903_vm5, %v4116_v7  ;;  %v4132_v28 = vsel %vm2758_vm4, %v4127_v47, %v4131_v60  ;;  %v3332_v7 = vsel %vm3327_vm7, %v3329_v32, %v3331_v4  ;;  %v8067_v32 = vld [vmem:[#allocation2 + $0x20] sm:$0xff]   ;;  %v4153_v47 = vshll.u32 %v10073_v25, 16 }
 0x266   : > { %v3335_v46 = vrot.slane %v8067_v32, 1  ;;  %v4140_v36 = vsel %vm2758_vm4, %v4135_v16, %v4139_v29 }
 0x268   : > { %7357 = vmatmul.mubr.msk.bf16.gmra.mrb[156].mxu0 %vm2903_vm5, %v10035_v62  ;;  %v3333_v62 = vrot.slane %v8066_v9, 1  ;;  %v4155_v9 = vrot.slane %v4153_v47, 1 }
 0x269   : > { %7364 = vmatprep.mubr.msk.bf16.mxu0 %vm2903_vm5, %v3330_v57  ;;  %v4147_v57 = vrot.slane %v4145_v38, 1 }
 0x26a   : > { %v3334_v52 = vsel %vm3327_vm7, %v3331_v4, %v3333_v62  ;;  %v4161_v4 = vshll.u32 %v10077_v12, 16 }
 0x26c   : > { %7437 = vmatmul.mubr.msk.bf16.vlgmr.msra.gmra.mrb[20].mxu1 %vm2903_vm5, %v4124_v48  ;;  %v3337_v48 = vrot.slane %v8068_v23, 1  ;;  %v4185_v23 = vshll.u32 %v10088_v2, 16 }
 0x26d   : > { %7469 = vmatpush3.bf16.msra.mxu1 %v10106_v15  ;;  %7440 = vmatprep.mubr.msk.bf16.mxu1 %vm2903_vm5, %v4132_v28  ;;  %v4141_v15 = vshrl.u32 %v10068_v0, 16  ;;  %v4149_v0 = vshrl.u32 %v10071_v55, 16 }
 0x26e   : > { %7470 = vmatprep.subr.bf16.mxu1 %v8005_v17  ;;  %v3338_v28 = vsel %vm3327_vm7, %v3335_v46, %v3337_v48 }
 0x26f   : > { %v4143_v50 = vor.u32 %v4141_v15, %v4139_v29  ;;  %v4151_v38 = vor.u32 %v4149_v0, %v4147_v57  ;;  %v4159_v29 = vor.u32 %v4157_v40, %v4155_v9  ;;  %v4165_v15 = vshrl.u32 %v10077_v12, 16 }
 0x270   : > { %7365 = vmatmul.mubr.msk.bf16.vlgmr.msra.gmra.mrb[128].mxu0 %vm2903_vm5, %v3332_v7  ;;  %v4163_v7 = vrot.slane %v4161_v4, 1  ;;  %v4187_v4 = vrot.slane %v4185_v23, 1  ;;  %v4233_v23 = vshll.u32 %v10295_v10, 16  ;;  %v11226_v10 = vld [vmem:[#allocation24_spill] sm:$0xff] }
 0x271   : > { %7368 = vmatprep.mubr.msk.bf16.mxu0 %vm2903_vm5, %v3334_v52  ;;  %7471 = vmatpush3.bf16.msra.mxu1 %v8005_v17  ;;  %v4148_v60 = vsel %vm2758_vm4, %v4143_v50, %v4147_v57  ;;  %v3336_v17 = vsel %vm3327_vm7, %v3333_v62, %v3335_v46  ;;  %v4169_v52 = vshll.u32 %v10084_v54, 16  ;;  %v4156_v16 = vsel %vm2758_vm4, %v4151_v38, %v4155_v9 }
 0x272   : > { %7504 = vmatprep.subr.bf16.mxu1 %v10337_v59  ;;  %v4164_v55 = vsel %vm2758_vm4, %v4159_v29, %v4163_v7  ;;  %v4177_v62 = vshll.u32 %v10086_v24, 16  ;;  %v11225_v57 = vrot.slane %v9892_v34, 1  ;;  %v4167_v32 = vor.u32 %v4165_v15, %v4163_v7 }
 0x273   : > { %v4171_v50 = vrot.slane %v4169_v52, 1  ;;  %v4173_v46 = vshrl.u32 %v10084_v54, 16  ;;  %v4193_v34 = vshll.u32 %v10090_v49, 16  ;;  %v4189_v54 = vshrl.u32 %v10088_v2, 16 }
 0x274   : > { %7441 = vmatmul.mubr.msk.bf16.gmra.mrb[24].mxu1 %vm2903_vm5, %v4140_v36  ;;  %v3340_v25 = vsel %vm3327_vm7, %v3337_v48, %v11225_v57  ;;  %v4179_v47 = vrot.slane %v4177_v62, 1  ;;  %v4181_v48 = vshrl.u32 %v10086_v24, 16  ;;  %v4209_v7 = vshll.u32 %v10094_v21, 16 }
 0x275   : > { %7444 = vmatprep.mubr.msk.bf16.mxu1 %vm2903_vm5, %v4148_v60  ;;  %v4175_v36 = vor.u32 %v4173_v46, %v4171_v50  ;;  %v4172_v60 = vsel %vm2758_vm4, %v4167_v32, %v4171_v50  ;;  %v4191_v9 = vor.u32 %v4189_v54, %v4187_v4  ;;  %v4197_v24 = vshrl.u32 %v10090_v49, 16 }
 0x276   : > { %v4183_v0 = vor.u32 %v4181_v48, %v4179_v47  ;;  %v4205_v2 = vshrl.u32 %v10092_v51, 16  ;;  %v4225_v50 = vshll.u32 %v10118_v11, 16  ;;  %v4213_v49 = vshrl.u32 %v10094_v21, 16 }
 0x277   : > { %v4180_v12 = vsel %vm2758_vm4, %v4175_v36, %v4179_v47  ;;  %v4221_v32 = vshrl.u32 %v10096_v44, 16  ;;  %v4229_v36 = vshrl.u32 %v10118_v11, 16  ;;  %v4235_v48 = vrot.slane %v4233_v23, 1  ;;  %v8017_v11 = vld [vmem:[%s10862_s5 + $0x70] sm:$0xff]  }
 0x278   : > { %7369 = vmatmul.mubr.msk.bf16.gmra.mrb[132].mxu0 %vm2903_vm5, %v3336_v17  ;;  %v4195_v17 = vrot.slane %v4193_v34, 1  ;;  %v4188_v38 = vsel %vm2758_vm4, %v4183_v0, %v4187_v4  ;;  %v4227_v47 = vrot.slane %v4225_v50, 1  ;;  %v8032_v0 = vld [vmem:[#allocation2 + $0x80] sm:$0xff]  }
 0x279   : > { %7372 = vmatprep.mubr.msk.bf16.mxu0 %vm2903_vm5, %v3338_v28  ;;  %v4201_v28 = vshll.u32 %v10092_v51, 16 }
 0x27a   : > { %v4196_v40 = vsel %vm2758_vm4, %v4191_v9, %v4195_v17  ;;  %v4199_v52 = vor.u32 %v4197_v24, %v4195_v17  ;;  %v4231_v34 = vor.u32 %v4229_v36, %v4227_v47  ;;  %v8031_v17 = vld [vmem:[#allocation2 + $0x78] sm:$0xff]   ;;  %v10464_v9 = vld [vmem:[#allocation2 + $0x88] sm:$0xff]  }
 0x27b   : > { %v4203_v29 = vrot.slane %v4201_v28, 1  ;;  %v5699_v24 = vrot.slane %v10464_v9, 1 }
 0x27c   : > { %7445 = vmatmul.mubr.msk.bf16.gmra.mrb[28].mxu1 %vm2903_vm5, %v4156_v16  ;;  %v4211_v16 = vrot.slane %v4209_v7, 1  ;;  %v4236_v21 = vsel %vm2758_vm4, %v4231_v34, %v4235_v48 }
 0x27d   : > { %7448 = vmatprep.mubr.msk.bf16.mxu1 %vm2903_vm5, %v4164_v55  ;;  %v4217_v55 = vshll.u32 %v10096_v44, 16  ;;  %v4207_v62 = vor.u32 %v4205_v2, %v4203_v29  ;;  %v4204_v15 = vsel %vm2758_vm4, %v4199_v52, %v4203_v29  ;;  %v8015_v44 = vld [vmem:[%s10862_s5 + $0x68] sm:$0xff]  }
 0x27e   : > { %v4215_v51 = vor.u32 %v4213_v49, %v4211_v16 }
 0x27f   : > { %v4212_v57 = vsel %vm2758_vm4, %v4207_v62, %v4211_v16  ;;  %v11227_v16 = vld [vmem:[#allocation25_spill] sm:$0xff] }
 0x280   : > { %7373 = vmatmul.mubr.msk.bf16.gmra.mrb[136].mxu0 %vm2903_vm5, %v3340_v25  ;;  %v4219_v25 = vrot.slane %v4217_v55, 1  ;;  %v5284_v55 = vshll.u32 %v11227_v16, 16  ;;  %v5288_v48 = vshrl.u32 %v11227_v16, 16 }
 0x282   : > { %v4223_v46 = vor.u32 %v4221_v32, %v4219_v25  ;;  %v5286_v32 = vrot.slane %v5284_v55, 1  ;;  %v5332_v55 = vshll.u32 %v10207_v14, 16 }
 0x284   : > { %7449 = vmatmul.mubr.msk.bf16.gmra.mrb[0].mxu1 %vm2903_vm5, %v4172_v60  ;;  %v4220_v60 = vsel %vm2758_vm4, %v4215_v51, %v4219_v25  ;;  %v11228_v25 = vld [vmem:[#allocation9_spill] sm:$0xff] }
 0x285   : > { %7452 = vmatprep.mubr.msk.bf16.mxu1 %vm2903_vm5, %v4180_v12  ;;  %v4228_v12 = vsel %vm2758_vm4, %v4223_v46, %v4227_v47  ;;  %v5292_v50 = vshll.u32 %v11228_v25, 16 }
 0x287   : > { %v5294_v36 = vrot.slane %v5292_v50, 1 }
 0x28c   : > { %7453 = vmatmul.mubr.msk.bf16.gmra.mrb[4].mxu1 %vm2903_vm5, %v4188_v38  ;;  %v10468_v38 = vld [vmem:[#allocation2 + $0x90] ss:$0 sps:$4 sm:$0x11]  }
 0x28d   : > { %7456 = vmatprep.mubr.msk.bf16.mxu1 %vm2903_vm5, %v4196_v40  ;;  %v5701_v52 = vrot.slane %v10468_v38, 1 }
 0x28f   : > { %v10482_v62 = vsel %vm3327_vm7, %v5699_v24, %v5701_v52 }
 0x294   : > { %7457 = vmatmul.mubr.msk.bf16.gmra.mrb[8].mxu1 %vm2903_vm5, %v4204_v15  ;;  %v8033_v15 = vld [vmem:[#allocation2 + $0x88] sm:$0xff]  }
 0x295   : > { %7460 = vmatprep.mubr.msk.bf16.mxu1 %vm2903_vm5, %v4212_v57 }
 0x29c   : > { %7461 = vmatmul.mubr.msk.bf16.gmra.mrb[12].mxu1 %vm2903_vm5, %v4220_v60  ;;  %v5296_v60 = vshrl.u32 %v11228_v25, 16  ;;  %v5340_v25 = vshll.u32 %v10211_v35, 16 }
 0x29d   : > { %7464 = vmatprep.mubr.msk.bf16.mxu1 %vm2903_vm5, %v4228_v12  ;;  %v11229_v12 = vld [vmem:[#allocation29_spill] sm:$0xff] }
 0x29e   : > { %v5300_v34 = vshll.u32 %v11229_v12, 16 }
 0x2a4   : > { %7465 = vmatmul.mubr.msk.bf16.gmra.mrb[16].mxu1 %vm2903_vm5, %v4236_v21  ;;  %v5298_v21 = vor.u32 %v5296_v60, %v5294_v36 }
 0x2a5   : > { %7472 = vmatprep.mubr.msk.bf16.mxu1 %vm2903_vm5, %v10109_v56  ;;  %v8016_v56 = vld [vmem:[#allocation2 + $0x10] sm:$0xff]  }
 0x2ac   : > { %7473 = vmatmul.mubr.msk.bf16.vlgmr.msra.gmra.mrb[20].mxu1 %vm2903_vm5, %v10112_v27  ;;  %v8018_v27 = vld [vmem:[#allocation2 + $0x18] sm:$0xff]  }
 0x2ad   : > { %7505 = vmatpush3.bf16.msra.mxu1 %v10337_v59  ;;  %7476 = vmatprep.mubr.msk.bf16.mxu1 %vm2903_vm5, %v10121_v41  ;;  %v8026_v41 = vld [vmem:[%s10862_s5 + $0x78] sm:$0xff]  }
 0x2ae   : > { %7506 = vmatprep.subr.bf16.mxu1 %v8015_v44 }
 0x2b1   : > { %7507 = vmatpush3.bf16.msra.mxu1 %v8015_v44  ;;  %v5308_v44 = vshll.u32 %v10201_v33, 16 }
 0x2b2   : > { %7540 = vmatprep.subr.bf16.mxu1 %v8017_v11 }
 0x2b4   : > { %7477 = vmatmul.mubr.msk.bf16.gmra.mrb[24].mxu1 %vm2903_vm5, %v10124_v63  ;;  %v8019_v63 = vld [vmem:[#allocation2 + $0x20] sm:$0xff]  }
 0x2b5   : > { %7480 = vmatprep.mubr.msk.bf16.mxu1 %vm2903_vm5, %v10128_v31  ;;  %v10448_v31 = vld [vmem:[%s10862_s5 + $0x80] sm:$0xff]  }
 0x2bc   : > { %7481 = vmatmul.mubr.msk.bf16.gmra.mrb[28].mxu1 %vm2903_vm5, %v10131_v6  ;;  %v8020_v6 = vld [vmem:[#allocation2 + $0x28] sm:$0xff]  }
 0x2bd   : > { %7484 = vmatprep.mubr.msk.bf16.mxu1 %vm2903_vm5, %v10140_v1  ;;  %v8021_v1 = vld [vmem:[#allocation2 + $0x30] sm:$0xff]  }
 0x2c4   : > { %7485 = vmatmul.mubr.msk.bf16.gmra.mrb[0].mxu1 %vm2903_vm5, %v10149_v58  ;;  %v8022_v58 = vld [vmem:[#allocation2 + $0x38] sm:$0xff]  }
 0x2c5   : > { %7488 = vmatprep.mubr.msk.bf16.mxu1 %vm2903_vm5, %v10152_v30  ;;  %v8023_v30 = vld [vmem:[#allocation2 + $0x40] sm:$0xff]  }
 0x2cc   : > { %7489 = vmatmul.mubr.msk.bf16.gmra.mrb[4].mxu1 %vm2903_vm5, %v10160_v22  ;;  %v8024_v22 = vld [vmem:[#allocation2 + $0x48] sm:$0xff]  }
 0x2cd   : > { %7492 = vmatprep.mubr.msk.bf16.mxu1 %vm2903_vm5, %v10163_v3  ;;  %v8025_v3 = vld [vmem:[#allocation2 + $0x50] sm:$0xff]  }
 0x2d4   : > { %7493 = vmatmul.mubr.msk.bf16.gmra.mrb[8].mxu1 %vm2903_vm5, %v10166_v45  ;;  %v8027_v45 = vld [vmem:[#allocation2 + $0x58] sm:$0xff]  }
 0x2d5   : > { %7496 = vmatprep.mubr.msk.bf16.mxu1 %vm2903_vm5, %v10171_v37  ;;  %v8028_v37 = vld [vmem:[#allocation2 + $0x60] sm:$0xff]  }
 0x2dc   : > { %7497 = vmatmul.mubr.msk.bf16.gmra.mrb[12].mxu1 %vm2903_vm5, %v10174_v19  ;;  %v8029_v19 = vld [vmem:[#allocation2 + $0x68] sm:$0xff]  }
 0x2dd   : > { %7500 = vmatprep.mubr.msk.bf16.mxu1 %vm2903_vm5, %v10179_v43  ;;  %v8030_v43 = vld [vmem:[#allocation2 + $0x70] sm:$0xff]  }
 0x2e4   : > { %7501 = vmatmul.mubr.msk.bf16.gmra.mrb[16].mxu1 %vm2903_vm5, %v10306_v53  ;;  %v5155_v53 = vld [vmem:[#allocation2 + $0x10] sm:$0xf] }
 0x2e5   : > { %7508 = vmatprep.mubr.msk.bf16.mxu1 %vm2903_vm5, %v8016_v56  ;;  %v6818_v59 = vcombine.low %v5155_v53, %v11226_v10  ;;  %v11231_v53 = vld [vmem:[#allocation31_spill] sm:$0xff] }
 0x2e6   : > { %v5324_v10 = vshll.u32 %v11231_v53, 16  ;;  %v5328_v16 = vshrl.u32 %v11231_v53, 16 }
 0x2e7   : > { %v5279_v4 = vshll.u32 %v6818_v59, 16  ;;  %v5277_v2 = vshrl.u32 %v6818_v59, 16 }
 0x2e8   : > { %v5326_v52 = vrot.slane %v5324_v10, 1  ;;  %v5364_v10 = vshll.u32 %v10220_v18, 16 }
 0x2e9   : > { %v5281_v7 = vrot.slane %v5279_v4, 1 }
 0x2eb   : > { %v5282_v57 = vor.u32 %v5281_v7, %v5277_v2 }
 0x2ec   : > { %7509 = vmatmul.mubr.msk.bf16.vlgmr.msra.gmra.mrb[20].mxu1 %vm2903_vm5, %v8018_v27  ;;  %v5302_v27 = vrot.slane %v5300_v34, 1 }
 0x2ed   : > { %7541 = vmatpush3.bf16.msra.mxu1 %v8017_v11  ;;  %7512 = vmatprep.mubr.msk.bf16.mxu1 %vm2903_vm5, %v8019_v63  ;;  %v5287_v47 = vsel %vm2758_vm4, %v5282_v57, %v5286_v32  ;;  %v5290_v11 = vor.u32 %v5288_v48, %v5286_v32  ;;  %v5330_v57 = vor.u32 %v5328_v16, %v5326_v52  ;;  %v5342_v48 = vrot.slane %v5340_v25, 1 }
 0x2ee   : > { %7542 = vmatprep.subr.bf16.mxu1 %v8026_v41  ;;  %v5366_v16 = vrot.slane %v5364_v10, 1  ;;  %v5404_v10 = vshll.u32 %v10468_v38, 16  ;;  %v11233_v38 = vld [vmem:[#allocation32_spill] sm:$0xff] }
 0x2f1   : > { %7543 = vmatpush3.bf16.msra.mxu1 %v8026_v41  ;;  %v8045_v41 = vld [vmem:[%s10862_s5 + $0x88] sm:$0xff]  }
 0x2f2   : > { %7576 = vmatprep.subr.bf16.mxu1 %v10448_v31 }
 0x2f4   : > { %7513 = vmatmul.mubr.msk.bf16.gmra.mrb[24].mxu1 %vm2903_vm5, %v8020_v6  ;;  %v5295_v6 = vsel %vm2758_vm4, %v5290_v11, %v5294_v36  ;;  %v5348_v11 = vshll.u32 %v10216_v39, 16 }
 0x2f5   : > { %7516 = vmatprep.mubr.msk.bf16.mxu1 %vm2903_vm5, %v8021_v1 }
 0x2fc   : > { %7517 = vmatmul.mubr.msk.bf16.gmra.mrb[28].mxu1 %vm2903_vm5, %v8022_v58  ;;  %v5303_v58 = vsel %vm2758_vm4, %v5298_v21, %v5302_v27 }
 0x2fd   : > { %7520 = vmatprep.mubr.msk.bf16.mxu1 %vm2903_vm5, %v8023_v30  ;;  %v5310_v30 = vrot.slane %v5308_v44, 1  ;;  %v5344_v44 = vshrl.u32 %v10211_v35, 16 }
 0x304   : > { %7521 = vmatmul.mubr.msk.bf16.gmra.mrb[0].mxu1 %vm2903_vm5, %v8024_v22 }
 0x305   : > { %7524 = vmatprep.mubr.msk.bf16.mxu1 %vm2903_vm5, %v8025_v3  ;;  %v5312_v3 = vshrl.u32 %v10201_v33, 16 }
 0x30c   : > { %7525 = vmatmul.mubr.msk.bf16.gmra.mrb[4].mxu1 %vm2903_vm5, %v8027_v45  ;;  %v11230_v45 = vld [vmem:[#allocation10_spill] sm:$0xff] }
 0x30d   : > { %7528 = vmatprep.mubr.msk.bf16.mxu1 %vm2903_vm5, %v8028_v37  ;;  %v5316_v37 = vshll.u32 %v11230_v45, 16 }
 0x314   : > { %7529 = vmatmul.mubr.msk.bf16.gmra.mrb[8].mxu1 %vm2903_vm5, %v8029_v19  ;;  %v5304_v19 = vshrl.u32 %v11229_v12, 16 }
 0x315   : > { %7532 = vmatprep.mubr.msk.bf16.mxu1 %vm2903_vm5, %v8030_v43  ;;  %v5314_v43 = vor.u32 %v5312_v3, %v5310_v30  ;;  %v5350_v3 = vrot.slane %v5348_v11, 1  ;;  %v5396_v11 = vshll.u32 %v10464_v9, 16 }
 0x316   : > { %v5306_v59 = vor.u32 %v5304_v19, %v5302_v27  ;;  %v5336_v27 = vshrl.u32 %v10207_v14, 16  ;;  %v5360_v14 = vshrl.u32 %v10218_v13, 16 }
 0x31b   : > { %v10462_v54 = vpop.f32.mrb[140].mxu0 }
 0x31c   : > { %v10466_v28 = vpop.f32.mrb[141].mxu0  ;;  %7533 = vmatmul.mubr.msk.bf16.gmra.mrb[12].mxu1 %vm2903_vm5, %v8031_v17 }
 0x31d   : > { %v10470_v40 = vpop.f32.mrb[142].mxu0  ;;  %7536 = vmatprep.mubr.msk.bf16.mxu1 %vm2903_vm5, %v8032_v0  ;;  %v5318_v0 = vrot.slane %v5316_v37, 1 }
 0x31e   : > { %v10474_v29 = vpop.f32.mrb[143].mxu0 }
 0x31f   : > { %v5319_v33 = vsel %vm2758_vm4, %v5314_v43, %v5318_v0 }
 0x323   : > { %v10485_v49 = vpop.f32.mrb[144].mxu0 }
 0x324   : > { %v10487_v51 = vpop.f32.mrb[145].mxu0  ;;  %7537 = vmatmul.mubr.msk.bf16.gmra.mrb[16].mxu1 %vm2903_vm5, %v8033_v15  ;;  %v5320_v15 = vshrl.u32 %v11230_v45, 16 }
 0x325   : > { %v10489_v46 = vpop.f32.mrb[146].mxu0  ;;  %7544 = vmatprep.mubr.msk.bf16.mxu1 %vm2903_vm5, %v5287_v47  ;;  %v5334_v47 = vrot.slane %v5332_v55, 1 }
 0x326   : > { %v10493_v23 = vpop.f32.mrb[147].mxu0  ;;  %v5322_v50 = vor.u32 %v5320_v15, %v5318_v0 }
 0x327   : > { %v5335_v34 = vsel %vm2758_vm4, %v5330_v57, %v5334_v47 }
 0x328   : > { %v5327_v60 = vsel %vm2758_vm4, %v5322_v50, %v5326_v52 }
 0x32b   : > { %v10500_v56 = vpop.f32.mrb[148].mxu0 }
 0x32c   : > { %v10505_v63 = vpop.f32.mrb[149].mxu0  ;;  %7545 = vmatmul.mubr.msk.bf16.vlgmr.msra.gmra.mrb[20].mxu1 %vm2903_vm5, %v5295_v6  ;;  %v5356_v6 = vshll.u32 %v10218_v13, 16 }
 0x32d   : > { %v10508_v1 = vpop.f32.mrb[150].mxu0  ;;  %7577 = vmatpush3.bf16.msra.mxu1 %v10448_v31  ;;  %7548 = vmatprep.mubr.msk.bf16.mxu1 %vm2903_vm5, %v5303_v58  ;;  %v5311_v31 = vsel %vm2758_vm4, %v5306_v59, %v5310_v30  ;;  %v5338_v58 = vor.u32 %v5336_v27, %v5334_v47  ;;  %v5352_v59 = vshrl.u32 %v10216_v39, 16  ;;  %v5376_v39 = vshrl.u32 %v10223_v61, 16  ;;  %v8050_v47 = vld [vmem:[#allocation2 + $0x80] sm:$0xff]  }
 0x32e   : > { %v10512_v22 = vpop.f32.mrb[151].mxu0  ;;  %7578 = vmatprep.subr.bf16.mxu1 %v8045_v41  ;;  %v5358_v43 = vrot.slane %v5356_v6, 1 }
 0x32f   : > { %v5343_v37 = vsel %vm2758_vm4, %v5338_v58, %v5342_v48 }
 0x330   : > { %v5362_v0 = vor.u32 %v5360_v14, %v5358_v43  ;;  %v5400_v14 = vshrl.u32 %v10464_v9, 16 }
 0x331   : > { %7579 = vmatpush3.bf16.msra.mxu1 %v8045_v41  ;;  %v5346_v41 = vor.u32 %v5344_v44, %v5342_v48  ;;  %v5392_v44 = vshrl.u32 %v8050_v47, 16 }
 0x332   : > { %v5367_v13 = vsel %vm2758_vm4, %v5362_v0, %v5366_v16 }
 0x333   : > { %v10520_v4 = vpop.f32.mrb[152].mxu0  ;;  %v5351_v35 = vsel %vm2758_vm4, %v5346_v41, %v5350_v3 }
 0x334   : > { %v10522_v17 = vpop.f32.mrb[153].mxu0  ;;  %7549 = vmatmul.mubr.msk.bf16.gmra.mrb[24].mxu1 %vm2903_vm5, %v5311_v31  ;;  %v5372_v31 = vshll.u32 %v10223_v61, 16 }
 0x335   : > { %v10525_v7 = vpop.f32.mrb[154].mxu0  ;;  %7552 = vmatprep.mubr.msk.bf16.mxu1 %vm2903_vm5, %v5319_v33  ;;  %v5354_v33 = vor.u32 %v5352_v59, %v5350_v3  ;;  %v5384_v3 = vshrl.u32 %v10225_v42, 16 }
 0x336   : > { %v10529_v2 = vpop.f32.mrb[155].mxu0  ;;  %v5374_v25 = vrot.slane %v5372_v31, 1 }
 0x337   : > { %v5359_v15 = vsel %vm2758_vm4, %v5354_v33, %v5358_v43  ;;  %v5406_v33 = vrot.slane %v5404_v10, 1 }
 0x33b   : > { %v7358_v32 = vpop.f32.mrb[156].mxu0 }
 0x33c   : > { %v3303_v36 = vpop.f32.mrb[157].mxu0  ;;  %7553 = vmatmul.mubr.msk.bf16.gmra.mrb[28].mxu1 %vm2903_vm5, %v5327_v60  ;;  %v5380_v32 = vshll.u32 %v10225_v42, 16  ;;  %v5378_v60 = vor.u32 %v5376_v39, %v5374_v25  ;;  %v11236_v39 = vld [vmem:[#allocation12_spill] sm:$0xff] }
 0x33d   : > { %v7359_v12 = vpop.f32.mrb[158].mxu0  ;;  %7556 = vmatprep.mubr.msk.bf16.mxu1 %vm2903_vm5, %v5335_v34  ;;  %v5368_v36 = vshrl.u32 %v10220_v18, 16 }
 0x33e   : > { %v3306_v21 = vpop.f32.mrb[159].mxu0  ;;  %v5388_v12 = vshll.u32 %v8050_v47, 16 }
 0x33f   : > { %v5370_v34 = vor.u32 %v5368_v36, %v5366_v16  ;;  %v5382_v21 = vrot.slane %v5380_v32, 1  ;;  %v11237_v32 = vld [vmem:[#allocation36_spill] sm:$0xff]  ;;  %v11239_v36 = vld [vmem:[#allocation38_spill] sm:$0xff] }
 0x340   : > { %v5390_v18 = vrot.slane %v5388_v12, 1  ;;  %v5697_v12 = vrot.slane %v8050_v47, 1 }
 0x341   : > { %v5375_v41 = vsel %vm2758_vm4, %v5370_v34, %v5374_v25  ;;  %v5383_v61 = vsel %vm2758_vm4, %v5378_v60, %v5382_v21  ;;  %v5386_v43 = vor.u32 %v5384_v3, %v5382_v21  ;;  %v11235_v25 = vld [vmem:[#allocation35_spill] sm:$0xff]  ;;  %v11241_v34 = vrot.slane %v10225_v42, 1 }
 0x342   : > { %v11240_v60 = vld [vmem:[#allocation39_spill] sm:$0xff] }
 0x343   : > { %v10544_v30 = vpop.f32.mrb[128].mxu0  ;;  %v5391_v0 = vsel %vm2758_vm4, %v5386_v43, %v5390_v18 }
 0x344   : > { %v10546_v45 = vpop.f32.mrb[129].mxu0  ;;  %7557 = vmatmul.mubr.msk.bf16.gmra.mrb[0].mxu1 %vm2903_vm5, %v5343_v37  ;;  %v5394_v37 = vor.u32 %v5392_v44, %v5390_v18 }
 0x345   : > { %v10549_v19 = vpop.f32.mrb[130].mxu0  ;;  %7560 = vmatprep.mubr.msk.bf16.mxu1 %vm2903_vm5, %v5351_v35  ;;  %v5398_v35 = vrot.slane %v5396_v11, 1 }
 0x346   : > { %v10553_v53 = vpop.f32.mrb[131].mxu0 }
 0x347   : > { %v5399_v59 = vsel %vm2758_vm4, %v5394_v37, %v5398_v35  ;;  %v5402_v31 = vor.u32 %v5400_v14, %v5398_v35 }
 0x349   : > { %v5407_v16 = vsel %vm2758_vm4, %v5402_v31, %v5406_v33  ;;  %vm6146_vm4 = vcmask 519168  }
 0x34b   : > { %v10560_v52 = vpop.f32.mrb[132].mxu0 }
 0x34c   : > { %v10562_v55 = vpop.f32.mrb[133].mxu0  ;;  %7561 = vmatmul.mubr.msk.bf16.gmra.mrb[4].mxu1 %vm2903_vm5, %v5359_v15  ;;  %v11232_v15 = vld [vmem:[#allocation11_spill] sm:$0xff] }
 0x34d   : > { %v10565_v57 = vpop.f32.mrb[134].mxu0  ;;  %7564 = vmatprep.mubr.msk.bf16.mxu1 %vm2903_vm5, %v5367_v13  ;;  %v11234_v13 = vld [vmem:[#allocation34_spill] sm:$0xff] }
 0x34e   : > { %v10569_v50 = vpop.f32.mrb[135].mxu0 }
 0x353   : > { %v10575_v48 = vpop.f32.mrb[136].mxu0 }
 0x354   : > { %v10578_v27 = vpop.f32.mrb[137].mxu0  ;;  %7565 = vmatmul.mubr.msk.bf16.gmra.mrb[8].mxu1 %vm2903_vm5, %v5375_v41 }
 0x355   : > { %v10581_v6 = vpop.f32.mrb[138].mxu0  ;;  %7568 = vmatprep.mubr.msk.bf16.mxu1 %vm2903_vm5, %v5383_v61 }
 0x356   : > { %v10585_v58 = vpop.f32.mrb[139].mxu0 }
 0x35c   : > { %7569 = vmatmul.mubr.msk.bf16.gmra.mrb[12].mxu1 %vm2903_vm5, %v5391_v0 }
 0x35d   : > { %7572 = vmatprep.mubr.msk.bf16.mxu1 %vm2903_vm5, %v5399_v59 }
 0x364   : > { %7573 = vmatmul.mubr.msk.bf16.gmra.mrb[16].mxu1 %vm2903_vm5, %v5407_v16 }
 0x365   : > { %7580 = vmatprep.mubr.msk.bf16.mxu1 %vm2903_vm5, %v10236_v8  ;;  %v11238_v8 = vld [vmem:[#allocation37_spill] sm:$0xff] }
 0x36c   : > { %7581 = vmatmul.mubr.msk.bf16.vlgmr.msra.gmra.mrb[20].mxu1 %vm2903_vm5, %v11232_v15 }
 0x36d   : > { %7584 = vmatprep.mubr.msk.bf16.mxu1 %vm2903_vm5, %v11233_v38 }
 0x374   : > { %7585 = vmatmul.mubr.msk.bf16.gmra.mrb[24].mxu1 %vm2903_vm5, %v11234_v13 }
 0x375   : > { %7588 = vmatprep.mubr.msk.bf16.mxu1 %vm2903_vm5, %v11235_v25 }
 0x37c   : > { %7589 = vmatmul.mubr.msk.bf16.gmra.mrb[28].mxu1 %vm2903_vm5, %v11236_v39 }
 0x37d   : > { %7592 = vmatprep.mubr.msk.bf16.mxu1 %vm2903_vm5, %v11237_v32 }
 0x384   : > { %7593 = vmatmul.mubr.msk.bf16.gmra.mrb[0].mxu1 %vm2903_vm5, %v10261_v20  ;;  %v5700_v20 = vsel %vm3327_vm7, %v5697_v12, %v5699_v24 }
 0x385   : > { %7596 = vmatprep.mubr.msk.bf16.mxu1 %vm2903_vm5, %v10266_v26  ;;  %v5698_v26 = vsel %vm3327_vm7, %v11241_v34, %v5697_v12 }
 0x38c   : > { %7597 = vmatmul.mubr.msk.bf16.gmra.mrb[4].mxu1 %vm2903_vm5, %v10269_v5  ;;  %v10636_v5 = vld [vmem:[%s10863_s6] ss:$0 sm:$0xff] }
 0x38d   : > { %7600 = vmatprep.mubr.msk.bf16.mxu1 %vm2903_vm5, %v11238_v8 }
 0x394   : > { %7601 = vmatmul.mubr.msk.bf16.gmra.mrb[8].mxu1 %vm2903_vm5, %v11239_v36 }
 0x395   : > { %7604 = vmatprep.mubr.msk.bf16.mxu1 %vm2903_vm5, %v11240_v60 }
 0x39c   : > { %7605 = vmatmul.mubr.msk.bf16.gmra.mrb[12].mxu1 %vm2903_vm5, %v5698_v26 }
 0x39d   : > { %7608 = vmatprep.mubr.msk.bf16.mxu1 %vm2903_vm5, %v5700_v20 }
 0x3a4   : > { %7609 = vmatmul.mubr.msk.bf16.gmra.mrb[16].mxu1 %vm2903_vm5, %v10482_v62  ;;  %v10645_v62 = vld [vmem:[%s10864_s7] ss:$0 sm:$0xff]  ;;  %vm6147_vm5 = vsmask.f32 3328 }
 0x3a5   : > { %vm6148_vm7 = vmand %vm6146_vm4, %vm6147_vm5  ;;  %vm6300_vm4 = vcmask 519169  }
 0x43f   : > { %v7582_v47 = vpop.f32.mrb[20].mxu1 }
 0x440   : > { %v7616_v9 = vadd.f32 %v7582_v47, %v10544_v30  ;;  %v5797_v24 = vpop.f32.mrb[21].mxu1 }
 0x441   : > { %v7617_v42 = vadd.f32 %v5797_v24, %v10546_v45  ;;  %v7583_v21 = vpop.f32.mrb[22].mxu1  ;;  %v10653_v45 = vld [vmem:[%s10865_s8] ss:$0 sm:$0xff] }
 0x442   : > { %v5964_v44 = vadd.f32 %v7616_v9, %v10636_v5  ;;  %v7618_v11 = vadd.f32 %v7583_v21, %v10549_v19  ;;  %v5800_v41 = vpop.f32.mrb[23].mxu1 }
 0x443   : > { %v5962_v61 = vadd.f32 %v7617_v42, %v10636_v5  ;;  %v7619_v18 = vadd.f32 %v5800_v41, %v10553_v53 }
 0x444   : > { %v5996_v3 = vmax.f32 %v5964_v44, 0.0  ;;  %v5965_v30 = vadd.f32 %v7618_v11, %v10636_v5 }
 0x445   : > { %v5994_v19 = vmax.f32 %v5962_v61, 0.0  ;;  %v5963_v37 = vadd.f32 %v7619_v18, %v10636_v5 }
 0x446   : > { %v6034_v35 = vmul.f32 %v10645_v62, %v5996_v3  ;;  %v5997_v43 = vmax.f32 %v5965_v30, 0.0 }
 0x447   : > { %v6032_v14 = vmul.f32 %v10645_v62, %v5994_v19  ;;  %v5995_v10 = vmax.f32 %v5963_v37, 0.0  ;;  %v7586_v53 = vpop.f32.mrb[24].mxu1 }
 0x448   : > { %v6072_v59 = vadd.f32 %v10653_v45, %v6034_v35  ;;  %v6035_v0 = vmul.f32 %v10645_v62, %v5997_v43  ;;  %v7620_v31 = vadd.f32 %v7586_v53, %v10560_v52  ;;  %v5813_v33 = vpop.f32.mrb[25].mxu1 }
 0x449   : > { %v6070_v16 = vadd.f32 %v10653_v45, %v6032_v14  ;;  %v6033_v15 = vmul.f32 %v10645_v62, %v5995_v10  ;;  %v7621_v38 = vadd.f32 %v5813_v33, %v10562_v55  ;;  %v7587_v13 = vpop.f32.mrb[26].mxu1 }
 0x44a   : > { %6105 = vst.msk [vmem:[#allocation3 + $0x10] sm:$0xff] %vm6102_vm6, %v6072_v59  ;;  %v6073_v25 = vadd.f32 %v10653_v45, %v6035_v0  ;;  %v5968_v39 = vadd.f32 %v7620_v31, %v10636_v5  ;;  %v7622_v32 = vadd.f32 %v7587_v13, %v10565_v57  ;;  %v5816_v52 = vpop.f32.mrb[27].mxu1 }
 0x44b   : > { %6103 = vst.msk [vmem:[#allocation3] sm:$0xff] %vm6102_vm6, %v6070_v16  ;;  %v6071_v8 = vadd.f32 %v10653_v45, %v6033_v15  ;;  %v5966_v36 = vadd.f32 %v7621_v38, %v10636_v5  ;;  %v7623_v60 = vadd.f32 %v5816_v52, %v10569_v50 }
 0x44c   : > { %6106 = vst.msk [vmem:[#allocation3 + $0x18] sm:$0xff] %vm6102_vm6, %v6073_v25  ;;  %v6000_v55 = vmax.f32 %v5968_v39, 0.0  ;;  %v5969_v12 = vadd.f32 %v7622_v32, %v10636_v5  ;;  %v6149_v32 = vld [vmem:[%s10704_s14] sm:$0xf] }
 0x44d   : > { %6104 = vst.msk [vmem:[#allocation3 + $0x8] sm:$0xff] %vm6102_vm6, %v6071_v8  ;;  %v5998_v57 = vmax.f32 %v5966_v36, 0.0  ;;  %v5967_v20 = vadd.f32 %v7623_v60, %v10636_v5 }
 0x44e   : > { %v6038_v34 = vmul.f32 %v10645_v62, %v6000_v55  ;;  %v6001_v26 = vmax.f32 %v5969_v12, 0.0 }
 0x44f   : > { %v6036_v47 = vmul.f32 %v10645_v62, %v5998_v57  ;;  %v5999_v50 = vmax.f32 %v5967_v20, 0.0  ;;  %v7590_v9 = vpop.f32.mrb[28].mxu1 }
 0x450   : > { %v6076_v24 = vadd.f32 %v10653_v45, %v6038_v34  ;;  %v6039_v42 = vmul.f32 %v10645_v62, %v6001_v26  ;;  %v7624_v21 = vadd.f32 %v7590_v9, %v10575_v48  ;;  %v5829_v44 = vpop.f32.mrb[29].mxu1 }
 0x451   : > { %v6074_v11 = vadd.f32 %v10653_v45, %v6036_v47  ;;  %v6037_v41 = vmul.f32 %v10645_v62, %v5999_v50  ;;  %v7625_v61 = vadd.f32 %v5829_v44, %v10578_v27  ;;  %v7591_v18 = vpop.f32.mrb[30].mxu1 }
 0x452   : > { %6109 = vst.msk [vmem:[#allocation3 + $0x30] sm:$0xff] %vm6102_vm6, %v6076_v24  ;;  %v6077_v3 = vadd.f32 %v10653_v45, %v6039_v42  ;;  %v5972_v30 = vadd.f32 %v7624_v21, %v10636_v5  ;;  %v7626_v19 = vadd.f32 %v7591_v18, %v10581_v6  ;;  %v5832_v48 = vpop.f32.mrb[31].mxu1 }
 0x453   : > { %v6140_v37 = vld [vmem:[#allocation3 + $0x10] ss:$2 sm:$0x7f]  ;;  %v6142_v35 = vld [vmem:[#allocation3 + $0x11] ss:$2 sm:$0x7f]  ;;  %v6075_v43 = vadd.f32 %v10653_v45, %v6037_v41  ;;  %v5970_v14 = vadd.f32 %v7625_v61, %v10636_v5  ;;  %v7627_v27 = vadd.f32 %v5832_v48, %v10585_v58 }
 0x454   : > { %6107 = vst.msk [vmem:[#allocation3 + $0x20] sm:$0xff] %vm6102_vm6, %v6074_v11  ;;  %v6143_v10 = vmax.f32 %v6140_v37, %v6142_v35  ;;  %v6135_v53 = vld [vmem:[#allocation3] ss:$2 sm:$0x7f]  ;;  %6110 = vst.msk [vmem:[#allocation3 + $0x38] sm:$0xff] %vm6102_vm6, %v6077_v3  ;;  %v5973_v0 = vadd.f32 %v7626_v19, %v10636_v5  ;;  %v6004_v31 = vmax.f32 %v5972_v30, 0.0 }
 0x455   : > { %v6137_v59 = vld [vmem:[#allocation3 + $0x1] ss:$2 sm:$0x7f]  ;;  %6108 = vst.msk [vmem:[#allocation3 + $0x28] sm:$0xff] %vm6102_vm6, %v6075_v43  ;;  %v6002_v33 = vmax.f32 %v5970_v14, 0.0  ;;  %v5971_v58 = vadd.f32 %v7627_v27, %v10636_v5 }
 0x456   : > { %v6138_v6 = vmax.f32 %v6135_v53, %v6137_v59  ;;  %v6005_v16 = vmax.f32 %v5973_v0, 0.0  ;;  %v6042_v38 = vmul.f32 %v10645_v62, %v6004_v31 }
 0x457   : > { %v6040_v13 = vmul.f32 %v10645_v62, %v6002_v33  ;;  %v6003_v25 = vmax.f32 %v5971_v58, 0.0  ;;  %v7594_v39 = vpop.f32.mrb[0].mxu1 }
 0x458   : > { %v6144_v15 = vmax.f32 %v6138_v6, %v6143_v10  ;;  %v6043_v52 = vmul.f32 %v10645_v62, %v6005_v16  ;;  %v7628_v8 = vadd.f32 %v7594_v39, %v10462_v54  ;;  %v5845_v36 = vpop.f32.mrb[1].mxu1  ;;  %v6080_v55 = vadd.f32 %v10653_v45, %v6042_v38 }
 0x459   : > { %v6078_v12 = vadd.f32 %v10653_v45, %v6040_v13  ;;  %v6041_v57 = vmul.f32 %v10645_v62, %v6003_v25  ;;  %v7595_v20 = vpop.f32.mrb[2].mxu1  ;;  %v7629_v47 = vadd.f32 %v5845_v36, %v10466_v28 }
 0x45a   : > { %v6145_v60 = vpack.c.bf16 %v6144_v15, %v6144_v15  ;;  %v6081_v34 = vadd.f32 %v10653_v45, %v6043_v52  ;;  %v5976_v26 = vadd.f32 %v7628_v8, %v10636_v5  ;;  %v7630_v50 = vadd.f32 %v7595_v20, %v10470_v40  ;;  %v5848_v9 = vpop.f32.mrb[3].mxu1  ;;  %6113 = vst.msk [vmem:[#allocation3 + $0x50] sm:$0xff] %vm6102_vm6, %v6080_v55 }
 0x45b   : > { %v6158_v24 = vld [vmem:[#allocation3 + $0x30] ss:$2 sm:$0x7f]  ;;  %v6160_v42 = vld [vmem:[#allocation3 + $0x31] ss:$2 sm:$0x7f]  ;;  %v6079_v21 = vadd.f32 %v10653_v45, %v6041_v57  ;;  %v7631_v44 = vadd.f32 %v5848_v9, %v10474_v29  ;;  %v5974_v28 = vadd.f32 %v7629_v47, %v10636_v5 }
 0x45c   : > { %v6150_v54 = vsel %vm6148_vm7, %v6145_v60, %v6149_v32  ;;  %6111 = vst.msk [vmem:[#allocation3 + $0x40] sm:$0xff] %vm6102_vm6, %v6078_v12  ;;  %v6161_v11 = vmax.f32 %v6158_v24, %v6160_v42  ;;  %v6153_v41 = vld [vmem:[#allocation3 + $0x20] ss:$2 sm:$0x7f]  ;;  %6114 = vst.msk [vmem:[#allocation3 + $0x58] sm:$0xff] %vm6102_vm6, %v6081_v34  ;;  %v5977_v40 = vadd.f32 %v7630_v50, %v10636_v5  ;;  %v6008_v3 = vmax.f32 %v5976_v26, 0.0 }
 0x45d   : > { %6151 = vst [vmem:[%s10704_s14] sm:$0xf] %v6150_v54  ;;  %v6155_v61 = vld [vmem:[#allocation3 + $0x21] ss:$2 sm:$0x7f]  ;;  %6112 = vst.msk [vmem:[#allocation3 + $0x48] sm:$0xff] %vm6102_vm6, %v6079_v21  ;;  %v5975_v30 = vadd.f32 %v7631_v44, %v10636_v5  ;;  %v6006_v19 = vmax.f32 %v5974_v28, 0.0 }
 0x45e   : > { %v6156_v18 = vmax.f32 %v6153_v41, %v6155_v61  ;;  %v6009_v48 = vmax.f32 %v5977_v40, 0.0  ;;  %v6046_v29 = vmul.f32 %v10645_v62, %v6008_v3  ;;  %vm6330_vm7 = vsmask.f32 256 }
 0x45f   : > { %v6007_v35 = vmax.f32 %v5975_v30, 0.0  ;;  %v7598_v43 = vpop.f32.mrb[4].mxu1  ;;  %v6044_v14 = vmul.f32 %v10645_v62, %v6006_v19 }
 0x460   : > { %v6162_v37 = vmax.f32 %v6156_v18, %v6161_v11  ;;  %v6047_v27 = vmul.f32 %v10645_v62, %v6009_v48  ;;  %v7632_v10 = vadd.f32 %v7598_v43, %v10485_v49  ;;  %v5861_v53 = vpop.f32.mrb[5].mxu1  ;;  %v6084_v0 = vadd.f32 %v10653_v45, %v6046_v29 }
 0x461   : > { %v6045_v6 = vmul.f32 %v10645_v62, %v6007_v35  ;;  %v7633_v31 = vadd.f32 %v5861_v53, %v10487_v51  ;;  %v7599_v33 = vpop.f32.mrb[6].mxu1  ;;  %v6082_v58 = vadd.f32 %v10653_v45, %v6044_v14 }
 0x462   : > { %v6919_v59 = vpack.c.bf16 %v6162_v37, %v6162_v37  ;;  %v6085_v16 = vadd.f32 %v10653_v45, %v6047_v27  ;;  %v5980_v15 = vadd.f32 %v7632_v10, %v10636_v5  ;;  %v7634_v38 = vadd.f32 %v7599_v33, %v10489_v46  ;;  %v5864_v13 = vpop.f32.mrb[7].mxu1  ;;  %6117 = vst.msk [vmem:[#allocation3 + $0x70] sm:$0xff] %vm6102_vm6, %v6084_v0 }
 0x463   : > { %v6083_v39 = vadd.f32 %v10653_v45, %v6045_v6  ;;  %v5978_v32 = vadd.f32 %v7633_v31, %v10636_v5  ;;  %v6192_v8 = vld [vmem:[#allocation3 + $0x50] ss:$2 sm:$0x7f]  ;;  %v6194_v36 = vld [vmem:[#allocation3 + $0x51] ss:$2 sm:$0x7f]  ;;  %v7635_v60 = vadd.f32 %v5864_v13, %v10493_v23 }
 0x464   : > { %v6168_v49 = vshll.u32 %v6919_v59, 16  ;;  %v6171_v25 = vshrl.u32 %v6919_v59, 16  ;;  %v6181_v52 = vld [vmem:[%s10704_s14] sm:$0x8]  ;;  %6115 = vst.msk [vmem:[#allocation3 + $0x60] sm:$0xff] %vm6102_vm6, %v6082_v58  ;;  %6118 = vst.msk [vmem:[#allocation3 + $0x78] sm:$0xff] %vm6102_vm6, %v6085_v16  ;;  %v5981_v46 = vadd.f32 %v7634_v38, %v10636_v5  ;;  %v6195_v57 = vmax.f32 %v6192_v8, %v6194_v36 }
 0x465   : > { %v6187_v20 = vld [vmem:[#allocation3 + $0x40] ss:$2 sm:$0x7f]  ;;  %6116 = vst.msk [vmem:[#allocation3 + $0x68] sm:$0xff] %vm6102_vm6, %v6083_v39  ;;  %v6012_v34 = vmax.f32 %v5980_v15, 0.0  ;;  %v6010_v47 = vmax.f32 %v5978_v32, 0.0  ;;  %v5979_v9 = vadd.f32 %v7635_v60, %v10636_v5 }
 0x466   : > { %v6170_v55 = vrot.slane %v6168_v49, 5  ;;  %v6173_v12 = vrot.slane %v6171_v25, 4  ;;  %v6189_v26 = vld [vmem:[#allocation3 + $0x41] ss:$2 sm:$0x7f]  ;;  %v6013_v50 = vmax.f32 %v5981_v46, 0.0 }
 0x467   : > { %v6190_v42 = vmax.f32 %v6187_v20, %v6189_v26  ;;  %v6050_v23 = vmul.f32 %v10645_v62, %v6012_v34  ;;  %v7602_v21 = vpop.f32.mrb[8].mxu1  ;;  %v6048_v44 = vmul.f32 %v10645_v62, %v6010_v47  ;;  %v6011_v41 = vmax.f32 %v5979_v9, 0.0 }
 0x468   : > { %v6174_v54 = vor.u32 %v6173_v12, %v6170_v55  ;;  %v6182_v24 = vsel %vm10748_vm14, %v6170_v55, %v6181_v52  ;;  %v6051_v11 = vmul.f32 %v10645_v62, %v6013_v50  ;;  %v7636_v61 = vadd.f32 %v7602_v21, %v10500_v56  ;;  %v5877_v28 = vpop.f32.mrb[9].mxu1 }
 0x469   : > { %6183 = vst [vmem:[%s10704_s14] sm:$0x8] %v6182_v24  ;;  %v6196_v18 = vmax.f32 %v6190_v42, %v6195_v57  ;;  %v6088_v3 = vadd.f32 %v10653_v45, %v6050_v23  ;;  %v7637_v30 = vadd.f32 %v5877_v28, %v10505_v63  ;;  %v7603_v19 = vpop.f32.mrb[10].mxu1  ;;  %v6086_v48 = vadd.f32 %v10653_v45, %v6048_v44 }
 0x46a   : > { %v6175_v40 = vrot.slane %v6174_v54, 4  ;;  %v6089_v37 = vadd.f32 %v10653_v45, %v6051_v11  ;;  %v6049_v29 = vmul.f32 %v10645_v62, %v6011_v41  ;;  %v5984_v35 = vadd.f32 %v7636_v61, %v10636_v5  ;;  %v5880_v43 = vpop.f32.mrb[11].mxu1 }
 0x46b   : > { %v6920_v56 = vpack.c.bf16 %v6196_v18, %v6196_v18  ;;  %v6219_v14 = vld [vmem:[#allocation3 + $0x70] ss:$2 sm:$0x7f]  ;;  %v6221_v27 = vld [vmem:[#allocation3 + $0x71] ss:$2 sm:$0x7f]  ;;  %v5982_v63 = vadd.f32 %v7637_v30, %v10636_v5  ;;  %v7638_v10 = vadd.f32 %v7603_v19, %v10508_v1  ;;  %v7639_v53 = vadd.f32 %v5880_v43, %v10512_v22 }
 0x46c   : > { %6185 = vst.msk [vmem:[%s10704_s14 + $0x4] sm:$0x7] %vm6184_vm15, %v6175_v40  ;;  %v6222_v59 = vmax.f32 %v6219_v14, %v6221_v27  ;;  %v6214_v0 = vld [vmem:[#allocation3 + $0x60] ss:$2 sm:$0x7f]  ;;  %v6087_v31 = vadd.f32 %v10653_v45, %v6049_v29  ;;  %v6016_v16 = vmax.f32 %v5984_v35, 0.0 }
 0x46d   : > { %6121 = vst.msk [vmem:[#allocation3 + $0x90] sm:$0xff] %vm6102_vm6, %v6088_v3  ;;  %v6216_v6 = vld [vmem:[#allocation3 + $0x61] ss:$2 sm:$0x7f]  ;;  %6119 = vst.msk [vmem:[#allocation3 + $0x80] sm:$0xff] %vm6102_vm6, %v6086_v48  ;;  %v6201_v33 = vrot.slane %v6920_v56, 5  ;;  %v5985_v38 = vadd.f32 %v7638_v10, %v10636_v5  ;;  %v5983_v13 = vadd.f32 %v7639_v53, %v10636_v5 }
 0x46e   : > { %6122 = vst.msk [vmem:[#allocation3 + $0x98] sm:$0xff] %vm6102_vm6, %v6089_v37  ;;  %v6217_v58 = vmax.f32 %v6214_v0, %v6216_v6  ;;  %v6014_v15 = vmax.f32 %v5982_v63, 0.0  ;;  %v6210_v22 = vld [vmem:[%s10704_s14 + $0x8] sm:$0x7]  ;;  %6120 = vst.msk [vmem:[#allocation3 + $0x88] sm:$0xff] %vm6102_vm6, %v6087_v31  ;;  %v6054_v39 = vmul.f32 %v10645_v62, %v6016_v16 }
 0x46f   : > { %v6202_v49 = vrot.slane %v6201_v33, 4  ;;  %6206 = vst.msk [vmem:[%s10704_s14 + $0x4] sm:$0x8] %vm6178_vm11, %v6201_v33  ;;  %v7606_v51 = vpop.f32.mrb[12].mxu1  ;;  %v6017_v52 = vmax.f32 %v5985_v38, 0.0  ;;  %v6015_v8 = vmax.f32 %v5983_v13, 0.0 }
 0x470   : > { %v6223_v25 = vmax.f32 %v6217_v58, %v6222_v59  ;;  %v6052_v32 = vmul.f32 %v10645_v62, %v6014_v15  ;;  %v7640_v36 = vadd.f32 %v7606_v51, %v10520_v4  ;;  %v5893_v46 = vpop.f32.mrb[13].mxu1  ;;  %v6092_v12 = vadd.f32 %v10653_v45, %v6054_v39  ;;  %v6271_v1 = vld [vmem:[%s10704_s14 + $0x10] sm:$0x3] }
 0x471   : > { %v6211_v60 = vsel %vm10783_vm0, %v6202_v49, %v6210_v22  ;;  %v7607_v20 = vpop.f32.mrb[14].mxu1  ;;  %v6055_v34 = vmul.f32 %v10645_v62, %v6017_v52  ;;  %v6053_v26 = vmul.f32 %v10645_v62, %v6015_v8  ;;  %v7641_v50 = vadd.f32 %v5893_v46, %v10522_v17 }
 0x472   : > { %v6921_v55 = vpack.c.bf16 %v6223_v25, %v6223_v25  ;;  %v6090_v57 = vadd.f32 %v10653_v45, %v6052_v32  ;;  %6212 = vst [vmem:[%s10704_s14 + $0x8] sm:$0x7] %v6211_v60  ;;  %v5988_v47 = vadd.f32 %v7640_v36, %v10636_v5  ;;  %v5896_v4 = vpop.f32.mrb[15].mxu1  ;;  %6125 = vst.msk [vmem:[#allocation3 + $0xb0] sm:$0xff] %vm6102_vm6, %v6092_v12  ;;  %vm6306_vm11 = vcmask 516096  }
 0x473   : > { %v7642_v42 = vadd.f32 %v7607_v20, %v10525_v7  ;;  %v7643_v23 = vadd.f32 %v5896_v4, %v10529_v2  ;;  %v6093_v44 = vadd.f32 %v10653_v45, %v6055_v34  ;;  %v6091_v11 = vadd.f32 %v10653_v45, %v6053_v26  ;;  %vm6331_vm12 = vmand %vm6306_vm11, %vm6330_vm7 }
 0x474   : > { %v6229_v9 = vshrl.u32 %v6921_v55, 16  ;;  %v6232_v54 = vshll.u32 %v6921_v55, 16  ;;  %6123 = vst.msk [vmem:[#allocation3 + $0xa0] sm:$0xff] %vm6102_vm6, %v6090_v57  ;;  %v6020_v41 = vmax.f32 %v5988_v47, 0.0  ;;  %v5986_v17 = vadd.f32 %v7641_v50, %v10636_v5 }
 0x475   : > { %v6253_v24 = vld [vmem:[#allocation3 + $0x90] ss:$2 sm:$0x7f]  ;;  %v6255_v21 = vld [vmem:[#allocation3 + $0x91] ss:$2 sm:$0x7f]  ;;  %v5989_v3 = vadd.f32 %v7642_v42, %v10636_v5  ;;  %v5987_v19 = vadd.f32 %v7643_v23, %v10636_v5 }
 0x476   : > { %v6231_v61 = vrot.slane %v6229_v9, 5  ;;  %v6234_v28 = vrot.slane %v6232_v54, 6  ;;  %v6256_v40 = vmax.f32 %v6253_v24, %v6255_v21  ;;  %v6248_v18 = vld [vmem:[#allocation3 + $0x80] ss:$2 sm:$0x7f]  ;;  %6126 = vst.msk [vmem:[#allocation3 + $0xb8] sm:$0xff] %vm6102_vm6, %v6093_v44  ;;  %v6058_v7 = vmul.f32 %v10645_v62, %v6020_v41 }
 0x477   : > { %v6250_v30 = vld [vmem:[#allocation3 + $0x81] ss:$2 sm:$0x7f]  ;;  %6124 = vst.msk [vmem:[#allocation3 + $0xa8] sm:$0xff] %vm6102_vm6, %v6091_v11  ;;  %v6018_v2 = vmax.f32 %v5986_v17, 0.0  ;;  %v6021_v35 = vmax.f32 %v5989_v3, 0.0 }
 0x478   : > { %v6235_v48 = vor.u32 %v6234_v28, %v6231_v61  ;;  %v6251_v29 = vmax.f32 %v6248_v18, %v6250_v30  ;;  %v7610_v43 = vpop.f32.mrb[16].mxu1  ;;  %v6096_v56 = vadd.f32 %v10653_v45, %v6058_v7  ;;  %v6019_v27 = vmax.f32 %v5987_v19, 0.0  ;;  %v6332_v21 = vld [vmem:[%s10704_s14 + $0x18] sm:$0x1] }
 0x479   : > { %v6056_v14 = vmul.f32 %v10645_v62, %v6018_v2  ;;  %v5909_v5 = vpop.f32.mrb[17].mxu1  ;;  %v6242_v10 = vld [vmem:[%s10704_s14 + $0x8] sm:$0xc]  ;;  %v6059_v59 = vmul.f32 %v10645_v62, %v6021_v35 }
 0x47a   : > { %v6236_v63 = vrot.slane %v6235_v48, 4  ;;  %v6257_v53 = vmax.f32 %v6251_v29, %v6256_v40  ;;  %v7611_v0 = vpop.f32.mrb[18].mxu1  ;;  %v6243_v6 = vsel %vm10819_vm8, %v6235_v48, %v6242_v10  ;;  %6129 = vst.msk [vmem:[#allocation3 + $0xd0] sm:$0xff] %vm6102_vm6, %v6096_v56  ;;  %v6057_v33 = vmul.f32 %v10645_v62, %v6019_v27 }
 0x47b   : > { %v6094_v31 = vadd.f32 %v10653_v45, %v6056_v14  ;;  %v5912_v58 = vpop.f32.mrb[19].mxu1  ;;  %6244 = vst [vmem:[%s10704_s14 + $0x8] sm:$0xc] %v6243_v6  ;;  %v6097_v15 = vadd.f32 %v10653_v45, %v6059_v59 }
 0x47c   : > { %6246 = vst.msk [vmem:[%s10704_s14 + $0xc] sm:$0x3] %vm6245_vm3, %v6236_v63  ;;  %v6922_v16 = vpack.c.bf16 %v6257_v53, %v6257_v53  ;;  %v6095_v22 = vadd.f32 %v10653_v45, %v6057_v33 }
 0x47d   : > { %6127 = vst.msk [vmem:[#allocation3 + $0xc0] sm:$0xff] %vm6102_vm6, %v6094_v31  ;;  %v6280_v13 = vld [vmem:[#allocation3 + $0xb0] ss:$2 sm:$0x7f]  ;;  %6130 = vst.msk [vmem:[#allocation3 + $0xd8] sm:$0xff] %vm6102_vm6, %v6097_v15 }
 0x47e   : > { %v6262_v38 = vrot.slane %v6922_v16, 6  ;;  %v6282_v62 = vld [vmem:[#allocation3 + $0xb1] ss:$2 sm:$0x7f]  ;;  %6128 = vst.msk [vmem:[#allocation3 + $0xc8] sm:$0xff] %vm6102_vm6, %v6095_v22 }
 0x47f   : > { %v6275_v49 = vld [vmem:[#allocation3 + $0xa0] ss:$2 sm:$0x7f]  ;;  %v6283_v39 = vmax.f32 %v6280_v13, %v6282_v62  ;;  %v6277_v32 = vld [vmem:[#allocation3 + $0xa1] ss:$2 sm:$0x7f] }
 0x480   : > { %v6263_v25 = vrot.slane %v6262_v38, 4  ;;  %6267 = vst.msk [vmem:[%s10704_s14 + $0xc] sm:$0xc] %vm6239_vm1, %v6262_v38  ;;  %v6278_v51 = vmax.f32 %v6275_v49, %v6277_v32  ;;  %vm6301_vm6 = vsmask.f32 7942 }
 0x481   : > { %vm6302_vm5 = vmand %vm6300_vm4, %vm6301_vm6 }
 0x482   : > { %v6272_v52 = vsel %vm6270_vm10, %v6263_v25, %v6271_v1  ;;  %v6284_v45 = vmax.f32 %v6278_v51, %v6283_v39 }
 0x483   : > { %6273 = vst [vmem:[%s10704_s14 + $0x10] sm:$0x3] %v6272_v52 }
 0x484   : > { %v6923_v8 = vpack.c.bf16 %v6284_v45, %v6284_v45  ;;  %v6314_v36 = vld [vmem:[#allocation3 + $0xd0] ss:$2 sm:$0x7f]  ;;  %v6316_v46 = vld [vmem:[#allocation3 + $0xd1] ss:$2 sm:$0x7f] }
 0x485   : > { %v6317_v60 = vmax.f32 %v6314_v36, %v6316_v46  ;;  %v6309_v55 = vld [vmem:[#allocation3 + $0xc0] ss:$2 sm:$0x7f]  ;;  %v6311_v12 = vld [vmem:[#allocation3 + $0xc1] ss:$2 sm:$0x7f] }
 0x486   : > { %v6290_v57 = vshrl.u32 %v6923_v8, 16  ;;  %v6293_v20 = vshll.u32 %v6923_v8, 16  ;;  %v6312_v34 = vmax.f32 %v6309_v55, %v6311_v12 }
 0x488   : > { %v6292_v26 = vrot.slane %v6290_v57, 6  ;;  %v6295_v47 = vrot.slane %v6293_v20, 7  ;;  %v6318_v50 = vmax.f32 %v6312_v34, %v6317_v60 }
 0x48a   : > { %v6303_v4 = vld [vmem:[%s10704_s14 + $0x10] sm:$0xe]  ;;  %v6296_v9 = vor.u32 %v6295_v47, %v6292_v26  ;;  %v6924_v54 = vpack.c.bf16 %v6318_v50, %v6318_v50 }
 0x48c   : > { %v6297_v24 = vrot.slane %v6296_v9, 4  ;;  %v6304_v42 = vsel %vm6302_vm5, %v6296_v9, %v6303_v4  ;;  %v6323_v23 = vrot.slane %v6924_v54, 7 }
 0x48d   : > { %6305 = vst [vmem:[%s10704_s14 + $0x10] sm:$0xe] %v6304_v42 }
 0x48e   : > { %6307 = vst.msk [vmem:[%s10704_s14 + $0x14] sm:$0x1] %vm6306_vm11, %v6297_v24  ;;  %v6324_v44 = vrot.slane %v6323_v23, 4 }
 0x48f   : > { %6328 = vst.msk [vmem:[%s10704_s14 + $0x14] sm:$0xe] %vm6300_vm4, %v6323_v23 }
 0x490   : > { %v6333_v11 = vsel %vm6331_vm12, %v6324_v44, %v6332_v21 }
 0x491   : > { %6334 = vst [vmem:[%s10704_s14 + $0x18] sm:$0x1] %v6333_v11 }
 0x492 PF: > { %s19_s30 = sadd.s32 1, %s8075_s30  }
 0x493   : > { %p16_p5 = scmp.ge.s32.totalorder %s19_s30, 4  }
 0x495   :  { %18 = sbr.rel (!%p16_p5) target bundleno = 1 (0x1), region = 121 }

</bundles_post_ra>
